<compile_context>
chip_gen: v6e
topology: v6e:2x2x1
jax: 0.10.0
libtpu: 0.0.40
codegen_flags: <defaults>
</compile_context>

<pallas_src>
import functools

import jax
import jax.numpy as jnp
from jax import lax
from jax.experimental import pallas as pl
from jax.experimental.pallas import tpu as pltpu

DILATIONS = (1, 3, 5, 7)
PAD = max(DILATIONS)  # one max-pad serves all dilation branches


def _btm_kernel(H, W, Cin, Cout, tap_offsets,
                x_ref, w_ref, b_ref, o_ref, xp_ref, col_ref):
    """One batch element: fused 33-tap dilated-conv bank as a single GEMM."""
    HW = H * W

    # Zero-pad the (Cin, H, W) tile once into VMEM (channels-first layout).
    xp_ref[...] = jnp.zeros_like(xp_ref)
    xp_ref[:, PAD:PAD + H, PAD:PAD + W] = x_ref[0]

    # im2col: row block t of `col` holds the tap-t shifted image flattened to
    # (Cin, H*W), so the GEMM rhs is lane-dense (H*W on the lane axis).
    for t, (oh, ow) in enumerate(tap_offsets):
        patch = xp_ref[:, oh:oh + H, ow:ow + W]           # (Cin, H, W)
        col_ref[t * Cin:(t + 1) * Cin, :] = patch.reshape(Cin, HW)

    # Single fused GEMM on the MXU: bf16 inputs, f32 accumulation + epilogue.
    col = col_ref[...].astype(jnp.bfloat16)               # (K, HW)
    acc = jnp.dot(w_ref[...], col,
                  preferred_element_type=jnp.float32)     # (Cout, HW)
    o_ref[0] = (acc + b_ref[...]).astype(o_ref.dtype)


def _fuse_params(params):
    """Fold the 1x1 conv into the dilated 3x3 taps (host-side, tiny).

    Returns (tap_offsets, w_gemm, b_fused):
      tap_offsets : 33 static (oh, ow) offsets into the max-padded image
      w_gemm      : (Cout, 33*Cin) bf16 fused weights
      b_fused     : (Cout, 1) f32 fused bias
    """
    c4 = params["w1"].shape[0]                 # out_channels // 4
    wp = params["wp"]                          # (Cout=Cin, 4*c4)
    taps = {}
    b_f = params["bp"].astype(jnp.float32)
    for di, d in enumerate(DILATIONS):
        w = params[f"w{d}"]                    # (c4, Cin, 3, 3)  (OIHW)
        b = params[f"b{d}"]                    # (c4,)
        wp_blk = wp[:, di * c4:(di + 1) * c4]  # (Cout, c4)
        b_f = b_f + wp_blk @ b
        for ky in range(3):
            for kx in range(3):
                off = (PAD + d * (ky - 1), PAD + d * (kx - 1))
                wf = wp_blk @ w[:, :, ky, kx]  # (Cout, Cin)
                taps[off] = taps.get(off, 0.0) + wf   # merges shared center
    tap_offsets = sorted(taps)                 # 33 = 4*9 - 3 shared centers
    w_gemm = jnp.concatenate([taps[o] for o in tap_offsets], axis=1)
    return tap_offsets, w_gemm.astype(jnp.bfloat16), b_f[:, None]


@jax.jit
def btm_forward(x, params):
    """Pallas BTM forward. x: (B, Cin, H, W) f32 (NCHW) -> (B, Cin, H, W)."""
    B, Cin, H, W = x.shape
    Cout = params["wp"].shape[0]               # == Cin
    HW = H * W
    Hp, Wp = H + 2 * PAD, W + 2 * PAD

    tap_offsets, w_gemm, b_fused = _fuse_params(params)
    K = w_gemm.shape[1]                        # 33 * Cin

    kernel = functools.partial(_btm_kernel, H, W, Cin, Cout, tap_offsets)

    # Note: the fused weight/bias are ~1 KiB total, so their default
    # double-buffering costs nothing; no pipeline_mode override needed.
    out_flat = pl.pallas_call(
        kernel,
        out_shape=jax.ShapeDtypeStruct((B, Cout, HW), jnp.float32),
        grid_spec=pltpu.PrefetchScalarGridSpec(
            num_scalar_prefetch=0,
            grid=(B,),
            in_specs=[
                pl.BlockSpec((1, Cin, H, W), lambda b: (b, 0, 0, 0)),
                pl.BlockSpec((Cout, K), lambda b: (0, 0)),
                pl.BlockSpec((Cout, 1), lambda b: (0, 0)),
            ],
            out_specs=pl.BlockSpec((1, Cout, HW), lambda b: (b, 0, 0)),
            scratch_shapes=[
                pltpu.VMEM((Cin, Hp, Wp), jnp.float32),   # zero-padded image
                pltpu.VMEM((K, HW), jnp.float32),         # im2col matrix
            ],
        ),
        compiler_params=pltpu.CompilerParams(
            dimension_semantics=("parallel",)),
    )(x, w_gemm, b_fused)

    # Metadata-only reshape back to NCHW.
    return out_flat.reshape(B, Cout, H, W)


def btm_reference(x, params):
    """Pure-JAX f32 reference with the original (unfused) BTM structure."""
    dn = lax.conv_dimension_numbers(x.shape, params["w1"].shape,
                                    ("NCHW", "OIHW", "NCHW"))

    def conv(w, b, d):
        y = lax.conv_general_dilated(
            x, w, window_strides=(1, 1), padding=[(d, d), (d, d)],
            rhs_dilation=(d, d), dimension_numbers=dn)
        return y + b[None, :, None, None]

    cat = jnp.concatenate([conv(params[f"w{d}"], params[f"b{d}"], d)
                           for d in DILATIONS], axis=1)
    out = jnp.einsum("nchw,oc->nohw", cat, params["wp"])
    return out + params["bp"][None, :, None, None]


def init_params(key, in_channels, out_channels):
    c4 = out_channels // 4
    keys = jax.random.split(key, 10)
    p = {}
    for i, d in enumerate(DILATIONS):
        # PyTorch OIHW layout: (out_channels//4, in_channels, 3, 3)
        p[f"w{d}"] = 0.1 * jax.random.normal(
            keys[i], (c4, in_channels, 3, 3), jnp.float32)
        p[f"b{d}"] = 0.1 * jax.random.normal(keys[4 + i], (c4,), jnp.float32)
    # 1x1 conv: (in_channels, out_channels)
    p["wp"] = 0.1 * jax.random.normal(
        keys[8], (in_channels, out_channels), jnp.float32)
    p["bp"] = 0.1 * jax.random.normal(keys[9], (in_channels,), jnp.float32)
    return p


if __name__ == "__main__":
    key = jax.random.PRNGKey(0)
    k_x, k_p = jax.random.split(key)

    B, Cin, H, W = 2, 4, 16, 16
    out_channels = 16                 # out_channels // 4 = 4 per branch

    x = jax.random.normal(k_x, (B, Cin, H, W), jnp.float32)
    params = init_params(k_p, Cin, out_channels)

    out = jax.block_until_ready(btm_forward(x, params))
    ref = jax.block_until_ready(btm_reference(x, params))

    assert out.shape == (B, Cin, H, W)
    # bf16 MXU operands with f32 accumulation: ~1e-3 abs error vs f32 ref.
    assert jnp.allclose(out, ref, rtol=1e-2, atol=1e-2), (
        float(jnp.max(jnp.abs(out - ref))))
    print("KERNEL_OK")
</pallas_src>

<mosaic_0001>
module attributes {stable_mosaic.version = 11 : i64} {
  func.func @_btm_kernel(%arg0: i32, %arg1: memref<1x4x16x16xf32, #tpu.memory_space<vmem>>, %arg2: memref<4x132xbf16, #tpu.memory_space<vmem>>, %arg3: memref<4x1xf32, #tpu.memory_space<vmem>>, %arg4: memref<1x4x256xf32, #tpu.memory_space<vmem>>, %arg5: memref<4x30x30xf32, #tpu.memory_space<vmem>>, %arg6: memref<132x256xf32, #tpu.memory_space<vmem>>) attributes {dimension_semantics = [#tpu.dimension_semantics<parallel>], iteration_bounds = array<i64: 2>, scalar_prefetch = 0 : i64, scratch_operands = 2 : i64, tpu.core_type = #tpu.core_type<tc>, window_params = [{transform_indices = @transform_0, window_bounds = array<i64: 1, 4, 16, 16>}, {pipeline_mode = #tpu.pipeline_mode<synchronous>, transform_indices = @transform_1, window_bounds = array<i64: 4, 132>}, {pipeline_mode = #tpu.pipeline_mode<synchronous>, transform_indices = @transform_2, window_bounds = array<i64: 4, 1>}, {transform_indices = @transform_3, window_bounds = array<i64: 1, 4, 256>}]} {
    %cst = arith.constant 0.000000e+00 : f32
    %0 = vector.broadcast %cst : f32 to vector<4x30x30xf32>
    %c0 = arith.constant 0 : index
    %c0_0 = arith.constant 0 : index
    %c0_1 = arith.constant 0 : index
    %1 = vector.load %arg5[%c0, %c0_0, %c0_1] : memref<4x30x30xf32, #tpu.memory_space<vmem>>, vector<4x30x30xf32>
    tpu.vector_store %arg5[%c0, %c0_0, %c0_1], %0 {strides = array<i32>} : memref<4x30x30xf32, #tpu.memory_space<vmem>>, vector<4x30x30xf32>,
    %c0_2 = arith.constant 0 : index
    %c0_3 = arith.constant 0 : index
    %c0_4 = arith.constant 0 : index
    %c0_5 = arith.constant 0 : index
    %2 = vector.load %arg1[%c0_2, %c0_3, %c0_4, %c0_5] : memref<1x4x16x16xf32, #tpu.memory_space<vmem>>, vector<1x4x16x16xf32>
    %3 = vector.shape_cast %2 : vector<1x4x16x16xf32> to vector<4x16x16xf32>
    %c0_6 = arith.constant 0 : index
    %c7 = arith.constant 7 : index
    %c7_7 = arith.constant 7 : index
    %4 = vector.load %arg5[%c0_6, %c7, %c7_7] : memref<4x30x30xf32, #tpu.memory_space<vmem>>, vector<4x16x16xf32>
    tpu.vector_store %arg5[%c0_6, %c7, %c7_7], %3 {strides = array<i32>} : memref<4x30x30xf32, #tpu.memory_space<vmem>>, vector<4x16x16xf32>,
    %c0_8 = arith.constant 0 : index
    %c0_9 = arith.constant 0 : index
    %c0_10 = arith.constant 0 : index
    %5 = vector.load %arg5[%c0_8, %c0_9, %c0_10] : memref<4x30x30xf32, #tpu.memory_space<vmem>>, vector<4x16x16xf32>
    %6 = vector.shape_cast %5 : vector<4x16x16xf32> to vector<4x256xf32>
    %c0_11 = arith.constant 0 : index
    %c0_12 = arith.constant 0 : index
    %7 = vector.load %arg6[%c0_11, %c0_12] : memref<132x256xf32, #tpu.memory_space<vmem>>, vector<4x256xf32>
    tpu.vector_store %arg6[%c0_11, %c0_12], %6 {strides = array<i32>} : memref<132x256xf32, #tpu.memory_space<vmem>>, vector<4x256xf32>,
    %c0_13 = arith.constant 0 : index
    %c0_14 = arith.constant 0 : index
    %c7_15 = arith.constant 7 : index
    %8 = vector.load %arg5[%c0_13, %c0_14, %c7_15] : memref<4x30x30xf32, #tpu.memory_space<vmem>>, vector<4x16x16xf32>
    %9 = vector.shape_cast %8 : vector<4x16x16xf32> to vector<4x256xf32>
    %c4 = arith.constant 4 : index
    %c0_16 = arith.constant 0 : index
    %10 = vector.load %arg6[%c4, %c0_16] : memref<132x256xf32, #tpu.memory_space<vmem>>, vector<4x256xf32>
    tpu.vector_store %arg6[%c4, %c0_16], %9 {strides = array<i32>} : memref<132x256xf32, #tpu.memory_space<vmem>>, vector<4x256xf32>,
    %c0_17 = arith.constant 0 : index
    %c0_18 = arith.constant 0 : index
    %c14 = arith.constant 14 : index
    %11 = vector.load %arg5[%c0_17, %c0_18, %c14] : memref<4x30x30xf32, #tpu.memory_space<vmem>>, vector<4x16x16xf32>
    %12 = vector.shape_cast %11 : vector<4x16x16xf32> to vector<4x256xf32>
    %c8 = arith.constant 8 : index
    %c0_19 = arith.constant 0 : index
    %13 = vector.load %arg6[%c8, %c0_19] : memref<132x256xf32, #tpu.memory_space<vmem>>, vector<4x256xf32>
    tpu.vector_store %arg6[%c8, %c0_19], %12 {strides = array<i32>} : memref<132x256xf32, #tpu.memory_space<vmem>>, vector<4x256xf32>,
    %c0_20 = arith.constant 0 : index
    %c2 = arith.constant 2 : index
    %c2_21 = arith.constant 2 : index
    %14 = vector.load %arg5[%c0_20, %c2, %c2_21] : memref<4x30x30xf32, #tpu.memory_space<vmem>>, vector<4x16x16xf32>
    %15 = vector.shape_cast %14 : vector<4x16x16xf32> to vector<4x256xf32>
    %c12 = arith.constant 12 : index
    %c0_22 = arith.constant 0 : index
    %16 = vector.load %arg6[%c12, %c0_22] : memref<132x256xf32, #tpu.memory_space<vmem>>, vector<4x256xf32>
    tpu.vector_store %arg6[%c12, %c0_22], %15 {strides = array<i32>} : memref<132x256xf32, #tpu.memory_space<vmem>>, vector<4x256xf32>,
    %c0_23 = arith.constant 0 : index
    %c2_24 = arith.constant 2 : index
    %c7_25 = arith.constant 7 : index
    %17 = vector.load %arg5[%c0_23, %c2_24, %c7_25] : memref<4x30x30xf32, #tpu.memory_space<vmem>>, vector<4x16x16xf32>
    %18 = vector.shape_cast %17 : vector<4x16x16xf32> to vector<4x256xf32>
    %c16 = arith.constant 16 : index
    %c0_26 = arith.constant 0 : index
    %19 = vector.load %arg6[%c16, %c0_26] : memref<132x256xf32, #tpu.memory_space<vmem>>, vector<4x256xf32>
    tpu.vector_store %arg6[%c16, %c0_26], %18 {strides = array<i32>} : memref<132x256xf32, #tpu.memory_space<vmem>>, vector<4x256xf32>,
    %c0_27 = arith.constant 0 : index
    %c2_28 = arith.constant 2 : index
    %c12_29 = arith.constant 12 : index
    %20 = vector.load %arg5[%c0_27, %c2_28, %c12_29] : memref<4x30x30xf32, #tpu.memory_space<vmem>>, vector<4x16x16xf32>
    %21 = vector.shape_cast %20 : vector<4x16x16xf32> to vector<4x256xf32>
    %c20 = arith.constant 20 : index
    %c0_30 = arith.constant 0 : index
    %22 = vector.load %arg6[%c20, %c0_30] : memref<132x256xf32, #tpu.memory_space<vmem>>, vector<4x256xf32>
    tpu.vector_store %arg6[%c20, %c0_30], %21 {strides = array<i32>} : memref<132x256xf32, #tpu.memory_space<vmem>>, vector<4x256xf32>,
    %c0_31 = arith.constant 0 : index
    %c4_32 = arith.constant 4 : index
    %c4_33 = arith.constant 4 : index
    %23 = vector.load %arg5[%c0_31, %c4_32, %c4_33] : memref<4x30x30xf32, #tpu.memory_space<vmem>>, vector<4x16x16xf32>
    %24 = vector.shape_cast %23 : vector<4x16x16xf32> to vector<4x256xf32>
    %c24 = arith.constant 24 : index
    %c0_34 = arith.constant 0 : index
    %25 = vector.load %arg6[%c24, %c0_34] : memref<132x256xf32, #tpu.memory_space<vmem>>, vector<4x256xf32>
    tpu.vector_store %arg6[%c24, %c0_34], %24 {strides = array<i32>} : memref<132x256xf32, #tpu.memory_space<vmem>>, vector<4x256xf32>,
    %c0_35 = arith.constant 0 : index
    %c4_36 = arith.constant 4 : index
    %c7_37 = arith.constant 7 : index
    %26 = vector.load %arg5[%c0_35, %c4_36, %c7_37] : memref<4x30x30xf32, #tpu.memory_space<vmem>>, vector<4x16x16xf32>
    %27 = vector.shape_cast %26 : vector<4x16x16xf32> to vector<4x256xf32>
    %c28 = arith.constant 28 : index
    %c0_38 = arith.constant 0 : index
    %28 = vector.load %arg6[%c28, %c0_38] : memref<132x256xf32, #tpu.memory_space<vmem>>, vector<4x256xf32>
    tpu.vector_store %arg6[%c28, %c0_38], %27 {strides = array<i32>} : memref<132x256xf32, #tpu.memory_space<vmem>>, vector<4x256xf32>,
    %c0_39 = arith.constant 0 : index
    %c4_40 = arith.constant 4 : index
    %c10 = arith.constant 10 : index
    %29 = vector.load %arg5[%c0_39, %c4_40, %c10] : memref<4x30x30xf32, #tpu.memory_space<vmem>>, vector<4x16x16xf32>
    %30 = vector.shape_cast %29 : vector<4x16x16xf32> to vector<4x256xf32>
    %c32 = arith.constant 32 : index
    %c0_41 = arith.constant 0 : index
    %31 = vector.load %arg6[%c32, %c0_41] : memref<132x256xf32, #tpu.memory_space<vmem>>, vector<4x256xf32>
    tpu.vector_store %arg6[%c32, %c0_41], %30 {strides = array<i32>} : memref<132x256xf32, #tpu.memory_space<vmem>>, vector<4x256xf32>,
    %c0_42 = arith.constant 0 : index
    %c6 = arith.constant 6 : index
    %c6_43 = arith.constant 6 : index
    %32 = vector.load %arg5[%c0_42, %c6, %c6_43] : memref<4x30x30xf32, #tpu.memory_space<vmem>>, vector<4x16x16xf32>
    %33 = vector.shape_cast %32 : vector<4x16x16xf32> to vector<4x256xf32>
    %c36 = arith.constant 36 : index
    %c0_44 = arith.constant 0 : index
    %34 = vector.load %arg6[%c36, %c0_44] : memref<132x256xf32, #tpu.memory_space<vmem>>, vector<4x256xf32>
    tpu.vector_store %arg6[%c36, %c0_44], %33 {strides = array<i32>} : memref<132x256xf32, #tpu.memory_space<vmem>>, vector<4x256xf32>,
    %c0_45 = arith.constant 0 : index
    %c6_46 = arith.constant 6 : index
    %c7_47 = arith.constant 7 : index
    %35 = vector.load %arg5[%c0_45, %c6_46, %c7_47] : memref<4x30x30xf32, #tpu.memory_space<vmem>>, vector<4x16x16xf32>
    %36 = vector.shape_cast %35 : vector<4x16x16xf32> to vector<4x256xf32>
    %c40 = arith.constant 40 : index
    %c0_48 = arith.constant 0 : index
    %37 = vector.load %arg6[%c40, %c0_48] : memref<132x256xf32, #tpu.memory_space<vmem>>, vector<4x256xf32>
    tpu.vector_store %arg6[%c40, %c0_48], %36 {strides = array<i32>} : memref<132x256xf32, #tpu.memory_space<vmem>>, vector<4x256xf32>,
    %c0_49 = arith.constant 0 : index
    %c6_50 = arith.constant 6 : index
    %c8_51 = arith.constant 8 : index
    %38 = vector.load %arg5[%c0_49, %c6_50, %c8_51] : memref<4x30x30xf32, #tpu.memory_space<vmem>>, vector<4x16x16xf32>
    %39 = vector.shape_cast %38 : vector<4x16x16xf32> to vector<4x256xf32>
    %c44 = arith.constant 44 : index
    %c0_52 = arith.constant 0 : index
    %40 = vector.load %arg6[%c44, %c0_52] : memref<132x256xf32, #tpu.memory_space<vmem>>, vector<4x256xf32>
    tpu.vector_store %arg6[%c44, %c0_52], %39 {strides = array<i32>} : memref<132x256xf32, #tpu.memory_space<vmem>>, vector<4x256xf32>,
    %c0_53 = arith.constant 0 : index
    %c7_54 = arith.constant 7 : index
    %c0_55 = arith.constant 0 : index
    %41 = vector.load %arg5[%c0_53, %c7_54, %c0_55] : memref<4x30x30xf32, #tpu.memory_space<vmem>>, vector<4x16x16xf32>
    %42 = vector.shape_cast %41 : vector<4x16x16xf32> to vector<4x256xf32>
    %c48 = arith.constant 48 : index
    %c0_56 = arith.constant 0 : index
    %43 = vector.load %arg6[%c48, %c0_56] : memref<132x256xf32, #tpu.memory_space<vmem>>, vector<4x256xf32>
    tpu.vector_store %arg6[%c48, %c0_56], %42 {strides = array<i32>} : memref<132x256xf32, #tpu.memory_space<vmem>>, vector<4x256xf32>,
    %c0_57 = arith.constant 0 : index
    %c7_58 = arith.constant 7 : index
    %c2_59 = arith.constant 2 : index
    %44 = vector.load %arg5[%c0_57, %c7_58, %c2_59] : memref<4x30x30xf32, #tpu.memory_space<vmem>>, vector<4x16x16xf32>
    %45 = vector.shape_cast %44 : vector<4x16x16xf32> to vector<4x256xf32>
    %c52 = arith.constant 52 : index
    %c0_60 = arith.constant 0 : index
    %46 = vector.load %arg6[%c52, %c0_60] : memref<132x256xf32, #tpu.memory_space<vmem>>, vector<4x256xf32>
    tpu.vector_store %arg6[%c52, %c0_60], %45 {strides = array<i32>} : memref<132x256xf32, #tpu.memory_space<vmem>>, vector<4x256xf32>,
    %c0_61 = arith.constant 0 : index
    %c7_62 = arith.constant 7 : index
    %c4_63 = arith.constant 4 : index
    %47 = vector.load %arg5[%c0_61, %c7_62, %c4_63] : memref<4x30x30xf32, #tpu.memory_space<vmem>>, vector<4x16x16xf32>
    %48 = vector.shape_cast %47 : vector<4x16x16xf32> to vector<4x256xf32>
    %c56 = arith.constant 56 : index
    %c0_64 = arith.constant 0 : index
    %49 = vector.load %arg6[%c56, %c0_64] : memref<132x256xf32, #tpu.memory_space<vmem>>, vector<4x256xf32>
    tpu.vector_store %arg6[%c56, %c0_64], %48 {strides = array<i32>} : memref<132x256xf32, #tpu.memory_space<vmem>>, vector<4x256xf32>,
    %c0_65 = arith.constant 0 : index
    %c7_66 = arith.constant 7 : index
    %c6_67 = arith.constant 6 : index
    %50 = vector.load %arg5[%c0_65, %c7_66, %c6_67] : memref<4x30x30xf32, #tpu.memory_space<vmem>>, vector<4x16x16xf32>
    %51 = vector.shape_cast %50 : vector<4x16x16xf32> to vector<4x256xf32>
    %c60 = arith.constant 60 : index
    %c0_68 = arith.constant 0 : index
    %52 = vector.load %arg6[%c60, %c0_68] : memref<132x256xf32, #tpu.memory_space<vmem>>, vector<4x256xf32>
    tpu.vector_store %arg6[%c60, %c0_68], %51 {strides = array<i32>} : memref<132x256xf32, #tpu.memory_space<vmem>>, vector<4x256xf32>,
    %c0_69 = arith.constant 0 : index
    %c7_70 = arith.constant 7 : index
    %c7_71 = arith.constant 7 : index
    %53 = vector.load %arg5[%c0_69, %c7_70, %c7_71] : memref<4x30x30xf32, #tpu.memory_space<vmem>>, vector<4x16x16xf32>
    %54 = vector.shape_cast %53 : vector<4x16x16xf32> to vector<4x256xf32>
    %c64 = arith.constant 64 : index
    %c0_72 = arith.constant 0 : index
    %55 = vector.load %arg6[%c64, %c0_72] : memref<132x256xf32, #tpu.memory_space<vmem>>, vector<4x256xf32>
    tpu.vector_store %arg6[%c64, %c0_72], %54 {strides = array<i32>} : memref<132x256xf32, #tpu.memory_space<vmem>>, vector<4x256xf32>,
    %c0_73 = arith.constant 0 : index
    %c7_74 = arith.constant 7 : index
    %c8_75 = arith.constant 8 : index
    %56 = vector.load %arg5[%c0_73, %c7_74, %c8_75] : memref<4x30x30xf32, #tpu.memory_space<vmem>>, vector<4x16x16xf32>
    %57 = vector.shape_cast %56 : vector<4x16x16xf32> to vector<4x256xf32>
    %c68 = arith.constant 68 : index
    %c0_76 = arith.constant 0 : index
    %58 = vector.load %arg6[%c68, %c0_76] : memref<132x256xf32, #tpu.memory_space<vmem>>, vector<4x256xf32>
    tpu.vector_store %arg6[%c68, %c0_76], %57 {strides = array<i32>} : memref<132x256xf32, #tpu.memory_space<vmem>>, vector<4x256xf32>,
    %c0_77 = arith.constant 0 : index
    %c7_78 = arith.constant 7 : index
    %c10_79 = arith.constant 10 : index
    %59 = vector.load %arg5[%c0_77, %c7_78, %c10_79] : memref<4x30x30xf32, #tpu.memory_space<vmem>>, vector<4x16x16xf32>
    %60 = vector.shape_cast %59 : vector<4x16x16xf32> to vector<4x256xf32>
    %c72 = arith.constant 72 : index
    %c0_80 = arith.constant 0 : index
    %61 = vector.load %arg6[%c72, %c0_80] : memref<132x256xf32, #tpu.memory_space<vmem>>, vector<4x256xf32>
    tpu.vector_store %arg6[%c72, %c0_80], %60 {strides = array<i32>} : memref<132x256xf32, #tpu.memory_space<vmem>>, vector<4x256xf32>,
    %c0_81 = arith.constant 0 : index
    %c7_82 = arith.constant 7 : index
    %c12_83 = arith.constant 12 : index
    %62 = vector.load %arg5[%c0_81, %c7_82, %c12_83] : memref<4x30x30xf32, #tpu.memory_space<vmem>>, vector<4x16x16xf32>
    %63 = vector.shape_cast %62 : vector<4x16x16xf32> to vector<4x256xf32>
    %c76 = arith.constant 76 : index
    %c0_84 = arith.constant 0 : index
    %64 = vector.load %arg6[%c76, %c0_84] : memref<132x256xf32, #tpu.memory_space<vmem>>, vector<4x256xf32>
    tpu.vector_store %arg6[%c76, %c0_84], %63 {strides = array<i32>} : memref<132x256xf32, #tpu.memory_space<vmem>>, vector<4x256xf32>,
    %c0_85 = arith.constant 0 : index
    %c7_86 = arith.constant 7 : index
    %c14_87 = arith.constant 14 : index
    %65 = vector.load %arg5[%c0_85, %c7_86, %c14_87] : memref<4x30x30xf32, #tpu.memory_space<vmem>>, vector<4x16x16xf32>
    %66 = vector.shape_cast %65 : vector<4x16x16xf32> to vector<4x256xf32>
    %c80 = arith.constant 80 : index
    %c0_88 = arith.constant 0 : index
    %67 = vector.load %arg6[%c80, %c0_88] : memref<132x256xf32, #tpu.memory_space<vmem>>, vector<4x256xf32>
    tpu.vector_store %arg6[%c80, %c0_88], %66 {strides = array<i32>} : memref<132x256xf32, #tpu.memory_space<vmem>>, vector<4x256xf32>,
    %c0_89 = arith.constant 0 : index
    %c8_90 = arith.constant 8 : index
    %c6_91 = arith.constant 6 : index
    %68 = vector.load %arg5[%c0_89, %c8_90, %c6_91] : memref<4x30x30xf32, #tpu.memory_space<vmem>>, vector<4x16x16xf32>
    %69 = vector.shape_cast %68 : vector<4x16x16xf32> to vector<4x256xf32>
    %c84 = arith.constant 84 : index
    %c0_92 = arith.constant 0 : index
    %70 = vector.load %arg6[%c84, %c0_92] : memref<132x256xf32, #tpu.memory_space<vmem>>, vector<4x256xf32>
    tpu.vector_store %arg6[%c84, %c0_92], %69 {strides = array<i32>} : memref<132x256xf32, #tpu.memory_space<vmem>>, vector<4x256xf32>,
    %c0_93 = arith.constant 0 : index
    %c8_94 = arith.constant 8 : index
    %c7_95 = arith.constant 7 : index
    %71 = vector.load %arg5[%c0_93, %c8_94, %c7_95] : memref<4x30x30xf32, #tpu.memory_space<vmem>>, vector<4x16x16xf32>
    %72 = vector.shape_cast %71 : vector<4x16x16xf32> to vector<4x256xf32>
    %c88 = arith.constant 88 : index
    %c0_96 = arith.constant 0 : index
    %73 = vector.load %arg6[%c88, %c0_96] : memref<132x256xf32, #tpu.memory_space<vmem>>, vector<4x256xf32>
    tpu.vector_store %arg6[%c88, %c0_96], %72 {strides = array<i32>} : memref<132x256xf32, #tpu.memory_space<vmem>>, vector<4x256xf32>,
    %c0_97 = arith.constant 0 : index
    %c8_98 = arith.constant 8 : index
    %c8_99 = arith.constant 8 : index
    %74 = vector.load %arg5[%c0_97, %c8_98, %c8_99] : memref<4x30x30xf32, #tpu.memory_space<vmem>>, vector<4x16x16xf32>
    %75 = vector.shape_cast %74 : vector<4x16x16xf32> to vector<4x256xf32>
    %c92 = arith.constant 92 : index
    %c0_100 = arith.constant 0 : index
    %76 = vector.load %arg6[%c92, %c0_100] : memref<132x256xf32, #tpu.memory_space<vmem>>, vector<4x256xf32>
    tpu.vector_store %arg6[%c92, %c0_100], %75 {strides = array<i32>} : memref<132x256xf32, #tpu.memory_space<vmem>>, vector<4x256xf32>,
    %c0_101 = arith.constant 0 : index
    %c10_102 = arith.constant 10 : index
    %c4_103 = arith.constant 4 : index
    %77 = vector.load %arg5[%c0_101, %c10_102, %c4_103] : memref<4x30x30xf32, #tpu.memory_space<vmem>>, vector<4x16x16xf32>
    %78 = vector.shape_cast %77 : vector<4x16x16xf32> to vector<4x256xf32>
    %c96 = arith.constant 96 : index
    %c0_104 = arith.constant 0 : index
    %79 = vector.load %arg6[%c96, %c0_104] : memref<132x256xf32, #tpu.memory_space<vmem>>, vector<4x256xf32>
    tpu.vector_store %arg6[%c96, %c0_104], %78 {strides = array<i32>} : memref<132x256xf32, #tpu.memory_space<vmem>>, vector<4x256xf32>,
    %c0_105 = arith.constant 0 : index
    %c10_106 = arith.constant 10 : index
    %c7_107 = arith.constant 7 : index
    %80 = vector.load %arg5[%c0_105, %c10_106, %c7_107] : memref<4x30x30xf32, #tpu.memory_space<vmem>>, vector<4x16x16xf32>
    %81 = vector.shape_cast %80 : vector<4x16x16xf32> to vector<4x256xf32>
    %c100 = arith.constant 100 : index
    %c0_108 = arith.constant 0 : index
    %82 = vector.load %arg6[%c100, %c0_108] : memref<132x256xf32, #tpu.memory_space<vmem>>, vector<4x256xf32>
    tpu.vector_store %arg6[%c100, %c0_108], %81 {strides = array<i32>} : memref<132x256xf32, #tpu.memory_space<vmem>>, vector<4x256xf32>,
    %c0_109 = arith.constant 0 : index
    %c10_110 = arith.constant 10 : index
    %c10_111 = arith.constant 10 : index
    %83 = vector.load %arg5[%c0_109, %c10_110, %c10_111] : memref<4x30x30xf32, #tpu.memory_space<vmem>>, vector<4x16x16xf32>
    %84 = vector.shape_cast %83 : vector<4x16x16xf32> to vector<4x256xf32>
    %c104 = arith.constant 104 : index
    %c0_112 = arith.constant 0 : index
    %85 = vector.load %arg6[%c104, %c0_112] : memref<132x256xf32, #tpu.memory_space<vmem>>, vector<4x256xf32>
    tpu.vector_store %arg6[%c104, %c0_112], %84 {strides = array<i32>} : memref<132x256xf32, #tpu.memory_space<vmem>>, vector<4x256xf32>,
    %c0_113 = arith.constant 0 : index
    %c12_114 = arith.constant 12 : index
    %c2_115 = arith.constant 2 : index
    %86 = vector.load %arg5[%c0_113, %c12_114, %c2_115] : memref<4x30x30xf32, #tpu.memory_space<vmem>>, vector<4x16x16xf32>
    %87 = vector.shape_cast %86 : vector<4x16x16xf32> to vector<4x256xf32>
    %c108 = arith.constant 108 : index
    %c0_116 = arith.constant 0 : index
    %88 = vector.load %arg6[%c108, %c0_116] : memref<132x256xf32, #tpu.memory_space<vmem>>, vector<4x256xf32>
    tpu.vector_store %arg6[%c108, %c0_116], %87 {strides = array<i32>} : memref<132x256xf32, #tpu.memory_space<vmem>>, vector<4x256xf32>,
    %c0_117 = arith.constant 0 : index
    %c12_118 = arith.constant 12 : index
    %c7_119 = arith.constant 7 : index
    %89 = vector.load %arg5[%c0_117, %c12_118, %c7_119] : memref<4x30x30xf32, #tpu.memory_space<vmem>>, vector<4x16x16xf32>
    %90 = vector.shape_cast %89 : vector<4x16x16xf32> to vector<4x256xf32>
    %c112 = arith.constant 112 : index
    %c0_120 = arith.constant 0 : index
    %91 = vector.load %arg6[%c112, %c0_120] : memref<132x256xf32, #tpu.memory_space<vmem>>, vector<4x256xf32>
    tpu.vector_store %arg6[%c112, %c0_120], %90 {strides = array<i32>} : memref<132x256xf32, #tpu.memory_space<vmem>>, vector<4x256xf32>,
    %c0_121 = arith.constant 0 : index
    %c12_122 = arith.constant 12 : index
    %c12_123 = arith.constant 12 : index
    %92 = vector.load %arg5[%c0_121, %c12_122, %c12_123] : memref<4x30x30xf32, #tpu.memory_space<vmem>>, vector<4x16x16xf32>
    %93 = vector.shape_cast %92 : vector<4x16x16xf32> to vector<4x256xf32>
    %c116 = arith.constant 116 : index
    %c0_124 = arith.constant 0 : index
    %94 = vector.load %arg6[%c116, %c0_124] : memref<132x256xf32, #tpu.memory_space<vmem>>, vector<4x256xf32>
    tpu.vector_store %arg6[%c116, %c0_124], %93 {strides = array<i32>} : memref<132x256xf32, #tpu.memory_space<vmem>>, vector<4x256xf32>,
    %c0_125 = arith.constant 0 : index
    %c14_126 = arith.constant 14 : index
    %c0_127 = arith.constant 0 : index
    %95 = vector.load %arg5[%c0_125, %c14_126, %c0_127] : memref<4x30x30xf32, #tpu.memory_space<vmem>>, vector<4x16x16xf32>
    %96 = vector.shape_cast %95 : vector<4x16x16xf32> to vector<4x256xf32>
    %c120 = arith.constant 120 : index
    %c0_128 = arith.constant 0 : index
    %97 = vector.load %arg6[%c120, %c0_128] : memref<132x256xf32, #tpu.memory_space<vmem>>, vector<4x256xf32>
    tpu.vector_store %arg6[%c120, %c0_128], %96 {strides = array<i32>} : memref<132x256xf32, #tpu.memory_space<vmem>>, vector<4x256xf32>,
    %c0_129 = arith.constant 0 : index
    %c14_130 = arith.constant 14 : index
    %c7_131 = arith.constant 7 : index
    %98 = vector.load %arg5[%c0_129, %c14_130, %c7_131] : memref<4x30x30xf32, #tpu.memory_space<vmem>>, vector<4x16x16xf32>
    %99 = vector.shape_cast %98 : vector<4x16x16xf32> to vector<4x256xf32>
    %c124 = arith.constant 124 : index
    %c0_132 = arith.constant 0 : index
    %100 = vector.load %arg6[%c124, %c0_132] : memref<132x256xf32, #tpu.memory_space<vmem>>, vector<4x256xf32>
    tpu.vector_store %arg6[%c124, %c0_132], %99 {strides = array<i32>} : memref<132x256xf32, #tpu.memory_space<vmem>>, vector<4x256xf32>,
    %c0_133 = arith.constant 0 : index
    %c14_134 = arith.constant 14 : index
    %c14_135 = arith.constant 14 : index
    %101 = vector.load %arg5[%c0_133, %c14_134, %c14_135] : memref<4x30x30xf32, #tpu.memory_space<vmem>>, vector<4x16x16xf32>
    %102 = vector.shape_cast %101 : vector<4x16x16xf32> to vector<4x256xf32>
    %c128 = arith.constant 128 : index
    %c0_136 = arith.constant 0 : index
    %103 = vector.load %arg6[%c128, %c0_136] : memref<132x256xf32, #tpu.memory_space<vmem>>, vector<4x256xf32>
    tpu.vector_store %arg6[%c128, %c0_136], %102 {strides = array<i32>} : memref<132x256xf32, #tpu.memory_space<vmem>>, vector<4x256xf32>,
    %c0_137 = arith.constant 0 : index
    %c0_138 = arith.constant 0 : index
    %104 = vector.load %arg6[%c0_137, %c0_138] : memref<132x256xf32, #tpu.memory_space<vmem>>, vector<132x256xf32>
    %105 = arith.truncf %104 : vector<132x256xf32> to vector<132x256xbf16>
    %c0_139 = arith.constant 0 : index
    %c0_140 = arith.constant 0 : index
    %106 = vector.load %arg2[%c0_139, %c0_140] : memref<4x132xbf16, #tpu.memory_space<vmem>>, vector<4x132xbf16>
    %cst_141 = arith.constant dense<0.000000e+00> : vector<4x256xf32>
    %107 = tpu.matmul %106, %105, %cst_141 {dimension_numbers = #tpu.dot_dimension_numbers<[1], [0], [0], [1], [0, 0, 1, 1], [], []>} : vector<4x132xbf16>, vector<132x256xbf16>, vector<4x256xf32> -> vector<4x256xf32>
    %c0_142 = arith.constant 0 : index
    %c0_143 = arith.constant 0 : index
    %108 = vector.load %arg3[%c0_142, %c0_143] : memref<4x1xf32, #tpu.memory_space<vmem>>, vector<4x1xf32>
    %109 = vector.broadcast %108 : vector<4x1xf32> to vector<4x256xf32>
    %110 = arith.addf %107, %109 : vector<4x256xf32>
    %c0_144 = arith.constant 0 : index
    %c0_145 = arith.constant 0 : index
    %c0_146 = arith.constant 0 : index
    %111 = vector.load %arg4[%c0_144, %c0_145, %c0_146] : memref<1x4x256xf32, #tpu.memory_space<vmem>>, vector<1x4x256xf32>
    %112 = vector.shape_cast %111 : vector<1x4x256xf32> to vector<4x256xf32>
    %113 = vector.shape_cast %110 : vector<4x256xf32> to vector<1x4x256xf32>
    tpu.vector_store %arg4[%c0_144, %c0_145, %c0_146], %113 {strides = array<i32>} : memref<1x4x256xf32, #tpu.memory_space<vmem>>, vector<1x4x256xf32>,
    return
  }
  func.func @transform_0(%arg0: i32) -> (i32, i32, i32, i32) {
    %c0_i32 = arith.constant 0 : i32
    %c0_i32_0 = arith.constant 0 : i32
    %c0_i32_1 = arith.constant 0 : i32
    %c0_i32_2 = arith.constant 0 : i32
    return %arg0, %c0_i32, %c0_i32_0, %c0_i32_1 : i32, i32, i32, i32
  }
  func.func @transform_1(%arg0: i32) -> (i32, i32) {
    %c0_i32 = arith.constant 0 : i32
    %c0_i32_0 = arith.constant 0 : i32
    %c0_i32_1 = arith.constant 0 : i32
    return %c0_i32, %c0_i32_0 : i32, i32
  }
  func.func @transform_2(%arg0: i32) -> (i32, i32) {
    %c0_i32 = arith.constant 0 : i32
    %c0_i32_0 = arith.constant 0 : i32
    %c0_i32_1 = arith.constant 0 : i32
    return %c0_i32, %c0_i32_0 : i32, i32
  }
  func.func @transform_3(%arg0: i32) -> (i32, i32, i32) {
    %c0_i32 = arith.constant 0 : i32
    %c0_i32_0 = arith.constant 0 : i32
    %c0_i32_1 = arith.constant 0 : i32
    return %arg0, %c0_i32, %c0_i32_0 : i32, i32, i32
  }
}

</mosaic_0001>

<bundles_post_ra>
// kernel: btm_forward.1
= control target key start
LH: loop header
LB: loop body
LE: loop exit
PB: predicated region body
PF: predicated region fallthrough
CT: control target
= control target key end

     0   :  { %s8708_s12 = smov 0   ;;  %s12281_s0 = inlined_call_operand.vmem [shape: f32[2,4,16,16], index: 0, kind: input, shape index: {}]   ;;  %s12282_s1 = inlined_call_operand.vmem [shape: bf16[4,132], index: 1, kind: input, shape index: {}]   ;;  %s12283_s2 = inlined_call_operand.vmem [shape: f32[4,1], index: 2, kind: input, shape index: {}]   ;;  %s12284_s3 = inlined_call_operand.vmem [shape: f32[2,4,256], index: 3, kind: output, shape index: {}]  }
   0x1 LB: > { %s8611_s13 = sadd.s32 4294967295, %s8666_s12   ;;  %p8615_p0 = scmp.ge.s32.totalorder %s8666_s12, 1  ;;  %s8666_s12 = sphi %s8708_s12, %s13_s12  }
   0x2   : > { %p137_p1 = scmp.lt.s32.totalorder %s8666_s12, 3 }
   0x4   : > { %p138_p2 = pnand %p8615_p0, %p137_p1 }
   0x6   : > { %141 = sbr.rel (%p138_p2) target bundleno = 3999 (0xf9f), region = 32 }
   0xb   : > { %p8716_p3 = scmp.lt.s32.totalorder %s8611_s13, 1  ;;  %vm172_vm0 = vcmask 244736   ;;  %v12285_v0 = vmov 0.0   ;;  %s8669_s19 = smov 7   ;;  %vm176_vm1 = vcmask 242688   ;;  %vm230_vm2 = vcmask 187448  }
   0xc   : > { %178 = vst.msk [vmem:[#allocation2 + $0x20] sm:$0xff] %vm172_vm0, %v12285_v0  ;;  %179 = vst.msk [vmem:[#allocation2 + $0x28] sm:$0xff] %vm172_vm0, %v12285_v0  ;;  %s8670_s20 = smov 121   ;;  %v8671_v17 = vmov 1983009808   ;;  %v252_v19 = vlaneseq  ;;  %s8672_s21 = smov 114  }
   0xd   : > { %173 = vst.msk [vmem:[#allocation2] sm:$0xff] %vm172_vm0, %v12285_v0  ;;  %174 = vst.msk [vmem:[#allocation2 + $0x8] sm:$0xff] %vm172_vm0, %v12285_v0  ;;  %s12423_s13 = smov (!%p8716_p3, %s8611_s13), 1  ;;  %v250_v18 = vunpack.c.l.s4 %v8671_v17  ;;  %s8673_s22 = smov 126   ;;  %vm439_vm3 = vcmask 130048   ;;  %vm441_vm4 = vcmask 261120  }
   0xe   : > { %175 = vst.msk [vmem:[#allocation2 + $0x10] sm:$0xff] %vm172_vm0, %v12285_v0  ;;  %180 = vst.msk [vmem:[#allocation2 + $0x30] sm:$0xff] %vm172_vm0, %v12285_v0  ;;  %s8625_s15 = sshll.u32 %s12423_s13, 6  ;;  %v8755_v24 = vshrl.u32 %v252_v19, 7  ;;  %s8674_s23 = smov 116   ;;  %vm443_vm5 = vcmask 392192  }
   0xf   : > { %182 = vst.msk [vmem:[#allocation2 + $0x40] sm:$0xff] %vm172_vm0, %v12285_v0  ;;  %183 = vst.msk [vmem:[#allocation2 + $0x48] sm:$0xff] %vm172_vm0, %v12285_v0  ;;  %s165_s18 = scalar_lea.vmem %s12281_s0, %s8625_s15  ;;  %v251_v23 = vunpack.c.0.s8 %v250_v18  ;;  %s8676_s24 = smov 32   ;;  %vm445_vm6 = vcmask 523264   ;;  %vm447_vm7 = vcmask 654336   ;;  %vm449_vm8 = vcmask 785408  }
  0x10   : > { %184 = vst.msk [vmem:[#allocation2 + $0x50] sm:$0xff] %vm172_vm0, %v12285_v0  ;;  %186 = vst.msk [vmem:[#allocation2 + $0x60] sm:$0xff] %vm172_vm0, %v12285_v0  ;;  %v192_v1 = vld [vmem:[%s165_s18 + $0x10] sm:$0xff]  ;;  %v190_v2 = vld [vmem:[%s165_s18] sm:$0xff]  ;;  %s8677_s25 = smov 64   ;;  %s8678_s26 = smov 96  }
  0x11   : > { %187 = vst.msk [vmem:[#allocation2 + $0x68] sm:$0xff] %vm172_vm0, %v12285_v0  ;;  %188 = vst.msk [vmem:[#allocation2 + $0x70] sm:$0xff] %vm172_vm0, %v12285_v0  ;;  %210 = vrot.lane.b32.xlu1 %v192_v1, %s8669_s19  ;;  %206 = vrot.lane.b32.xlu0 %v190_v2, %s8669_s19  ;;  %v193_v3 = vld [vmem:[%s165_s18 + $0x18] sm:$0xff]  ;;  %v191_v4 = vld [vmem:[%s165_s18 + $0x8] sm:$0xff]  ;;  %v8760_v30 = vsub.s32 %v251_v23, %v8755_v24  ;;  %s8679_s27 = smov 16   ;;  %s8680_s28 = smov 48  }
  0x12   : > { %v195_v5 = vld [vmem:[%s165_s18 + $0x28] sm:$0xff]  ;;  %v194_v6 = vld [vmem:[%s165_s18 + $0x20] sm:$0xff]  ;;  %177 = vst.msk [vmem:[#allocation2 + $0x18] sm:$0x3f] %vm176_vm1, %v12285_v0  ;;  %181 = vst.msk [vmem:[#allocation2 + $0x38] sm:$0x3f] %vm176_vm1, %v12285_v0 }
  0x13   : > { %185 = vst.msk [vmem:[#allocation2 + $0x58] sm:$0x3f] %vm176_vm1, %v12285_v0  ;;  %189 = vst.msk [vmem:[#allocation2 + $0x78] sm:$0x3f] %vm176_vm1, %v12285_v0  ;;  %v197_v7 = vld [vmem:[%s165_s18 + $0x38] sm:$0xff]  ;;  %v196_v8 = vld [vmem:[%s165_s18 + $0x30] sm:$0xff] }
  0x14   : > { %12324 = vst [vmem:[#allocation4_spill] sm:$0xff] %v8760_v30  ;;  %s8681_s29 = smov 80   ;;  %s8682_s30 = smov 112   ;;  %vm451_vm9 = vcmask 916480   ;;  %vm8499_vm10 = vcmask 31744   ;;  %vm8503_vm11 = vcmask 1041408  }
  0x15   : > { %212 = vrot.lane.b32.xlu1 %v193_v3, %s8669_s19  ;;  %208 = vrot.lane.b32.xlu0 %v191_v4, %s8669_s19  ;;  %s8683_s4 = smov 124   ;;  %s8684_s5 = smov 118  }
  0x16   : > { %s8685_s6 = smov 122   ;;  %s8686_s7 = smov 120  }
  0x17   : > { %s8626_s14 = sshll.u32 %s12423_s13, 3 }
  0x18   : > { %s170_s17 = scalar_lea.vmem %s12284_s3, %s8626_s14 }
  0x19   : > { %216 = vrot.lane.b32.xlu1 %v195_v5, %s8669_s19  ;;  %214 = vrot.lane.b32.xlu0 %v194_v6, %s8669_s19 }
  0x1d   : > { %220 = vrot.lane.b32.xlu1 %v197_v7, %s8669_s19  ;;  %218 = vrot.lane.b32.xlu0 %v196_v8, %s8669_s19 }
  0x83   : > { %v211_v9 = vpop.permute.xlu1 %210  ;;  %v207_v10 = vpop.permute.xlu0 %206 }
  0x84   : > { %233 = vst.msk [vmem:[#allocation2 + $0x27] sm:$0xff] %vm230_vm2, %v211_v9  ;;  %231 = vst.msk [vmem:[#allocation2 + $0x7] sm:$0xff] %vm230_vm2, %v207_v10  ;;  %v8675_v9 = vmov 1934713408  }
  0x85   : > { %v282_v10 = vunpack.c.l.s4 %v8675_v9 }
  0x87   : > { %v213_v11 = vpop.permute.xlu1 %212  ;;  %v209_v12 = vpop.permute.xlu0 %208 }
  0x88   : > { %234 = vst.msk [vmem:[#allocation2 + $0x2f] sm:$0xff] %vm230_vm2, %v213_v11  ;;  %232 = vst.msk [vmem:[#allocation2 + $0xf] sm:$0xff] %vm230_vm2, %v209_v12  ;;  %v283_v11 = vunpack.c.0.s8 %v282_v10 }
  0x8a   : > { %v8843_v12 = vsub.s32 %v283_v11, %v8755_v24 }
  0x8b   : > { %v217_v13 = vpop.permute.xlu1 %216  ;;  %v215_v14 = vpop.permute.xlu0 %214  ;;  %v462_v15 = vld [vmem:[#allocation2] sm:$0xff] }
  0x8c   : > { %236 = vst.msk [vmem:[#allocation2 + $0x4f] sm:$0xff] %vm230_vm2, %v217_v13  ;;  %235 = vst.msk [vmem:[#allocation2 + $0x47] sm:$0xff] %vm230_vm2, %v215_v14  ;;  %478 = vrot.lane.b32.xlu0 %v462_v15, %s8670_s20  ;;  %v464_v16 = vld [vmem:[#allocation2 + $0x20] sm:$0xff] }
  0x8d   : > { %v964_v59 = vld [vmem:[#allocation2 + $0x2] sm:$0xff] }
  0x8e   : > { %v966_v2 = vld [vmem:[#allocation2 + $0x22] sm:$0xff] }
  0x8f   : > { %v221_v20 = vpop.permute.xlu1 %220  ;;  %v219_v21 = vpop.permute.xlu0 %218  ;;  %v463_v22 = vld [vmem:[#allocation2 + $0x8] sm:$0xff]  ;;  %v7931_v57 = vld [vmem:[#allocation2 + $0x36] sm:$0xff] }
  0x90   : > { %238 = vst.msk [vmem:[#allocation2 + $0x6f] sm:$0xff] %vm230_vm2, %v221_v20  ;;  %237 = vst.msk [vmem:[#allocation2 + $0x67] sm:$0xff] %vm230_vm2, %v219_v21  ;;  %482 = vrot.lane.b32.xlu0 %v464_v16, %s8670_s20  ;;  %480 = vrot.lane.b32.xlu1 %v463_v22, %s8670_s20  ;;  %v465_v25 = vld [vmem:[#allocation2 + $0x28] sm:$0xff]  ;;  %v7929_v58 = vld [vmem:[#allocation2 + $0x16] sm:$0xff] }
  0x91   : > { %v965_v1 = vld [vmem:[#allocation2 + $0xa] sm:$0xff] }
  0x92   : > { %v967_v4 = vld [vmem:[#allocation2 + $0x2a] sm:$0xff] }
  0x93   : > { %v466_v26 = vld [vmem:[#allocation2 + $0x40] sm:$0xff]  ;;  %v467_v27 = vld [vmem:[#allocation2 + $0x48] sm:$0xff]  ;;  %v7933_v56 = vld [vmem:[#allocation2 + $0x56] sm:$0xff] }
  0x94   : > { %484 = vrot.lane.b32.xlu1 %v465_v25, %s8670_s20  ;;  %486 = vrot.lane.b32.xlu0 %v466_v26, %s8670_s20  ;;  %v316_v28 = vcombine.high %v463_v22, %v467_v27  ;;  %v247_v29 = vcombine.low %v462_v15, %v466_v26  ;;  %v315_v31 = vcombine.low %v463_v22, %v467_v27  ;;  %v968_v5 = vld [vmem:[#allocation2 + $0x42] sm:$0xff]  ;;  %v969_v6 = vld [vmem:[#allocation2 + $0x4a] sm:$0xff] }
  0x95   : > { %v248_v32 = vcombine.high %v462_v15, %v466_v26  ;;  %v7789_v60 = vcombine.high %v7929_v58, %v7933_v56 }
  0x96   : > { %v8765_v38 = vrot.slane %v315_v31, %v8760_v30  ;;  %v8768_v39 = vrot.slane %v316_v28, %v8760_v30  ;;  %v8777_v43 = vrot.slane %v247_v29, %v8760_v30 }
  0x97   : > { %v468_v33 = vld [vmem:[#allocation2 + $0x60] sm:$0xff]  ;;  %v469_v34 = vld [vmem:[#allocation2 + $0x68] sm:$0xff]  ;;  %v8783_v45 = vrot.slane %v248_v32, %v8760_v30  ;;  %v7935_v55 = vld [vmem:[#allocation2 + $0x76] sm:$0xff]  ;;  %v8818_v63 = vrot.slane %v7789_v60, %v8760_v30 }
  0x98   : > { %488 = vrot.lane.b32.xlu1 %v467_v27, %s8670_s20  ;;  %490 = vrot.lane.b32.xlu0 %v468_v33, %s8670_s20  ;;  %v331_v35 = vcombine.low %v465_v25, %v469_v34  ;;  %v332_v36 = vcombine.high %v465_v25, %v469_v34  ;;  %v263_v37 = vcombine.low %v464_v16, %v468_v33  ;;  %v970_v7 = vld [vmem:[#allocation2 + $0x62] sm:$0xff]  ;;  %v971_v8 = vld [vmem:[#allocation2 + $0x6a] sm:$0xff] }
  0x99   : > { %v264_v40 = vcombine.high %v464_v16, %v468_v33  ;;  %v7805_v61 = vcombine.high %v7931_v57, %v7935_v55  ;;  %12326 = vst [vmem:[#allocation6_spill] sm:$0xff] %v8818_v63 }
  0x9a   : > { %v8771_v41 = vrot.slane %v331_v35, %v8760_v30  ;;  %v8774_v42 = vrot.slane %v332_v36, %v8760_v30  ;;  %v8780_v44 = vrot.slane %v263_v37, %v8760_v30 }
  0x9b   : > { %v8786_v46 = vrot.slane %v264_v40, %v8760_v30  ;;  %v8815_v62 = vrot.slane %v7805_v61, %v8760_v30 }
  0x9c   : > { %492 = vrot.lane.b32.xlu1 %v469_v34, %s8670_s20  ;;  %732 = vrot.lane.b32.xlu0 %v462_v15, %s8672_s21  ;;  %v348_v47 = vcombine.high %v8765_v38, %v8771_v41  ;;  %v363_v48 = vcombine.low %v8768_v39, %v8774_v42  ;;  %v280_v49 = vcombine.high %v8777_v43, %v8780_v44 }
  0x9d   : > { %v364_v50 = vcombine.high %v8768_v39, %v8774_v42  ;;  %v295_v51 = vcombine.low %v8783_v45, %v8786_v46  ;;  %v296_v52 = vcombine.high %v8783_v45, %v8786_v46  ;;  %v279_v53 = vcombine.low %v8777_v43, %v8780_v44  ;;  %12325 = vst [vmem:[#allocation5_spill] sm:$0xff] %v8815_v62 }
  0x9e   : > { %v347_v54 = vcombine.low %v8765_v38, %v8771_v41  ;;  %v362_v13 = vrot.slane %v348_v47, %v8843_v12  ;;  %v371_v14 = vrot.slane %v363_v48, %v8843_v12  ;;  %v294_v15 = vrot.slane %v280_v49, %v8843_v12 }
  0x9f   : > { %v303_v17 = vrot.slane %v295_v51, %v8843_v12  ;;  %v8872_v18 = vrot.slane %v279_v53, %v8843_v12  ;;  %v310_v19 = vrot.slane %v296_v52, %v8843_v12 }
  0xa0   : > { %734 = vrot.lane.b32.xlu1 %v463_v22, %s8672_s21  ;;  %736 = vrot.lane.b32.xlu0 %v464_v16, %s8672_s21  ;;  %v378_v16 = vrot.slane %v364_v50, %v8843_v12  ;;  %v8886_v21 = vrot.slane %v347_v54, %v8843_v12  ;;  %v312_v23 = vcombine.high %v294_v15, %v12285_v0 }
  0xa1   : > { %v311_v20 = vcombine.high %v8872_v18, %v12285_v0  ;;  %v380_v24 = vcombine.high %v362_v13, %v12285_v0 }
  0xa2   : > { %v379_v22 = vcombine.high %v8886_v21, %v12285_v0  ;;  %v382_v28 = vcombine.high %v378_v16, %v12285_v0 }
  0xa4   : > { %738 = vrot.lane.b32.xlu1 %v465_v25, %s8672_s21  ;;  %740 = vrot.lane.b32.xlu0 %v466_v26, %s8672_s21  ;;  %v313_v25 = vcombine.high %v303_v17, %v12285_v0  ;;  %v381_v26 = vcombine.high %v371_v14, %v12285_v0 }
  0xa8   : > { %742 = vrot.lane.b32.xlu1 %v467_v27, %s8672_s21  ;;  %744 = vrot.lane.b32.xlu0 %v468_v33, %s8672_s21  ;;  %v314_v27 = vcombine.high %v310_v19, %v12285_v0 }
  0xac   : > { %746 = vrot.lane.b32.xlu1 %v469_v34, %s8672_s21  ;;  %980 = vrot.lane.b32.xlu0 %v964_v59, %s8673_s22 }
  0xb0   : > { %982 = vrot.lane.b32.xlu1 %v965_v1, %s8673_s22  ;;  %984 = vrot.lane.b32.xlu0 %v966_v2, %s8673_s22 }
  0xb4   : > { %986 = vrot.lane.b32.xlu1 %v967_v4, %s8673_s22  ;;  %988 = vrot.lane.b32.xlu0 %v968_v5, %s8673_s22 }
  0xb8   : > { %990 = vrot.lane.b32.xlu1 %v969_v6, %s8673_s22  ;;  %992 = vrot.lane.b32.xlu0 %v970_v7, %s8673_s22 }
  0xbc   : > { %994 = vrot.lane.b32.xlu1 %v971_v8, %s8673_s22  ;;  %1234 = vrot.lane.b32.xlu0 %v964_v59, %s8670_s20 }
  0xc0   : > { %1236 = vrot.lane.b32.xlu1 %v965_v1, %s8670_s20  ;;  %1238 = vrot.lane.b32.xlu0 %v966_v2, %s8670_s20 }
  0xc4   : > { %1240 = vrot.lane.b32.xlu1 %v967_v4, %s8670_s20  ;;  %1242 = vrot.lane.b32.xlu0 %v968_v5, %s8670_s20 }
  0xc8   : > { %1244 = vrot.lane.b32.xlu1 %v969_v6, %s8670_s20  ;;  %1246 = vrot.lane.b32.xlu0 %v970_v7, %s8670_s20 }
  0xcc   : > { %1248 = vrot.lane.b32.xlu1 %v971_v8, %s8670_s20  ;;  %1482 = vrot.lane.b32.xlu0 %v964_v59, %s8674_s23 }
  0xd0   : > { %1484 = vrot.lane.b32.xlu1 %v965_v1, %s8674_s23  ;;  %1486 = vrot.lane.b32.xlu0 %v966_v2, %s8674_s23 }
  0xd4   : > { %1488 = vrot.lane.b32.xlu1 %v967_v4, %s8674_s23  ;;  %1490 = vrot.lane.b32.xlu0 %v968_v5, %s8674_s23 }
  0xd8   : > { %1492 = vrot.lane.b32.xlu1 %v969_v6, %s8674_s23  ;;  %1494 = vrot.lane.b32.xlu0 %v970_v7, %s8674_s23 }
  0xdc   : > { %1496 = vrot.lane.b32.xlu1 %v971_v8, %s8674_s23  ;;  %416 = vrot.lane.b32.xlu0 %v362_v13, %s8676_s24 }
  0xe0   : > { %424 = vrot.lane.b32.xlu0 %v371_v14, %s8677_s25  ;;  %388 = vrot.lane.b32.xlu1 %v294_v15, %s8676_s24 }
  0xe4   : > { %432 = vrot.lane.b32.xlu0 %v378_v16, %s8678_s26  ;;  %396 = vrot.lane.b32.xlu1 %v303_v17, %s8677_s25 }
  0xe8   : > { %404 = vrot.lane.b32.xlu1 %v310_v19, %s8678_s26  ;;  %384 = vrot.lane.b32.xlu0 %v311_v20, %s8679_s27 }
  0xec   : > { %412 = vrot.lane.b32.xlu1 %v379_v22, %s8679_s27  ;;  %392 = vrot.lane.b32.xlu0 %v312_v23, %s8680_s28 }
  0xf0   : > { %420 = vrot.lane.b32.xlu1 %v380_v24, %s8680_s28  ;;  %400 = vrot.lane.b32.xlu0 %v313_v25, %s8681_s29 }
  0xf4   : > { %428 = vrot.lane.b32.xlu1 %v381_v26, %s8681_s29  ;;  %408 = vrot.lane.b32.xlu0 %v314_v27, %s8682_s30 }
  0xf8   : > { %436 = vrot.lane.b32.xlu1 %v382_v28, %s8682_s30 }
  0xfe   : > { %v479_v29 = vpop.permute.xlu0 %478 }
 0x102   : > { %v481_v31 = vpop.permute.xlu1 %480  ;;  %v483_v32 = vpop.permute.xlu0 %482 }
 0x106   : > { %v485_v33 = vpop.permute.xlu1 %484  ;;  %v487_v34 = vpop.permute.xlu0 %486 }
 0x107   : > { %v502_v35 = vcombine.low %v479_v29, %v487_v34  ;;  %v503_v36 = vcombine.high %v479_v29, %v487_v34 }
 0x109   : > { %v8906_v42 = vrot.slane %v502_v35, %v8760_v30  ;;  %v517_v45 = vrot.slane %v503_v36, %v8760_v30 }
 0x10a   : > { %v489_v37 = vpop.permute.xlu1 %488  ;;  %v491_v38 = vpop.permute.xlu0 %490 }
 0x10b   : > { %v518_v39 = vcombine.low %v483_v32, %v491_v38  ;;  %v519_v40 = vcombine.high %v483_v32, %v491_v38  ;;  %v570_v41 = vcombine.low %v481_v31, %v489_v37  ;;  %v571_v46 = vcombine.high %v481_v31, %v489_v37 }
 0x10d   : > { %v8909_v43 = vrot.slane %v518_v39, %v8760_v30  ;;  %v533_v44 = vrot.slane %v519_v40, %v8760_v30  ;;  %v8918_v53 = vrot.slane %v570_v41, %v8760_v30  ;;  %v585_v60 = vrot.slane %v571_v46, %v8760_v30 }
 0x10e   : > { %v493_v47 = vpop.permute.xlu1 %492  ;;  %v733_v48 = vpop.permute.xlu0 %732 }
 0x10f   : > { %v586_v50 = vcombine.low %v485_v33, %v493_v47  ;;  %v587_v51 = vcombine.high %v485_v33, %v493_v47  ;;  %v535_v52 = vcombine.high %v8906_v42, %v8909_v43  ;;  %v550_v57 = vcombine.low %v517_v45, %v533_v44 }
 0x110   : > { %v551_v8 = vcombine.high %v517_v45, %v533_v44 }
 0x111   : > { %v8921_v54 = vrot.slane %v586_v50, %v8760_v30  ;;  %v601_v55 = vrot.slane %v587_v51, %v8760_v30  ;;  %v8925_v56 = vrot.slane %v535_v52, %v8843_v12  ;;  %v8938_v4 = vrot.slane %v550_v57, %v8843_v12 }
 0x112   : > { %v735_v58 = vpop.permute.xlu1 %734  ;;  %v737_v59 = vpop.permute.xlu0 %736  ;;  %v8948_v16 = vrot.slane %v551_v8, %v8843_v12 }
 0x113   : > { %643 = vrot.lane.b32.xlu1 %v8925_v56, %s8676_s24  ;;  %v603_v1 = vcombine.high %v8918_v53, %v8921_v54  ;;  %v618_v5 = vcombine.low %v585_v60, %v601_v55  ;;  %v619_v11 = vcombine.high %v585_v60, %v601_v55 }
 0x115   : > { %v8935_v2 = vrot.slane %v603_v1, %v8843_v12  ;;  %v8945_v10 = vrot.slane %v618_v5, %v8843_v12  ;;  %v8962_v25 = vrot.slane %v619_v11, %v8843_v12 }
 0x116   : > { %v739_v6 = vpop.permute.xlu1 %738  ;;  %v741_v7 = vpop.permute.xlu0 %740 }
 0x117   : > { %671 = vrot.lane.b32.xlu0 %v8935_v2, %s8676_s24  ;;  %651 = vrot.lane.b32.xlu1 %v8938_v4, %s8677_s25  ;;  %v756_v9 = vcombine.low %v733_v48, %v741_v7  ;;  %v757_v13 = vcombine.high %v733_v48, %v741_v7 }
 0x119   : > { %v8955_v22 = vrot.slane %v756_v9, %v8760_v30  ;;  %v771_v26 = vrot.slane %v757_v13, %v8760_v30 }
 0x11a   : > { %v743_v14 = vpop.permute.xlu1 %742  ;;  %v745_v15 = vpop.permute.xlu0 %744 }
 0x11b   : > { %v772_v17 = vcombine.low %v737_v59, %v745_v15  ;;  %v773_v19 = vcombine.high %v737_v59, %v745_v15  ;;  %679 = vrot.lane.b32.xlu0 %v8945_v10, %s8677_s25  ;;  %v824_v20 = vcombine.low %v735_v58, %v743_v14  ;;  %659 = vrot.lane.b32.xlu1 %v8948_v16, %s8678_s26 }
 0x11c   : > { %v825_v27 = vcombine.high %v735_v58, %v743_v14 }
 0x11d   : > { %v8958_v23 = vrot.slane %v772_v17, %v8760_v30  ;;  %v787_v24 = vrot.slane %v773_v19, %v8760_v30  ;;  %v8972_v35 = vrot.slane %v824_v20, %v8760_v30 }
 0x11e   : > { %v747_v28 = vpop.permute.xlu1 %746  ;;  %v981_v29 = vpop.permute.xlu0 %980  ;;  %v839_v44 = vrot.slane %v825_v27, %v8760_v30 }
 0x11f   : > { %v840_v32 = vcombine.low %v739_v6, %v747_v28  ;;  %v841_v33 = vcombine.high %v739_v6, %v747_v28  ;;  %687 = vrot.lane.b32.xlu0 %v8962_v25, %s8678_s26  ;;  %v789_v34 = vcombine.high %v8955_v22, %v8958_v23  ;;  %v804_v39 = vcombine.low %v771_v26, %v787_v24 }
 0x120   : > { %v805_v55 = vcombine.high %v771_v26, %v787_v24 }
 0x121   : > { %v8975_v36 = vrot.slane %v840_v32, %v8760_v30  ;;  %v855_v37 = vrot.slane %v841_v33, %v8760_v30  ;;  %v8979_v38 = vrot.slane %v789_v34, %v8843_v12  ;;  %v8992_v48 = vrot.slane %v804_v39, %v8843_v12 }
 0x122   : > { %v983_v40 = vpop.permute.xlu1 %982  ;;  %v985_v41 = vpop.permute.xlu0 %984  ;;  %v9002_v6 = vrot.slane %v805_v55, %v8843_v12 }
 0x123   : > { %897 = vrot.lane.b32.xlu1 %v8979_v38, %s8676_s24  ;;  %v857_v46 = vcombine.high %v8972_v35, %v8975_v36  ;;  %v872_v50 = vcombine.low %v839_v44, %v855_v37  ;;  %v873_v59 = vcombine.high %v839_v44, %v855_v37 }
 0x125   : > { %v8989_v47 = vrot.slane %v857_v46, %v8843_v12  ;;  %v8999_v58 = vrot.slane %v872_v50, %v8843_v12  ;;  %v9016_v15 = vrot.slane %v873_v59, %v8843_v12 }
 0x126   : > { %v987_v51 = vpop.permute.xlu1 %986  ;;  %v989_v52 = vpop.permute.xlu0 %988 }
 0x127   : > { %925 = vrot.lane.b32.xlu0 %v8989_v47, %s8676_s24  ;;  %905 = vrot.lane.b32.xlu1 %v8992_v48, %s8677_s25  ;;  %v1004_v57 = vcombine.low %v981_v29, %v989_v52  ;;  %v1005_v60 = vcombine.high %v981_v29, %v989_v52 }
 0x129   : > { %v9009_v11 = vrot.slane %v1004_v57, %v8760_v30  ;;  %v1019_v17 = vrot.slane %v1005_v60, %v8760_v30 }
 0x12a   : > { %v991_v1 = vpop.permute.xlu1 %990  ;;  %v993_v5 = vpop.permute.xlu0 %992 }
 0x12b   : > { %v1020_v7 = vcombine.low %v985_v41, %v993_v5  ;;  %v1021_v8 = vcombine.high %v985_v41, %v993_v5  ;;  %933 = vrot.lane.b32.xlu0 %v8999_v58, %s8677_s25  ;;  %v1072_v9 = vcombine.low %v983_v40, %v991_v1  ;;  %913 = vrot.lane.b32.xlu1 %v9002_v6, %s8678_s26 }
 0x12c   : > { %v1073_v19 = vcombine.high %v983_v40, %v991_v1 }
 0x12d   : > { %v9012_v13 = vrot.slane %v1020_v7, %v8760_v30  ;;  %v1035_v14 = vrot.slane %v1021_v8, %v8760_v30  ;;  %v9026_v32 = vrot.slane %v1072_v9, %v8760_v30 }
 0x12e   : > { %v995_v20 = vpop.permute.xlu1 %994  ;;  %v1235_v24 = vpop.permute.xlu0 %1234  ;;  %v1087_v44 = vrot.slane %v1073_v19, %v8760_v30 }
 0x12f   : > { %v1088_v27 = vcombine.low %v987_v51, %v995_v20  ;;  %v1089_v28 = vcombine.high %v987_v51, %v995_v20  ;;  %941 = vrot.lane.b32.xlu0 %v9016_v15, %s8678_s26  ;;  %v1037_v29 = vcombine.high %v9009_v11, %v9012_v13  ;;  %v1052_v39 = vcombine.low %v1019_v17, %v1035_v14 }
 0x130   : > { %v1053_v60 = vcombine.high %v1019_v17, %v1035_v14 }
 0x131   : > { %v9029_v33 = vrot.slane %v1088_v27, %v8760_v30  ;;  %v1103_v34 = vrot.slane %v1089_v28, %v8760_v30  ;;  %v9033_v37 = vrot.slane %v1037_v29, %v8843_v12  ;;  %v9046_v52 = vrot.slane %v1052_v39, %v8843_v12 }
 0x132   : > { %v1237_v40 = vpop.permute.xlu1 %1236  ;;  %v1239_v41 = vpop.permute.xlu0 %1238  ;;  %v9056_v20 = vrot.slane %v1053_v60, %v8843_v12 }
 0x133   : > { %1145 = vrot.lane.b32.xlu1 %v9033_v37, %s8676_s24  ;;  %v1105_v50 = vcombine.high %v9026_v32, %v9029_v33  ;;  %v1120_v55 = vcombine.low %v1087_v44, %v1103_v34  ;;  %v1121_v7 = vcombine.high %v1087_v44, %v1103_v34 }
 0x135   : > { %v9043_v51 = vrot.slane %v1105_v50, %v8843_v12  ;;  %v9053_v5 = vrot.slane %v1120_v55, %v8843_v12  ;;  %v9070_v34 = vrot.slane %v1121_v7, %v8843_v12 }
 0x136   : > { %v1241_v57 = vpop.permute.xlu1 %1240  ;;  %v1243_v59 = vpop.permute.xlu0 %1242 }
 0x137   : > { %1173 = vrot.lane.b32.xlu0 %v9043_v51, %s8676_s24  ;;  %1153 = vrot.lane.b32.xlu1 %v9046_v52, %s8677_s25  ;;  %v1258_v1 = vcombine.low %v1235_v24, %v1243_v59  ;;  %v1259_v8 = vcombine.high %v1235_v24, %v1243_v59 }
 0x139   : > { %v9063_v17 = vrot.slane %v1258_v1, %v8760_v30  ;;  %v1273_v39 = vrot.slane %v1259_v8, %v8760_v30 }
 0x13a   : > { %v1245_v9 = vpop.permute.xlu1 %1244  ;;  %v1247_v19 = vpop.permute.xlu0 %1246 }
 0x13b   : > { %v1274_v27 = vcombine.low %v1239_v41, %v1247_v19  ;;  %v1275_v28 = vcombine.high %v1239_v41, %v1247_v19  ;;  %1181 = vrot.lane.b32.xlu0 %v9053_v5, %s8677_s25  ;;  %v1326_v14 = vcombine.low %v1237_v40, %v1245_v9  ;;  %1161 = vrot.lane.b32.xlu1 %v9056_v20, %s8678_s26 }
 0x13c   : > { %v1327_v41 = vcombine.high %v1237_v40, %v1245_v9 }
 0x13d   : > { %v9066_v29 = vrot.slane %v1274_v27, %v8760_v30  ;;  %v1289_v24 = vrot.slane %v1275_v28, %v8760_v30  ;;  %v9080_v19 = vrot.slane %v1326_v14, %v8760_v30 }
 0x13e   : > { %v1249_v44 = vpop.permute.xlu1 %1248  ;;  %v1483_v50 = vpop.permute.xlu0 %1482  ;;  %v1341_v28 = vrot.slane %v1327_v41, %v8760_v30 }
 0x13f   : > { %v1342_v59 = vcombine.low %v1241_v57, %v1249_v44  ;;  %v1343_v60 = vcombine.high %v1241_v57, %v1249_v44  ;;  %1189 = vrot.lane.b32.xlu0 %v9070_v34, %s8678_s26  ;;  %v1291_v1 = vcombine.high %v9063_v17, %v9066_v29  ;;  %v1306_v9 = vcombine.low %v1273_v39, %v1289_v24 }
 0x140   : > { %v1307_v41 = vcombine.high %v1273_v39, %v1289_v24 }
 0x141   : > { %v9083_v7 = vrot.slane %v1342_v59, %v8760_v30  ;;  %v1357_v40 = vrot.slane %v1343_v60, %v8760_v30  ;;  %v9087_v8 = vrot.slane %v1291_v1, %v8843_v12  ;;  %v9102_v60 = vrot.slane %v1306_v9, %v8843_v12 }
 0x142   : > { %v9089_v27 = vpop.permute.xlu1 %1484  ;;  %v1487_v57 = vpop.permute.xlu0 %1486  ;;  %v9116_v45 = vrot.slane %v1307_v41, %v8843_v12 }
 0x143   : > { %12327 = vst [vmem:[#allocation7_spill] sm:$0xff] %v9089_v27  ;;  %1399 = vrot.lane.b32.xlu1 %v9087_v8, %s8676_s24  ;;  %v1359_v14 = vcombine.high %v9080_v19, %v9083_v7  ;;  %v1374_v1 = vcombine.low %v1341_v28, %v1357_v40  ;;  %v1375_v44 = vcombine.high %v1341_v28, %v1357_v40 }
 0x145   : > { %v9099_v59 = vrot.slane %v1359_v14, %v8843_v12  ;;  %v9111_v26 = vrot.slane %v1374_v1, %v8843_v12  ;;  %v9123_v39 = vrot.slane %v1375_v44, %v8843_v12 }
 0x146   : > { %v9104_v3 = vpop.permute.xlu1 %1488  ;;  %v1491_v55 = vpop.permute.xlu0 %1490 }
 0x147   : > { %1427 = vrot.lane.b32.xlu0 %v9099_v59, %s8676_s24  ;;  %1407 = vrot.lane.b32.xlu1 %v9102_v60, %s8677_s25  ;;  %v1506_v46 = vcombine.low %v1483_v50, %v1491_v55  ;;  %v1507_v31 = vcombine.high %v1483_v50, %v1491_v55  ;;  %12328 = vst [vmem:[#allocation8_spill] sm:$0xff] %v9123_v39 }
 0x149   : > { %v9126_v40 = vrot.slane %v1506_v46, %v8760_v30  ;;  %v1521_v41 = vrot.slane %v1507_v31, %v8760_v30 }
 0x14a   : > { %v9113_v14 = vpop.permute.xlu1 %1492  ;;  %v1495_v9 = vpop.permute.xlu0 %1494 }
 0x14b   : > { %v1522_v0 = vcombine.low %v1487_v57, %v1495_v9  ;;  %v1523_v24 = vcombine.high %v1487_v57, %v1495_v9  ;;  %1435 = vrot.lane.b32.xlu0 %v9111_v26, %s8677_s25  ;;  %1415 = vrot.lane.b32.xlu1 %v9116_v45, %s8678_s26  ;;  %v1574_v28 = vcombine.low %v9089_v27, %v9113_v14 }
 0x14c   : > { %v12330_v27 = vcombine.low %v8906_v42, %v8909_v43  ;;  %v12334_v43 = vmov 0.0  }
 0x14d   : > { %v9131_v1 = vrot.slane %v1522_v0, %v8760_v30  ;;  %v1537_v50 = vrot.slane %v1523_v24, %v8760_v30  ;;  %v9146_v9 = vrot.slane %v1574_v28, %v8760_v30 }
 0x14e   : > { %v9134_v55 = vpop.permute.xlu1 %1496  ;;  %v417_v57 = vpop.permute.xlu0 %416  ;;  %v9170_v63 = vrot.slane %v12330_v27, %v8843_v12 }
 0x14f   : > { %v1590_v46 = vcombine.low %v9104_v3, %v9134_v55  ;;  %1443 = vrot.lane.b32.xlu0 %v9123_v39, %s8678_s26  ;;  %v1539_v0 = vcombine.high %v9126_v40, %v9131_v1  ;;  %v1554_v61 = vcombine.low %v1521_v41, %v1537_v50 }
 0x150   : > { %12331 = vst [vmem:[#allocation10_spill] sm:$0xff] %v9170_v63  ;;  %v566_v27 = vcombine.high %v9170_v63, %v12334_v43  ;;  %v567_v63 = vcombine.high %v8925_v56, %v12334_v43 }
 0x151   : > { %v9149_v24 = vrot.slane %v1590_v46, %v8760_v30  ;;  %v9152_v31 = vrot.slane %v1539_v0, %v8843_v12  ;;  %v9161_v28 = vrot.slane %v1554_v61, %v8843_v12  ;;  %v1555_v46 = vcombine.high %v1521_v41, %v1537_v50 }
 0x152   : > { %v389_v44 = vpop.permute.xlu1 %388  ;;  %v425_v49 = vpop.permute.xlu0 %424 }
 0x153   : > { %1647 = vrot.lane.b32.xlu1 %v9152_v31, %s8676_s24  ;;  %v1607_v62 = vcombine.high %v9146_v9, %v9149_v24  ;;  %12329 = vst [vmem:[#allocation9_spill] sm:$0xff] %v9161_v28  ;;  %v9177_v61 = vrot.slane %v1555_v46, %v8843_v12 }
 0x155   : > { %v9164_v0 = vrot.slane %v1607_v62, %v8843_v12  ;;  %v12332_v62 = vcombine.low %v8918_v53, %v8921_v54 }
 0x156   : > { %v397_v39 = vpop.permute.xlu1 %396  ;;  %v433_v30 = vpop.permute.xlu0 %432 }
 0x157   : > { %1655 = vrot.lane.b32.xlu1 %v9161_v28, %s8677_s25  ;;  %1675 = vrot.lane.b32.xlu0 %v9164_v0, %s8676_s24  ;;  %v9183_v50 = vrot.slane %v12332_v62, %v8843_v12 }
 0x159   : > { %12333 = vst [vmem:[#allocation11_spill] sm:$0xff] %v9183_v50  ;;  %v634_v53 = vcombine.high %v9183_v50, %v12334_v43 }
 0x15a   : > { %v405_v41 = vpop.permute.xlu1 %404  ;;  %v385_v42 = vpop.permute.xlu0 %384 }
 0x15b   : > { %v440_v28 = vsel %vm439_vm3, %v8872_v18, %v385_v42  ;;  %1663 = vrot.lane.b32.xlu1 %v9177_v61, %s8678_s26  ;;  %639 = vrot.lane.b32.xlu0 %v566_v27, %s8679_s27  ;;  %v635_v27 = vcombine.high %v8935_v2, %v12334_v43 }
 0x15c   : > { %v442_v46 = vsel %vm441_vm4, %v440_v28, %v389_v44 }
 0x15e   : > { %v413_v54 = vpop.permute.xlu1 %412  ;;  %v393_v62 = vpop.permute.xlu0 %392 }
 0x15f   : > { %v453_v18 = vsel %vm439_vm3, %v8886_v21, %v413_v54  ;;  %v444_v42 = vsel %vm443_vm5, %v442_v46, %v393_v62  ;;  %667 = vrot.lane.b32.xlu1 %v634_v53, %s8679_s27  ;;  %647 = vrot.lane.b32.xlu0 %v567_v63, %s8680_s28  ;;  %v568_v21 = vcombine.high %v8938_v4, %v12334_v43 }
 0x160   : > { %v454_v44 = vsel %vm441_vm4, %v453_v18, %v417_v57  ;;  %v446_v28 = vsel %vm445_vm6, %v444_v42, %v397_v39  ;;  %v636_v63 = vcombine.high %v8945_v10, %v12334_v43  ;;  %v569_v4 = vcombine.high %v8948_v16, %v12334_v43 }
 0x161   : > { %v12336_v10 = vcombine.low %v8972_v35, %v8975_v36  ;;  %v821_v35 = vcombine.high %v8979_v38, %v12334_v43  ;;  %v822_v36 = vcombine.high %v8992_v48, %v12334_v43  ;;  %v823_v38 = vcombine.high %v9002_v6, %v12334_v43 }
 0x162   : > { %v421_v50 = vpop.permute.xlu1 %420  ;;  %v401_v56 = vpop.permute.xlu0 %400  ;;  %v12338_v48 = vcombine.low %v9026_v32, %v9029_v33  ;;  %v1070_v32 = vcombine.high %v9046_v52, %v12334_v43  ;;  %v1138_v33 = vcombine.high %v9053_v5, %v12334_v43  ;;  %v1139_v52 = vcombine.high %v9070_v34, %v12334_v43 }
 0x163   : > { %v455_v54 = vsel %vm443_vm5, %v454_v44, %v421_v50  ;;  %v448_v53 = vsel %vm447_vm7, %v446_v28, %v401_v56  ;;  %675 = vrot.lane.b32.xlu1 %v635_v27, %s8680_s28  ;;  %655 = vrot.lane.b32.xlu0 %v568_v21, %s8681_s29  ;;  %v12335_v50 = vcombine.low %v8955_v22, %v8958_v23 }
 0x164   : > { %v456_v39 = vsel %vm445_vm6, %v455_v54, %v425_v49  ;;  %v450_v57 = vsel %vm449_vm8, %v448_v53, %v405_v41  ;;  %v637_v49 = vcombine.high %v8962_v25, %v12334_v43  ;;  %v9234_v16 = vrot.slane %v12336_v10, %v8843_v12 }
 0x165   : > { %v9222_v62 = vrot.slane %v12335_v50, %v8843_v12  ;;  %v890_v44 = vcombine.high %v8999_v58, %v12334_v43  ;;  %v12337_v28 = vcombine.low %v9009_v11, %v9012_v13  ;;  %v9272_v58 = vrot.slane %v12338_v48, %v8843_v12 }
 0x166   : > { %v429_v2 = vpop.permute.xlu1 %428  ;;  %v409_v46 = vpop.permute.xlu0 %408  ;;  %v888_v25 = vcombine.high %v9234_v16, %v12334_v43  ;;  %v1069_v13 = vcombine.high %v9033_v37, %v12334_v43  ;;  %v1071_v37 = vcombine.high %v9056_v20, %v12334_v43  ;;  %v12339_v54 = vcombine.low %v9063_v17, %v9066_v29 }
 0x167   : > { %v457_v18 = vsel %vm447_vm7, %v456_v39, %v429_v2  ;;  %v452_v42 = vsel %vm451_vm9, %v450_v57, %v409_v46  ;;  %683 = vrot.lane.b32.xlu1 %v636_v63, %s8681_s29  ;;  %663 = vrot.lane.b32.xlu0 %v569_v4, %s8682_s30  ;;  %v820_v41 = vcombine.high %v9222_v62, %v12334_v43 }
 0x168   : > { %460 = vst [vmem:[#allocation3 + $0xb0] sm:$0xf] %v452_v42  ;;  %v458_v23 = vsel %vm449_vm8, %v457_v18, %v433_v30  ;;  %v889_v30 = vcombine.high %v8989_v47, %v12334_v43  ;;  %v9262_v56 = vrot.slane %v12337_v28, %v8843_v12  ;;  %v891_v47 = vcombine.high %v9016_v15, %v12334_v43  ;;  %v12342_v18 = vld [vmem:[#allocation7_spill] sm:$0xff] }
 0x169   : > { %v1136_v11 = vcombine.high %v9272_v58, %v12334_v43  ;;  %v1137_v15 = vcombine.high %v9043_v51, %v12334_v43  ;;  %v9300_v51 = vrot.slane %v12339_v54, %v8843_v12  ;;  %v12340_v5 = vcombine.low %v9080_v19, %v9083_v7 }
 0x16a   : > { %v437_v22 = vpop.permute.xlu1 %436  ;;  %v1068_v6 = vcombine.high %v9262_v56, %v12334_v43  ;;  %v1323_v63 = vcombine.high %v9087_v8, %v12334_v43  ;;  %v1391_v7 = vcombine.high %v9099_v59, %v12334_v43  ;;  %v1324_v39 = vcombine.high %v9102_v60, %v12334_v43 }
 0x16b   : > { %v459_v27 = vsel %vm451_vm9, %v458_v23, %v437_v22  ;;  %691 = vrot.lane.b32.xlu1 %v637_v49, %s8682_s30  ;;  %893 = vrot.lane.b32.xlu0 %v820_v41, %s8679_s27  ;;  %v9310_v53 = vrot.slane %v12340_v5, %v8843_v12  ;;  %v1322_v17 = vcombine.high %v9300_v51, %v12334_v43  ;;  %v9433_v5 = vld [vmem:[#allocation2 + $0x24] sm:$0xff] }
 0x16c   : > { %461 = vst [vmem:[#allocation3 + $0xd0] sm:$0xf] %v459_v27  ;;  %v1392_v8 = vcombine.high %v9111_v26, %v12334_v43  ;;  %v1591_v57 = vcombine.high %v9104_v3, %v9134_v55  ;;  %v1325_v59 = vcombine.high %v9116_v45, %v12334_v43  ;;  %v12341_v60 = vcombine.low %v9126_v40, %v9131_v1  ;;  %v12343_v3 = vld [vmem:[#allocation4_spill] sm:$0xff] }
 0x16d   : > { %v1390_v34 = vcombine.high %v9310_v53, %v12334_v43  ;;  %v1575_v42 = vcombine.high %v12342_v18, %v9113_v14  ;;  %v12344_v55 = vld [vmem:[#allocation8_spill] sm:$0xff]  ;;  %v12345_v49 = vcombine.low %v9146_v9, %v9149_v24  ;;  %v1571_v9 = vcombine.high %v9152_v31, %v12334_v43 }
 0x16e   : > { %v9350_v50 = vrot.slane %v12341_v60, %v8843_v12  ;;  %v1605_v26 = vrot.slane %v1591_v57, %v12343_v3  ;;  %v1393_v45 = vcombine.high %v12344_v55, %v12334_v43 }
 0x16f   : > { %921 = vrot.lane.b32.xlu1 %v888_v25, %s8679_s27  ;;  %901 = vrot.lane.b32.xlu0 %v821_v35, %s8680_s28  ;;  %v9363_v10 = vrot.slane %v12345_v49, %v8843_v12  ;;  %v1589_v1 = vrot.slane %v1575_v42, %v12343_v3  ;;  %v1639_v25 = vcombine.high %v9164_v0, %v12334_v43 }
 0x170   : > { %v1570_v14 = vcombine.high %v9350_v50, %v12334_v43  ;;  %v1573_v0 = vcombine.high %v9177_v61, %v12334_v43 }
 0x171   : > { %v1622_v23 = vcombine.low %v1589_v1, %v1605_v26  ;;  %v1638_v41 = vcombine.high %v9363_v10, %v12334_v43  ;;  %v1623_v27 = vcombine.high %v1589_v1, %v1605_v26  ;;  %v12348_v1 = vld [vmem:[#allocation11_spill] sm:$0xff] }
 0x173   : > { %929 = vrot.lane.b32.xlu1 %v889_v30, %s8680_s28  ;;  %909 = vrot.lane.b32.xlu0 %v822_v36, %s8681_s29  ;;  %v1630_v30 = vrot.slane %v1622_v23, %v8843_v12  ;;  %v12346_v36 = vld [vmem:[#allocation9_spill] sm:$0xff]  ;;  %v1637_v28 = vrot.slane %v1623_v27, %v8843_v12 }
 0x175   : > { %v1641_v48 = vcombine.high %v1637_v28, %v12334_v43 }
 0x177   : > { %937 = vrot.lane.b32.xlu1 %v890_v44, %s8681_s29  ;;  %917 = vrot.lane.b32.xlu0 %v823_v38, %s8682_s30  ;;  %v1572_v44 = vcombine.high %v12346_v36, %v12334_v43  ;;  %v1640_v38 = vcombine.high %v1630_v30, %v12334_v43 }
 0x17b   : > { %945 = vrot.lane.b32.xlu1 %v891_v47, %s8682_s30  ;;  %1141 = vrot.lane.b32.xlu0 %v1068_v6, %s8679_s27 }
 0x17f   : > { %1169 = vrot.lane.b32.xlu1 %v1136_v11, %s8679_s27  ;;  %1149 = vrot.lane.b32.xlu0 %v1069_v13, %s8680_s28  ;;  %v9408_v13 = vld [vmem:[#allocation2 + $0xc] sm:$0xff] }
 0x183   : > { %1177 = vrot.lane.b32.xlu1 %v1137_v15, %s8680_s28  ;;  %1157 = vrot.lane.b32.xlu0 %v1070_v32, %s8681_s29  ;;  %v9417_v32 = vld [vmem:[#allocation2 + $0x2c] sm:$0xff] }
 0x185   : > { %v9292_v21 = vpop.permute.xlu1 %643 }
 0x187   : > { %1185 = vrot.lane.b32.xlu1 %v1138_v33, %s8681_s29  ;;  %1165 = vrot.lane.b32.xlu0 %v1071_v37, %s8682_s30  ;;  %v9421_v33 = vld [vmem:[#allocation2 + $0x4] sm:$0xff] }
 0x189   : > { %v9312_v20 = vpop.permute.xlu0 %671  ;;  %v9316_v29 = vpop.permute.xlu1 %651 }
 0x18b   : > { %1193 = vrot.lane.b32.xlu1 %v1139_v52, %s8682_s30  ;;  %1395 = vrot.lane.b32.xlu0 %v1322_v17, %s8679_s27  ;;  %v9429_v52 = vld [vmem:[#allocation2 + $0x4c] sm:$0xff] }
 0x18d   : > { %v9325_v19 = vpop.permute.xlu0 %679  ;;  %v9330_v2 = vpop.permute.xlu1 %659 }
 0x18f   : > { %1423 = vrot.lane.b32.xlu1 %v1390_v34, %s8679_s27  ;;  %1403 = vrot.lane.b32.xlu0 %v1323_v63, %s8680_s28  ;;  %v9439_v34 = vld [vmem:[#allocation2 + $0x6c] sm:$0xff] }
 0x191   : > { %v9344_v4 = vpop.permute.xlu0 %687 }
 0x193   : > { %1431 = vrot.lane.b32.xlu1 %v1391_v7, %s8680_s28  ;;  %1411 = vrot.lane.b32.xlu0 %v1324_v39, %s8681_s29  ;;  %v9445_v7 = vld [vmem:[#allocation2 + $0x44] sm:$0xff] }
 0x194   : > { %v9449_v39 = vld [vmem:[#allocation2 + $0x64] sm:$0xff] }
 0x195   : > { %v9340_v46 = vpop.permute.xlu1 %897 }
 0x197   : > { %1439 = vrot.lane.b32.xlu1 %v1392_v8, %s8681_s29  ;;  %1419 = vrot.lane.b32.xlu0 %v1325_v59, %s8682_s30 }
 0x199   : > { %v9365_v40 = vpop.permute.xlu0 %925  ;;  %v9370_v22 = vpop.permute.xlu1 %905 }
 0x19b   : > { %1447 = vrot.lane.b32.xlu1 %v1393_v45, %s8682_s30  ;;  %1643 = vrot.lane.b32.xlu0 %v1570_v14, %s8679_s27  ;;  %v12347_v45 = vld [vmem:[#allocation10_spill] sm:$0xff] }
 0x19d   : > { %v9379_v24 = vpop.permute.xlu0 %933  ;;  %v9384_v35 = vpop.permute.xlu1 %913 }
 0x19f   : > { %1671 = vrot.lane.b32.xlu1 %v1638_v41, %s8679_s27  ;;  %1651 = vrot.lane.b32.xlu0 %v1571_v9, %s8680_s28 }
 0x1a1   : > { %v9397_v47 = vpop.permute.xlu0 %941 }
 0x1a3   : > { %1679 = vrot.lane.b32.xlu1 %v1639_v25, %s8680_s28  ;;  %1659 = vrot.lane.b32.xlu0 %v1572_v44, %s8681_s29 }
 0x1a5   : > { %v9391_v31 = vpop.permute.xlu1 %1145 }
 0x1a7   : > { %1687 = vrot.lane.b32.xlu1 %v1640_v38, %s8681_s29  ;;  %1667 = vrot.lane.b32.xlu0 %v1573_v0, %s8682_s30 }
 0x1a9   : > { %v9402_v6 = vpop.permute.xlu0 %1173  ;;  %v9404_v11 = vpop.permute.xlu1 %1153 }
 0x1ab   : > { %1695 = vrot.lane.b32.xlu1 %v1641_v48, %s8682_s30  ;;  %1683 = vrot.lane.b32.xlu0 %v1630_v30, %s8677_s25 }
 0x1ad   : > { %v9412_v61 = vpop.permute.xlu0 %1181  ;;  %v9415_v15 = vpop.permute.xlu1 %1161 }
 0x1af   : > { %1738 = vrot.lane.b32.xlu1 %v9408_v13, %s8683_s4  ;;  %1691 = vrot.lane.b32.xlu0 %v1637_v28, %s8678_s26 }
 0x1b1   : > { %v9427_v54 = vpop.permute.xlu0 %1189 }
 0x1b3   : > { %1742 = vrot.lane.b32.xlu1 %v9417_v32, %s8683_s4  ;;  %1736 = vrot.lane.b32.xlu0 %v9421_v33, %s8683_s4 }
 0x1b5   : > { %v9425_v37 = vpop.permute.xlu1 %1399 }
 0x1b7   : > { %1746 = vrot.lane.b32.xlu1 %v9429_v52, %s8683_s4  ;;  %1740 = vrot.lane.b32.xlu0 %v9433_v5, %s8683_s4 }
 0x1b9   : > { %v9437_v17 = vpop.permute.xlu0 %1427  ;;  %v9441_v63 = vpop.permute.xlu1 %1407 }
 0x1bb   : > { %1750 = vrot.lane.b32.xlu1 %v9439_v34, %s8683_s4  ;;  %1744 = vrot.lane.b32.xlu0 %v9445_v7, %s8683_s4 }
 0x1bd   : > { %v9451_v8 = vpop.permute.xlu0 %1435  ;;  %v9455_v57 = vpop.permute.xlu1 %1415 }
 0x1bf   : > { %1748 = vrot.lane.b32.xlu0 %v9449_v39, %s8683_s4 }
 0x1c1   : > { %v9459_v60 = vpop.permute.xlu0 %1443 }
 0x1c5   : > { %v9457_v59 = vpop.permute.xlu1 %1647 }
 0x1c9   : > { %v9461_v18 = vpop.permute.xlu1 %1655  ;;  %v9463_v42 = vpop.permute.xlu0 %1675 }
 0x1cd   : > { %v9465_v26 = vpop.permute.xlu1 %1663  ;;  %v640_v55 = vpop.permute.xlu0 %639 }
 0x1ce   : > { %v694_v49 = vsel %vm439_vm3, %v12347_v45, %v640_v55 }
 0x1cf   : > { %v695_v41 = vsel %vm441_vm4, %v694_v49, %v9292_v21 }
 0x1d1   : > { %v668_v14 = vpop.permute.xlu1 %667  ;;  %v648_v9 = vpop.permute.xlu0 %647 }
 0x1d2   : > { %v701_v23 = vsel %vm439_vm3, %v12348_v1, %v668_v14  ;;  %v696_v27 = vsel %vm443_vm5, %v695_v41, %v648_v9 }
 0x1d3   : > { %v702_v30 = vsel %vm441_vm4, %v701_v23, %v9312_v20  ;;  %v697_v44 = vsel %vm445_vm6, %v696_v27, %v9316_v29 }
 0x1d5   : > { %v676_v25 = vpop.permute.xlu1 %675  ;;  %v656_v38 = vpop.permute.xlu0 %655 }
 0x1d6   : > { %v703_v36 = vsel %vm443_vm5, %v702_v30, %v676_v25  ;;  %v698_v28 = vsel %vm447_vm7, %v697_v44, %v656_v38 }
 0x1d7   : > { %v704_v48 = vsel %vm445_vm6, %v703_v36, %v9325_v19  ;;  %v699_v55 = vsel %vm449_vm8, %v698_v28, %v9330_v2 }
 0x1d9   : > { %v684_v0 = vpop.permute.xlu1 %683  ;;  %v664_v45 = vpop.permute.xlu0 %663 }
 0x1da   : > { %v705_v21 = vsel %vm447_vm7, %v704_v48, %v684_v0  ;;  %v700_v20 = vsel %vm451_vm9, %v699_v55, %v664_v45 }
 0x1db   : > { %v710_v49 = vrot.slane %v700_v20, 4  ;;  %v706_v29 = vsel %vm449_vm8, %v705_v21, %v9344_v4 }
 0x1dd   : > { %v692_v14 = vpop.permute.xlu1 %691  ;;  %714 = vst [vmem:[#allocation3 + $0xb0] sm:$0xf0] %v710_v49  ;;  %v894_v23 = vpop.permute.xlu0 %893 }
 0x1de   : > { %v707_v1 = vsel %vm451_vm9, %v706_v29, %v692_v14  ;;  %v948_v19 = vsel %vm439_vm3, %v9222_v62, %v894_v23 }
 0x1df   : > { %v711_v41 = vrot.slane %v707_v1, 4  ;;  %v949_v27 = vsel %vm441_vm4, %v948_v19, %v9340_v46 }
 0x1e1   : > { %715 = vst [vmem:[#allocation3 + $0xd0] sm:$0xf0] %v711_v41  ;;  %v922_v9 = vpop.permute.xlu1 %921  ;;  %v902_v25 = vpop.permute.xlu0 %901 }
 0x1e2   : > { %v955_v2 = vsel %vm439_vm3, %v9234_v16, %v922_v9  ;;  %v950_v30 = vsel %vm443_vm5, %v949_v27, %v902_v25 }
 0x1e3   : > { %v956_v36 = vsel %vm441_vm4, %v955_v2, %v9365_v40  ;;  %v951_v62 = vsel %vm445_vm6, %v950_v30, %v9370_v22 }
 0x1e5   : > { %v930_v4 = vpop.permute.xlu1 %929  ;;  %v910_v38 = vpop.permute.xlu0 %909 }
 0x1e6   : > { %v957_v44 = vsel %vm443_vm5, %v956_v36, %v930_v4  ;;  %v952_v28 = vsel %vm447_vm7, %v951_v62, %v910_v38 }
 0x1e7   : > { %v958_v16 = vsel %vm445_vm6, %v957_v44, %v9379_v24  ;;  %v953_v48 = vsel %vm449_vm8, %v952_v28, %v9384_v35 }
 0x1e9   : > { %v938_v0 = vpop.permute.xlu1 %937  ;;  %v918_v21 = vpop.permute.xlu0 %917 }
 0x1ea   : > { %v959_v46 = vsel %vm447_vm7, %v958_v16, %v938_v0  ;;  %v954_v40 = vsel %vm451_vm9, %v953_v48, %v918_v21 }
 0x1eb   : > { %962 = vst [vmem:[#allocation3 + $0x10] sm:$0xf] %v954_v40  ;;  %v960_v22 = vsel %vm449_vm8, %v959_v46, %v9397_v47 }
 0x1ed   : > { %v946_v55 = vpop.permute.xlu1 %945  ;;  %v1142_v20 = vpop.permute.xlu0 %1141 }
 0x1ee   : > { %v961_v45 = vsel %vm451_vm9, %v960_v22, %v946_v55  ;;  %v1196_v24 = vsel %vm439_vm3, %v9262_v56, %v1142_v20 }
 0x1ef   : > { %963 = vst [vmem:[#allocation3 + $0x48] sm:$0xf] %v961_v45  ;;  %v1197_v35 = vsel %vm441_vm4, %v1196_v24, %v9391_v31 }
 0x1f1   : > { %v1170_v49 = vpop.permute.xlu1 %1169  ;;  %v1150_v29 = vpop.permute.xlu0 %1149 }
 0x1f2   : > { %v1203_v14 = vsel %vm439_vm3, %v9272_v58, %v1170_v49  ;;  %v1198_v1 = vsel %vm443_vm5, %v1197_v35, %v1150_v29 }
 0x1f3   : > { %v1204_v47 = vsel %vm441_vm4, %v1203_v14, %v9402_v6  ;;  %v1199_v19 = vsel %vm445_vm6, %v1198_v1, %v9404_v11 }
 0x1f5   : > { %v1178_v23 = vpop.permute.xlu1 %1177  ;;  %v1158_v56 = vpop.permute.xlu0 %1157 }
 0x1f6   : > { %v1205_v41 = vsel %vm443_vm5, %v1204_v47, %v1178_v23  ;;  %v1200_v9 = vsel %vm447_vm7, %v1199_v19, %v1158_v56 }
 0x1f7   : > { %v1206_v58 = vsel %vm445_vm6, %v1205_v41, %v9412_v61  ;;  %v1201_v27 = vsel %vm449_vm8, %v1200_v9, %v9415_v15 }
 0x1f9   : > { %v1186_v2 = vpop.permute.xlu1 %1185  ;;  %v1166_v25 = vpop.permute.xlu0 %1165 }
 0x1fa   : > { %v1207_v31 = vsel %vm447_vm7, %v1206_v58, %v1186_v2  ;;  %v1202_v6 = vsel %vm451_vm9, %v1201_v27, %v1166_v25 }
 0x1fb   : > { %v1212_v30 = vrot.slane %v1202_v6, 4  ;;  %v1208_v11 = vsel %vm449_vm8, %v1207_v31, %v9427_v54 }
 0x1fd   : > { %v1194_v4 = vpop.permute.xlu1 %1193  ;;  %1216 = vst [vmem:[#allocation3 + $0x10] sm:$0xf0] %v1212_v30  ;;  %v1396_v44 = vpop.permute.xlu0 %1395 }
 0x1fe   : > { %v1209_v36 = vsel %vm451_vm9, %v1208_v11, %v1194_v4  ;;  %v1450_v61 = vsel %vm439_vm3, %v9300_v51, %v1396_v44 }
 0x1ff   : > { %v1213_v62 = vrot.slane %v1209_v36, 4  ;;  %v1451_v28 = vsel %vm441_vm4, %v1450_v61, %v9425_v37 }
 0x201   : > { %1217 = vst [vmem:[#allocation3 + $0x48] sm:$0xf0] %v1213_v62  ;;  %v1424_v38 = vpop.permute.xlu1 %1423  ;;  %v1404_v0 = vpop.permute.xlu0 %1403 }
 0x202   : > { %v1457_v15 = vsel %vm439_vm3, %v9310_v53, %v1424_v38  ;;  %v1452_v16 = vsel %vm443_vm5, %v1451_v28, %v1404_v0 }
 0x203   : > { %v1458_v46 = vsel %vm441_vm4, %v1457_v15, %v9437_v17  ;;  %v1453_v51 = vsel %vm445_vm6, %v1452_v16, %v9441_v63 }
 0x205   : > { %v1432_v54 = vpop.permute.xlu1 %1431  ;;  %v1412_v21 = vpop.permute.xlu0 %1411 }
 0x206   : > { %v1459_v48 = vsel %vm443_vm5, %v1458_v46, %v1432_v54  ;;  %v1454_v40 = vsel %vm447_vm7, %v1453_v51, %v1412_v21 }
 0x207   : > { %v1460_v53 = vsel %vm445_vm6, %v1459_v48, %v9451_v8  ;;  %v1455_v22 = vsel %vm449_vm8, %v1454_v40, %v9455_v57 }
 0x209   : > { %v1440_v55 = vpop.permute.xlu1 %1439  ;;  %v1420_v45 = vpop.permute.xlu0 %1419 }
 0x20a   : > { %v1461_v37 = vsel %vm447_vm7, %v1460_v53, %v1440_v55  ;;  %v1456_v17 = vsel %vm451_vm9, %v1455_v22, %v1420_v45 }
 0x20b   : > { %1464 = vst [vmem:[#allocation3 + $0x108] sm:$0xf] %v1456_v17  ;;  %v1462_v63 = vsel %vm449_vm8, %v1461_v37, %v9459_v60 }
 0x20d   : > { %v1448_v20 = vpop.permute.xlu1 %1447  ;;  %v1644_v49 = vpop.permute.xlu0 %1643 }
 0x20e   : > { %v1463_v24 = vsel %vm451_vm9, %v1462_v63, %v1448_v20  ;;  %v1698_v8 = vsel %vm439_vm3, %v9350_v50, %v1644_v49 }
 0x20f   : > { %1465 = vst [vmem:[#allocation3 + $0x68] sm:$0xf] %v1463_v24  ;;  %v1699_v35 = vsel %vm441_vm4, %v1698_v8, %v9457_v59 }
 0x211   : > { %v1672_v14 = vpop.permute.xlu1 %1671  ;;  %v1652_v57 = vpop.permute.xlu0 %1651 }
 0x212   : > { %v1700_v29 = vsel %vm443_vm5, %v1699_v35, %v1652_v57  ;;  %v1705_v19 = vsel %vm439_vm3, %v9363_v10, %v1672_v14 }
 0x213   : > { %v1701_v23 = vsel %vm445_vm6, %v1700_v29, %v9461_v18  ;;  %v1706_v2 = vsel %vm441_vm4, %v1705_v19, %v9463_v42 }
 0x215   : > { %v1680_v1 = vpop.permute.xlu1 %1679  ;;  %v1660_v47 = vpop.permute.xlu0 %1659 }
 0x216   : > { %v1702_v60 = vsel %vm447_vm7, %v1701_v23, %v1660_v47  ;;  %v1707_v18 = vsel %vm443_vm5, %v1706_v2, %v1680_v1 }
 0x217   : > { %v1703_v50 = vsel %vm449_vm8, %v1702_v60, %v9465_v26 }
 0x219   : > { %v1688_v41 = vpop.permute.xlu1 %1687  ;;  %v1668_v56 = vpop.permute.xlu0 %1667 }
 0x21a   : > { %v1704_v59 = vsel %vm451_vm9, %v1703_v50, %v1668_v56 }
 0x21b   : > { %v1714_v9 = vrot.slane %v1704_v59, 4 }
 0x21d   : > { %v1696_v58 = vpop.permute.xlu1 %1695  ;;  %1718 = vst [vmem:[#allocation3 + $0x108] sm:$0xf0] %v1714_v9  ;;  %v1684_v31 = vpop.permute.xlu0 %1683 }
 0x21e   : > { %v1708_v27 = vsel %vm445_vm6, %v1707_v18, %v1684_v31 }
 0x21f   : > { %v1709_v10 = vsel %vm447_vm7, %v1708_v27, %v1688_v41 }
 0x221   : > { %v1739_v25 = vpop.permute.xlu1 %1738  ;;  %v1692_v6 = vpop.permute.xlu0 %1691 }
 0x222   : > { %v1710_v26 = vsel %vm449_vm8, %v1709_v10, %v1692_v6 }
 0x223   : > { %v1711_v30 = vsel %vm451_vm9, %v1710_v26, %v1696_v58 }
 0x224   : > { %v1715_v4 = vrot.slane %v1711_v30, 4 }
 0x225   : > { %v1743_v11 = vpop.permute.xlu1 %1742  ;;  %v1737_v36 = vpop.permute.xlu0 %1736 }
 0x226   : > { %1719 = vst [vmem:[#allocation3 + $0x68] sm:$0xf0] %v1715_v4 }
 0x229   : > { %v1741_v42 = vpop.permute.xlu0 %1740  ;;  %v1747_v44 = vpop.permute.xlu1 %1746 }
 0x22a   : > { %v1828_v21 = vcombine.low %v1739_v25, %v1747_v44  ;;  %v1829_v35 = vcombine.high %v1739_v25, %v1747_v44 }
 0x22c   : > { %v1836_v20 = vrot.slane %v1828_v21, %v12343_v3  ;;  %v1843_v60 = vrot.slane %v1829_v35, %v12343_v3 }
 0x22d   : > { %v1745_v62 = vpop.permute.xlu0 %1744  ;;  %v1751_v38 = vpop.permute.xlu1 %1750 }
 0x22e   : > { %v1760_v61 = vcombine.low %v1737_v36, %v1745_v62  ;;  %v1761_v28 = vcombine.high %v1737_v36, %v1745_v62  ;;  %v1844_v54 = vcombine.low %v1743_v11, %v1751_v38  ;;  %v1845_v24 = vcombine.high %v1743_v11, %v1751_v38 }
 0x230   : > { %v1768_v46 = vrot.slane %v1760_v61, %v12343_v3  ;;  %v1775_v40 = vrot.slane %v1761_v28, %v12343_v3  ;;  %v1852_v37 = vrot.slane %v1844_v54, %v12343_v3  ;;  %v1859_v29 = vrot.slane %v1845_v24, %v12343_v3 }
 0x231   : > { %v1749_v15 = vpop.permute.xlu0 %1748 }
 0x232   : > { %v1776_v0 = vcombine.low %v1741_v42, %v1749_v15  ;;  %v1777_v16 = vcombine.high %v1741_v42, %v1749_v15  ;;  %v1860_v49 = vcombine.low %v1836_v20, %v1852_v37  ;;  %v1861_v1 = vcombine.high %v1836_v20, %v1852_v37 }
 0x233   : > { %v1876_v19 = vcombine.low %v1843_v60, %v1859_v29  ;;  %v1877_v9 = vcombine.high %v1843_v60, %v1859_v29 }
 0x234   : > { %v1784_v48 = vrot.slane %v1776_v0, %v12343_v3  ;;  %v1791_v51 = vrot.slane %v1777_v16, %v12343_v3  ;;  %v1868_v47 = vrot.slane %v1860_v49, %v8843_v12  ;;  %v1875_v56 = vrot.slane %v1861_v1, %v8843_v12 }
 0x235   : > { %v1884_v58 = vrot.slane %v1876_v19, %v8843_v12  ;;  %v1891_v31 = vrot.slane %v1877_v9, %v8843_v12 }
 0x236   : > { %v1792_v55 = vcombine.low %v1768_v46, %v1784_v48  ;;  %v1793_v53 = vcombine.high %v1768_v46, %v1784_v48  ;;  %v1808_v22 = vcombine.low %v1775_v40, %v1791_v51  ;;  %v1809_v8 = vcombine.high %v1775_v40, %v1791_v51 }
 0x237   : > { %v1892_v50 = vcombine.high %v1868_v47, %v12334_v43  ;;  %v1893_v2 = vcombine.high %v1875_v56, %v12334_v43  ;;  %v1894_v18 = vcombine.high %v1884_v58, %v12334_v43  ;;  %v1895_v27 = vcombine.high %v1891_v31, %v12334_v43 }
 0x238   : > { %v1807_v45 = vrot.slane %v1793_v53, %v8843_v12  ;;  %v1800_v17 = vrot.slane %v1792_v55, %v8843_v12  ;;  %v1816_v14 = vrot.slane %v1808_v22, %v8843_v12  ;;  %v1823_v23 = vrot.slane %v1809_v8, %v8843_v12 }
 0x23a   : > { %1901 = vrot.lane.b32.xlu1 %v1807_v45, %s8676_s24  ;;  %v1824_v63 = vcombine.high %v1800_v17, %v12334_v43  ;;  %v1825_v57 = vcombine.high %v1807_v45, %v12334_v43  ;;  %v1826_v41 = vcombine.high %v1816_v14, %v12334_v43  ;;  %v1827_v59 = vcombine.high %v1823_v23, %v12334_v43 }
 0x23c   : > { %1897 = vrot.lane.b32.xlu0 %v1824_v63, %s8679_s27 }
 0x23e   : > { %1909 = vrot.lane.b32.xlu1 %v1816_v14, %s8677_s25 }
 0x240   : > { %1905 = vrot.lane.b32.xlu0 %v1825_v57, %s8680_s28 }
 0x242   : > { %1917 = vrot.lane.b32.xlu1 %v1823_v23, %s8678_s26 }
 0x244   : > { %1913 = vrot.lane.b32.xlu0 %v1826_v41, %s8681_s29 }
 0x246   : > { %1925 = vrot.lane.b32.xlu1 %v1892_v50, %s8679_s27 }
 0x248   : > { %1921 = vrot.lane.b32.xlu0 %v1827_v59, %s8682_s30 }
 0x24a   : > { %1933 = vrot.lane.b32.xlu1 %v1893_v2, %s8680_s28 }
 0x24c   : > { %1929 = vrot.lane.b32.xlu0 %v1875_v56, %s8676_s24 }
 0x24e   : > { %1941 = vrot.lane.b32.xlu1 %v1894_v18, %s8681_s29 }
 0x250   : > { %1937 = vrot.lane.b32.xlu0 %v1884_v58, %s8677_s25 }
 0x252   : > { %1949 = vrot.lane.b32.xlu1 %v1895_v27, %s8682_s30 }
 0x254   : > { %1945 = vrot.lane.b32.xlu0 %v1891_v31, %s8678_s26 }
 0x256   : > { %1986 = vrot.lane.b32.xlu1 %v9408_v13, %s8670_s20 }
 0x258   : > { %1984 = vrot.lane.b32.xlu0 %v9421_v33, %s8670_s20 }
 0x25a   : > { %1990 = vrot.lane.b32.xlu1 %v9417_v32, %s8670_s20 }
 0x25c   : > { %1988 = vrot.lane.b32.xlu0 %v9433_v5, %s8670_s20 }
 0x25e   : > { %1994 = vrot.lane.b32.xlu1 %v9429_v52, %s8670_s20 }
 0x260   : > { %1992 = vrot.lane.b32.xlu0 %v9445_v7, %s8670_s20 }
 0x262   : > { %1998 = vrot.lane.b32.xlu1 %v9439_v34, %s8670_s20 }
 0x264   : > { %1996 = vrot.lane.b32.xlu0 %v9449_v39, %s8670_s20 }
 0x2ac   : > { %v1902_v25 = vpop.permute.xlu1 %1901 }
 0x2ae   : > { %v1898_v10 = vpop.permute.xlu0 %1897 }
 0x2af   : > { %v1952_v6 = vsel %vm439_vm3, %v1800_v17, %v1898_v10 }
 0x2b0   : > { %v1910_v26 = vpop.permute.xlu1 %1909  ;;  %v1953_v30 = vsel %vm441_vm4, %v1952_v6, %v1902_v25 }
 0x2b2   : > { %v1906_v4 = vpop.permute.xlu0 %1905 }
 0x2b3   : > { %v1954_v11 = vsel %vm443_vm5, %v1953_v30, %v1906_v4 }
 0x2b4   : > { %v1918_v36 = vpop.permute.xlu1 %1917  ;;  %v1955_v42 = vsel %vm445_vm6, %v1954_v11, %v1910_v26 }
 0x2b6   : > { %v1914_v44 = vpop.permute.xlu0 %1913 }
 0x2b7   : > { %v1956_v62 = vsel %vm447_vm7, %v1955_v42, %v1914_v44 }
 0x2b8   : > { %v1926_v61 = vpop.permute.xlu1 %1925  ;;  %v1957_v38 = vsel %vm449_vm8, %v1956_v62, %v1918_v36 }
 0x2b9   : > { %v1959_v16 = vsel %vm439_vm3, %v1868_v47, %v1926_v61 }
 0x2ba   : > { %v1922_v15 = vpop.permute.xlu0 %1921 }
 0x2bb   : > { %v1958_v28 = vsel %vm451_vm9, %v1957_v38, %v1922_v15 }
 0x2bc   : > { %1966 = vst [vmem:[#allocation3 + $0x30] sm:$0xf] %v1958_v28  ;;  %v1934_v0 = vpop.permute.xlu1 %1933 }
 0x2be   : > { %v1930_v54 = vpop.permute.xlu0 %1929 }
 0x2bf   : > { %v1960_v46 = vsel %vm441_vm4, %v1959_v16, %v1930_v54 }
 0x2c0   : > { %v1942_v48 = vpop.permute.xlu1 %1941  ;;  %v1961_v51 = vsel %vm443_vm5, %v1960_v46, %v1934_v0 }
 0x2c2   : > { %v1938_v21 = vpop.permute.xlu0 %1937 }
 0x2c3   : > { %v1962_v40 = vsel %vm445_vm6, %v1961_v51, %v1938_v21 }
 0x2c4   : > { %v1950_v55 = vpop.permute.xlu1 %1949  ;;  %v1963_v53 = vsel %vm447_vm7, %v1962_v40, %v1942_v48 }
 0x2c6   : > { %v1946_v37 = vpop.permute.xlu0 %1945 }
 0x2c7   : > { %v1964_v22 = vsel %vm449_vm8, %v1963_v53, %v1946_v37 }
 0x2c8   : > { %v1965_v45 = vsel %vm451_vm9, %v1964_v22, %v1950_v55  ;;  %v1987_v17 = vpop.permute.xlu1 %1986 }
 0x2c9   : > { %1967 = vst [vmem:[#allocation3 + $0x18] sm:$0xf] %v1965_v45 }
 0x2ca   : > { %v1985_v20 = vpop.permute.xlu0 %1984 }
 0x2cc   : > { %v1991_v63 = vpop.permute.xlu1 %1990 }
 0x2ce   : > { %v1989_v24 = vpop.permute.xlu0 %1988 }
 0x2d0   : > { %v1995_v49 = vpop.permute.xlu1 %1994 }
 0x2d1   : > { %v2076_v50 = vcombine.low %v1987_v17, %v1995_v49  ;;  %v2077_v4 = vcombine.high %v1987_v17, %v1995_v49 }
 0x2d2   : > { %v1993_v8 = vpop.permute.xlu0 %1992 }
 0x2d3   : > { %v2008_v14 = vcombine.low %v1985_v20, %v1993_v8  ;;  %v2009_v23 = vcombine.high %v1985_v20, %v1993_v8  ;;  %v2084_v27 = vrot.slane %v2076_v50, %v12343_v3  ;;  %v2091_v61 = vrot.slane %v2077_v4, %v12343_v3 }
 0x2d4   : > { %v1999_v57 = vpop.permute.xlu1 %1998 }
 0x2d5   : > { %v2016_v47 = vrot.slane %v2008_v14, %v12343_v3  ;;  %v2092_v60 = vcombine.low %v1991_v63, %v1999_v57  ;;  %v2023_v56 = vrot.slane %v2009_v23, %v12343_v3  ;;  %v2093_v10 = vcombine.high %v1991_v63, %v1999_v57 }
 0x2d6   : > { %v1997_v35 = vpop.permute.xlu0 %1996 }
 0x2d7   : > { %v2024_v29 = vcombine.low %v1989_v24, %v1997_v35  ;;  %v2025_v1 = vcombine.high %v1989_v24, %v1997_v35  ;;  %v2100_v2 = vrot.slane %v2092_v60, %v12343_v3  ;;  %v2107_v36 = vrot.slane %v2093_v10, %v12343_v3 }
 0x2d9   : > { %v2032_v41 = vrot.slane %v2024_v29, %v12343_v3  ;;  %v2039_v19 = vrot.slane %v2025_v1, %v12343_v3  ;;  %v2108_v6 = vcombine.low %v2084_v27, %v2100_v2  ;;  %v2109_v42 = vcombine.high %v2084_v27, %v2100_v2 }
 0x2da   : > { %v2124_v15 = vcombine.low %v2091_v61, %v2107_v36  ;;  %v2125_v54 = vcombine.high %v2091_v61, %v2107_v36 }
 0x2db   : > { %v2040_v59 = vcombine.low %v2016_v47, %v2032_v41  ;;  %v2041_v9 = vcombine.high %v2016_v47, %v2032_v41  ;;  %v2056_v58 = vcombine.low %v2023_v56, %v2039_v19  ;;  %v2057_v26 = vcombine.high %v2023_v56, %v2039_v19 }
 0x2dc   : > { %v2116_v62 = vrot.slane %v2108_v6, %v8843_v12  ;;  %v2123_v0 = vrot.slane %v2109_v42, %v8843_v12  ;;  %v2132_v48 = vrot.slane %v2124_v15, %v8843_v12  ;;  %v2139_v21 = vrot.slane %v2125_v54, %v8843_v12 }
 0x2dd   : > { %v2055_v18 = vrot.slane %v2041_v9, %v8843_v12  ;;  %v2048_v31 = vrot.slane %v2040_v59, %v8843_v12  ;;  %v2064_v30 = vrot.slane %v2056_v58, %v8843_v12  ;;  %v2071_v44 = vrot.slane %v2057_v26, %v8843_v12 }
 0x2de   : > { %v2140_v28 = vcombine.high %v2116_v62, %v12334_v43  ;;  %v2141_v46 = vcombine.high %v2123_v0, %v12334_v43  ;;  %v2142_v51 = vcombine.high %v2132_v48, %v12334_v43  ;;  %v2143_v40 = vcombine.high %v2139_v21, %v12334_v43 }
 0x2df   : > { %2149 = vrot.lane.b32.xlu1 %v2055_v18, %s8676_s24  ;;  %v2072_v25 = vcombine.high %v2048_v31, %v12334_v43  ;;  %v2073_v11 = vcombine.high %v2055_v18, %v12334_v43  ;;  %v2074_v38 = vcombine.high %v2064_v30, %v12334_v43  ;;  %v2075_v16 = vcombine.high %v2071_v44, %v12334_v43 }
 0x2e1   : > { %2145 = vrot.lane.b32.xlu0 %v2072_v25, %s8679_s27 }
 0x2e3   : > { %2157 = vrot.lane.b32.xlu1 %v2064_v30, %s8677_s25 }
 0x2e5   : > { %2153 = vrot.lane.b32.xlu0 %v2073_v11, %s8680_s28 }
 0x2e7   : > { %2165 = vrot.lane.b32.xlu1 %v2071_v44, %s8678_s26 }
 0x2e9   : > { %2161 = vrot.lane.b32.xlu0 %v2074_v38, %s8681_s29 }
 0x2eb   : > { %2173 = vrot.lane.b32.xlu1 %v2140_v28, %s8679_s27 }
 0x2ed   : > { %2169 = vrot.lane.b32.xlu0 %v2075_v16, %s8682_s30 }
 0x2ef   : > { %2181 = vrot.lane.b32.xlu1 %v2141_v46, %s8680_s28 }
 0x2f1   : > { %2177 = vrot.lane.b32.xlu0 %v2123_v0, %s8676_s24 }
 0x2f3   : > { %2189 = vrot.lane.b32.xlu1 %v2142_v51, %s8681_s29 }
 0x2f5   : > { %2185 = vrot.lane.b32.xlu0 %v2132_v48, %s8677_s25 }
 0x2f7   : > { %2197 = vrot.lane.b32.xlu1 %v2143_v40, %s8682_s30 }
 0x2f9   : > { %2193 = vrot.lane.b32.xlu0 %v2139_v21, %s8678_s26 }
 0x2fb   : > { %2240 = vrot.lane.b32.xlu1 %v9408_v13, %s8684_s5 }
 0x2fd   : > { %2238 = vrot.lane.b32.xlu0 %v9421_v33, %s8684_s5 }
 0x2ff   : > { %2244 = vrot.lane.b32.xlu1 %v9417_v32, %s8684_s5 }
 0x301   : > { %2242 = vrot.lane.b32.xlu0 %v9433_v5, %s8684_s5 }
 0x303   : > { %2248 = vrot.lane.b32.xlu1 %v9429_v52, %s8684_s5 }
 0x305   : > { %2246 = vrot.lane.b32.xlu0 %v9445_v7, %s8684_s5 }
 0x307   : > { %2252 = vrot.lane.b32.xlu1 %v9439_v34, %s8684_s5 }
 0x309   : > { %2250 = vrot.lane.b32.xlu0 %v9449_v39, %s8684_s5 }
 0x351   : > { %v2150_v13 = vpop.permute.xlu1 %2149 }
 0x353   : > { %v2146_v33 = vpop.permute.xlu0 %2145 }
 0x354   : > { %v2200_v55 = vsel %vm439_vm3, %v2048_v31, %v2146_v33 }
 0x355   : > { %v2158_v32 = vpop.permute.xlu1 %2157  ;;  %v2201_v53 = vsel %vm441_vm4, %v2200_v55, %v2150_v13 }
 0x357   : > { %v2154_v5 = vpop.permute.xlu0 %2153 }
 0x358   : > { %v2202_v37 = vsel %vm443_vm5, %v2201_v53, %v2154_v5 }
 0x359   : > { %v2166_v52 = vpop.permute.xlu1 %2165  ;;  %v2203_v22 = vsel %vm445_vm6, %v2202_v37, %v2158_v32 }
 0x35b   : > { %v2162_v7 = vpop.permute.xlu0 %2161 }
 0x35c   : > { %v2204_v45 = vsel %vm447_vm7, %v2203_v22, %v2162_v7 }
 0x35d   : > { %v2174_v34 = vpop.permute.xlu1 %2173  ;;  %v2205_v17 = vsel %vm449_vm8, %v2204_v45, %v2166_v52 }
 0x35e   : > { %v2207_v49 = vsel %vm439_vm3, %v2116_v62, %v2174_v34 }
 0x35f   : > { %v2170_v39 = vpop.permute.xlu0 %2169 }
 0x360   : > { %v2206_v20 = vsel %vm451_vm9, %v2205_v17, %v2170_v39 }
 0x361   : > { %v2216_v63 = vrot.slane %v2206_v20, 4  ;;  %v2182_v24 = vpop.permute.xlu1 %2181 }
 0x363   : > { %2220 = vst [vmem:[#allocation3 + $0x30] sm:$0xf0] %v2216_v63  ;;  %v2178_v8 = vpop.permute.xlu0 %2177 }
 0x364   : > { %v2208_v14 = vsel %vm441_vm4, %v2207_v49, %v2178_v8  ;;  %v9749_v49 = vld [vmem:[#allocation2 + $0xe] sm:$0xff]  ;;  %v9753_v8 = vld [vmem:[#allocation2 + $0x6] sm:$0xff] }
 0x365   : > { %v2190_v35 = vpop.permute.xlu1 %2189  ;;  %v2209_v57 = vsel %vm443_vm5, %v2208_v14, %v2182_v24  ;;  %v9757_v14 = vld [vmem:[#allocation2 + $0x2e] sm:$0xff] }
 0x367   : > { %v2186_v29 = vpop.permute.xlu0 %2185 }
 0x368   : > { %v2210_v1 = vsel %vm445_vm6, %v2209_v57, %v2186_v29  ;;  %v9765_v57 = vld [vmem:[#allocation2 + $0x4e] sm:$0xff]  ;;  %v9769_v29 = vld [vmem:[#allocation2 + $0x46] sm:$0xff] }
 0x369   : > { %v2198_v23 = vpop.permute.xlu1 %2197  ;;  %v2211_v47 = vsel %vm447_vm7, %v2210_v1, %v2190_v35  ;;  %v9761_v35 = vld [vmem:[#allocation2 + $0x26] sm:$0xff]  ;;  %v9773_v1 = vld [vmem:[#allocation2 + $0x6e] sm:$0xff] }
 0x36b   : > { %v2194_v60 = vpop.permute.xlu0 %2193 }
 0x36c   : > { %v2212_v41 = vsel %vm449_vm8, %v2211_v47, %v2194_v60 }
 0x36d   : > { %v2213_v19 = vsel %vm451_vm9, %v2212_v41, %v2198_v23  ;;  %v2241_v50 = vpop.permute.xlu1 %2240  ;;  %v9777_v23 = vld [vmem:[#allocation2 + $0x66] sm:$0xff] }
 0x36e   : > { %v2217_v56 = vrot.slane %v2213_v19, 4 }
 0x36f   : > { %v2239_v59 = vpop.permute.xlu0 %2238 }
 0x370   : > { %2221 = vst [vmem:[#allocation3 + $0x18] sm:$0xf0] %v2217_v56 }
 0x371   : > { %v2245_v9 = vpop.permute.xlu1 %2244 }
 0x373   : > { %v2243_v2 = vpop.permute.xlu0 %2242 }
 0x375   : > { %v2249_v58 = vpop.permute.xlu1 %2248 }
 0x376   : > { %v2330_v42 = vcombine.low %v2241_v50, %v2249_v58  ;;  %v2331_v40 = vcombine.high %v2241_v50, %v2249_v58 }
 0x377   : > { %v2247_v18 = vpop.permute.xlu0 %2246 }
 0x378   : > { %v2262_v31 = vcombine.low %v2239_v59, %v2247_v18  ;;  %v2263_v26 = vcombine.high %v2239_v59, %v2247_v18  ;;  %v2338_v16 = vrot.slane %v2330_v42, %v12343_v3  ;;  %v2345_v5 = vrot.slane %v2331_v40, %v12343_v3 }
 0x379   : > { %v2253_v25 = vpop.permute.xlu1 %2252 }
 0x37a   : > { %v2270_v30 = vrot.slane %v2262_v31, %v12343_v3  ;;  %v2346_v4 = vcombine.low %v2245_v9, %v2253_v25  ;;  %v2277_v44 = vrot.slane %v2263_v26, %v12343_v3  ;;  %v2347_v46 = vcombine.high %v2245_v9, %v2253_v25 }
 0x37b   : > { %v2251_v27 = vpop.permute.xlu0 %2250 }
 0x37c   : > { %v2278_v10 = vcombine.low %v2243_v2, %v2251_v27  ;;  %v2279_v6 = vcombine.high %v2243_v2, %v2251_v27  ;;  %v2354_v38 = vrot.slane %v2346_v4, %v12343_v3  ;;  %v2361_v33 = vrot.slane %v2347_v46, %v12343_v3 }
 0x37e   : > { %v2286_v11 = vrot.slane %v2278_v10, %v12343_v3  ;;  %v2293_v36 = vrot.slane %v2279_v6, %v12343_v3  ;;  %v2362_v48 = vcombine.low %v2338_v16, %v2354_v38  ;;  %v2363_v55 = vcombine.high %v2338_v16, %v2354_v38 }
 0x37f   : > { %v2378_v52 = vcombine.low %v2345_v5, %v2361_v33  ;;  %v2379_v34 = vcombine.high %v2345_v5, %v2361_v33 }
 0x380   : > { %v2294_v62 = vcombine.low %v2270_v30, %v2286_v11  ;;  %v2295_v61 = vcombine.high %v2270_v30, %v2286_v11  ;;  %v2310_v15 = vcombine.low %v2277_v44, %v2293_v36  ;;  %v2311_v51 = vcombine.high %v2277_v44, %v2293_v36 }
 0x381   : > { %v2370_v53 = vrot.slane %v2362_v48, %v8843_v12  ;;  %v2377_v7 = vrot.slane %v2363_v55, %v8843_v12  ;;  %v2386_v39 = vrot.slane %v2378_v52, %v8843_v12  ;;  %v2393_v63 = vrot.slane %v2379_v34, %v8843_v12 }
 0x382   : > { %v2309_v28 = vrot.slane %v2295_v61, %v8843_v12  ;;  %v2302_v0 = vrot.slane %v2294_v62, %v8843_v12  ;;  %v2318_v21 = vrot.slane %v2310_v15, %v8843_v12  ;;  %v2325_v32 = vrot.slane %v2311_v51, %v8843_v12 }
 0x383   : > { %v2394_v22 = vcombine.high %v2370_v53, %v12334_v43  ;;  %v2395_v17 = vcombine.high %v2377_v7, %v12334_v43  ;;  %v2396_v20 = vcombine.high %v2386_v39, %v12334_v43  ;;  %v2397_v24 = vcombine.high %v2393_v63, %v12334_v43 }
 0x384   : > { %2403 = vrot.lane.b32.xlu1 %v2309_v28, %s8676_s24  ;;  %v2326_v54 = vcombine.high %v2302_v0, %v12334_v43  ;;  %v2327_v13 = vcombine.high %v2309_v28, %v12334_v43  ;;  %v2328_v37 = vcombine.high %v2318_v21, %v12334_v43  ;;  %v2329_v45 = vcombine.high %v2325_v32, %v12334_v43 }
 0x386   : > { %2399 = vrot.lane.b32.xlu0 %v2326_v54, %s8679_s27 }
 0x388   : > { %2411 = vrot.lane.b32.xlu1 %v2318_v21, %s8677_s25 }
 0x38a   : > { %2407 = vrot.lane.b32.xlu0 %v2327_v13, %s8680_s28 }
 0x38c   : > { %2419 = vrot.lane.b32.xlu1 %v2325_v32, %s8678_s26 }
 0x38e   : > { %2415 = vrot.lane.b32.xlu0 %v2328_v37, %s8681_s29 }
 0x390   : > { %2427 = vrot.lane.b32.xlu1 %v2394_v22, %s8679_s27 }
 0x392   : > { %2423 = vrot.lane.b32.xlu0 %v2329_v45, %s8682_s30 }
 0x394   : > { %2435 = vrot.lane.b32.xlu1 %v2395_v17, %s8680_s28 }
 0x396   : > { %2431 = vrot.lane.b32.xlu0 %v2377_v7, %s8676_s24 }
 0x398   : > { %2443 = vrot.lane.b32.xlu1 %v2396_v20, %s8681_s29 }
 0x39a   : > { %2439 = vrot.lane.b32.xlu0 %v2386_v39, %s8677_s25 }
 0x39c   : > { %2451 = vrot.lane.b32.xlu1 %v2397_v24, %s8682_s30 }
 0x39e   : > { %2447 = vrot.lane.b32.xlu0 %v2393_v63, %s8678_s26 }
 0x3a0   : > { %2488 = vrot.lane.b32.xlu1 %v9749_v49, %s8685_s6 }
 0x3a2   : > { %2486 = vrot.lane.b32.xlu0 %v9753_v8, %s8685_s6 }
 0x3a4   : > { %2492 = vrot.lane.b32.xlu1 %v9757_v14, %s8685_s6 }
 0x3a6   : > { %2490 = vrot.lane.b32.xlu0 %v9761_v35, %s8685_s6 }
 0x3a8   : > { %2496 = vrot.lane.b32.xlu1 %v9765_v57, %s8685_s6 }
 0x3aa   : > { %2494 = vrot.lane.b32.xlu0 %v9769_v29, %s8685_s6 }
 0x3ac   : > { %2500 = vrot.lane.b32.xlu1 %v9773_v1, %s8685_s6 }
 0x3ae   : > { %2498 = vrot.lane.b32.xlu0 %v9777_v23, %s8685_s6 }
 0x3f6   : > { %v2404_v47 = vpop.permute.xlu1 %2403 }
 0x3f8   : > { %v2400_v60 = vpop.permute.xlu0 %2399 }
 0x3f9   : > { %v2454_v41 = vsel %vm439_vm3, %v2302_v0, %v2400_v60 }
 0x3fa   : > { %v2412_v19 = vpop.permute.xlu1 %2411  ;;  %v2455_v50 = vsel %vm441_vm4, %v2454_v41, %v2404_v47 }
 0x3fc   : > { %v2408_v56 = vpop.permute.xlu0 %2407 }
 0x3fd   : > { %v2456_v59 = vsel %vm443_vm5, %v2455_v50, %v2408_v56 }
 0x3fe   : > { %v2420_v9 = vpop.permute.xlu1 %2419  ;;  %v2457_v2 = vsel %vm445_vm6, %v2456_v59, %v2412_v19 }
 0x400   : > { %v2416_v58 = vpop.permute.xlu0 %2415 }
 0x401   : > { %v2458_v18 = vsel %vm447_vm7, %v2457_v2, %v2416_v58 }
 0x402   : > { %v2428_v31 = vpop.permute.xlu1 %2427  ;;  %v2459_v27 = vsel %vm449_vm8, %v2458_v18, %v2420_v9 }
 0x403   : > { %v2461_v26 = vsel %vm439_vm3, %v2370_v53, %v2428_v31 }
 0x404   : > { %v2424_v25 = vpop.permute.xlu0 %2423 }
 0x405   : > { %v2460_v10 = vsel %vm451_vm9, %v2459_v27, %v2424_v25 }
 0x406   : > { %2468 = vst [vmem:[#allocation3 + $0x80] sm:$0xf] %v2460_v10  ;;  %v2436_v6 = vpop.permute.xlu1 %2435 }
 0x408   : > { %v2432_v30 = vpop.permute.xlu0 %2431 }
 0x409   : > { %v2462_v4 = vsel %vm441_vm4, %v2461_v26, %v2432_v30 }
 0x40a   : > { %v2444_v11 = vpop.permute.xlu1 %2443  ;;  %v2463_v36 = vsel %vm443_vm5, %v2462_v4, %v2436_v6 }
 0x40c   : > { %v2440_v42 = vpop.permute.xlu0 %2439 }
 0x40d   : > { %v2464_v44 = vsel %vm445_vm6, %v2463_v36, %v2440_v42 }
 0x40e   : > { %v2452_v62 = vpop.permute.xlu1 %2451  ;;  %v2465_v61 = vsel %vm447_vm7, %v2464_v44, %v2444_v11 }
 0x410   : > { %v2448_v38 = vpop.permute.xlu0 %2447 }
 0x411   : > { %v2466_v15 = vsel %vm449_vm8, %v2465_v61, %v2448_v38 }
 0x412   : > { %v2467_v28 = vsel %vm451_vm9, %v2466_v15, %v2452_v62  ;;  %v2489_v0 = vpop.permute.xlu1 %2488 }
 0x413   : > { %2469 = vst [vmem:[#allocation3 + $0x88] sm:$0xf] %v2467_v28 }
 0x414   : > { %v2487_v16 = vpop.permute.xlu0 %2486 }
 0x416   : > { %v2493_v54 = vpop.permute.xlu1 %2492 }
 0x418   : > { %v2491_v46 = vpop.permute.xlu0 %2490 }
 0x41a   : > { %v2497_v48 = vpop.permute.xlu1 %2496 }
 0x41b   : > { %v2578_v22 = vcombine.low %v2489_v0, %v2497_v48  ;;  %v2579_v56 = vcombine.high %v2489_v0, %v2497_v48 }
 0x41c   : > { %v2495_v51 = vpop.permute.xlu0 %2494 }
 0x41d   : > { %v2510_v21 = vcombine.low %v2487_v16, %v2495_v51  ;;  %v2511_v32 = vcombine.high %v2487_v16, %v2495_v51  ;;  %v2586_v24 = vrot.slane %v2578_v22, %v12343_v3  ;;  %v2593_v31 = vrot.slane %v2579_v56, %v12343_v3 }
 0x41e   : > { %v2501_v13 = vpop.permute.xlu1 %2500 }
 0x41f   : > { %v2518_v53 = vrot.slane %v2510_v21, %v12343_v3  ;;  %v2594_v5 = vcombine.low %v2493_v54, %v2501_v13  ;;  %v2525_v7 = vrot.slane %v2511_v32, %v12343_v3  ;;  %v2595_v60 = vcombine.high %v2493_v54, %v2501_v13 }
 0x420   : > { %v2499_v40 = vpop.permute.xlu0 %2498 }
 0x421   : > { %v2526_v33 = vcombine.low %v2491_v46, %v2499_v40  ;;  %v2527_v55 = vcombine.high %v2491_v46, %v2499_v40  ;;  %v2602_v17 = vrot.slane %v2594_v5, %v12343_v3  ;;  %v2609_v9 = vrot.slane %v2595_v60, %v12343_v3 }
 0x423   : > { %v2534_v37 = vrot.slane %v2526_v33, %v12343_v3  ;;  %v2541_v52 = vrot.slane %v2527_v55, %v12343_v3  ;;  %v2610_v41 = vcombine.low %v2586_v24, %v2602_v17  ;;  %v2611_v2 = vcombine.high %v2586_v24, %v2602_v17 }
 0x424   : > { %v2626_v25 = vcombine.low %v2593_v31, %v2609_v9  ;;  %v2627_v30 = vcombine.high %v2593_v31, %v2609_v9 }
 0x425   : > { %v2542_v45 = vcombine.low %v2518_v53, %v2534_v37  ;;  %v2543_v34 = vcombine.high %v2518_v53, %v2534_v37  ;;  %v2558_v39 = vcombine.low %v2525_v7, %v2541_v52  ;;  %v2559_v19 = vcombine.high %v2525_v7, %v2541_v52 }
 0x426   : > { %v2618_v18 = vrot.slane %v2610_v41, %v8843_v12  ;;  %v2625_v6 = vrot.slane %v2611_v2, %v8843_v12  ;;  %v2634_v11 = vrot.slane %v2626_v25, %v8843_v12  ;;  %v2641_v42 = vrot.slane %v2627_v30, %v8843_v12 }
 0x427   : > { %v2557_v20 = vrot.slane %v2543_v34, %v8843_v12  ;;  %v2550_v63 = vrot.slane %v2542_v45, %v8843_v12  ;;  %v2566_v50 = vrot.slane %v2558_v39, %v8843_v12  ;;  %v2573_v58 = vrot.slane %v2559_v19, %v8843_v12 }
 0x428   : > { %v2642_v10 = vcombine.high %v2618_v18, %v12334_v43  ;;  %v2643_v4 = vcombine.high %v2625_v6, %v12334_v43  ;;  %v2644_v36 = vcombine.high %v2634_v11, %v12334_v43  ;;  %v2645_v44 = vcombine.high %v2641_v42, %v12334_v43 }
 0x429   : > { %2651 = vrot.lane.b32.xlu1 %v2557_v20, %s8676_s24  ;;  %v2574_v47 = vcombine.high %v2550_v63, %v12334_v43  ;;  %v2575_v59 = vcombine.high %v2557_v20, %v12334_v43  ;;  %v2576_v27 = vcombine.high %v2566_v50, %v12334_v43  ;;  %v2577_v26 = vcombine.high %v2573_v58, %v12334_v43 }
 0x42b   : > { %2647 = vrot.lane.b32.xlu0 %v2574_v47, %s8679_s27 }
 0x42d   : > { %2659 = vrot.lane.b32.xlu1 %v2566_v50, %s8677_s25 }
 0x42f   : > { %2655 = vrot.lane.b32.xlu0 %v2575_v59, %s8680_s28 }
 0x431   : > { %2667 = vrot.lane.b32.xlu1 %v2573_v58, %s8678_s26 }
 0x433   : > { %2663 = vrot.lane.b32.xlu0 %v2576_v27, %s8681_s29 }
 0x435   : > { %2675 = vrot.lane.b32.xlu1 %v2642_v10, %s8679_s27 }
 0x437   : > { %2671 = vrot.lane.b32.xlu0 %v2577_v26, %s8682_s30 }
 0x439   : > { %2683 = vrot.lane.b32.xlu1 %v2643_v4, %s8680_s28 }
 0x43b   : > { %2679 = vrot.lane.b32.xlu0 %v2625_v6, %s8676_s24 }
 0x43d   : > { %2691 = vrot.lane.b32.xlu1 %v2644_v36, %s8681_s29 }
 0x43f   : > { %2687 = vrot.lane.b32.xlu0 %v2634_v11, %s8677_s25 }
 0x441   : > { %2699 = vrot.lane.b32.xlu1 %v2645_v44, %s8682_s30 }
 0x443   : > { %2695 = vrot.lane.b32.xlu0 %v2641_v42, %s8678_s26 }
 0x445   : > { %2742 = vrot.lane.b32.xlu1 %v9749_v49, %s8670_s20 }
 0x447   : > { %2740 = vrot.lane.b32.xlu0 %v9753_v8, %s8670_s20 }
 0x449   : > { %2746 = vrot.lane.b32.xlu1 %v9757_v14, %s8670_s20 }
 0x44b   : > { %2744 = vrot.lane.b32.xlu0 %v9761_v35, %s8670_s20 }
 0x44d   : > { %2750 = vrot.lane.b32.xlu1 %v9765_v57, %s8670_s20 }
 0x44f   : > { %2748 = vrot.lane.b32.xlu0 %v9769_v29, %s8670_s20 }
 0x451   : > { %2754 = vrot.lane.b32.xlu1 %v9773_v1, %s8670_s20 }
 0x453   : > { %2752 = vrot.lane.b32.xlu0 %v9777_v23, %s8670_s20 }
 0x49b   : > { %v2652_v62 = vpop.permute.xlu1 %2651 }
 0x49d   : > { %v2648_v61 = vpop.permute.xlu0 %2647 }
 0x49e   : > { %v2702_v38 = vsel %vm439_vm3, %v2550_v63, %v2648_v61 }
 0x49f   : > { %v2660_v15 = vpop.permute.xlu1 %2659  ;;  %v2703_v28 = vsel %vm441_vm4, %v2702_v38, %v2652_v62 }
 0x4a1   : > { %v2656_v0 = vpop.permute.xlu0 %2655 }
 0x4a2   : > { %v2704_v16 = vsel %vm443_vm5, %v2703_v28, %v2656_v0 }
 0x4a3   : > { %v2668_v54 = vpop.permute.xlu1 %2667  ;;  %v2705_v46 = vsel %vm445_vm6, %v2704_v16, %v2660_v15 }
 0x4a5   : > { %v2664_v48 = vpop.permute.xlu0 %2663 }
 0x4a6   : > { %v2706_v51 = vsel %vm447_vm7, %v2705_v46, %v2664_v48 }
 0x4a7   : > { %v2676_v21 = vpop.permute.xlu1 %2675  ;;  %v2707_v40 = vsel %vm449_vm8, %v2706_v51, %v2668_v54 }
 0x4a8   : > { %v2709_v53 = vsel %vm439_vm3, %v2618_v18, %v2676_v21 }
 0x4a9   : > { %v2672_v13 = vpop.permute.xlu0 %2671 }
 0x4aa   : > { %v2708_v33 = vsel %vm451_vm9, %v2707_v40, %v2672_v13 }
 0x4ab   : > { %v2718_v55 = vrot.slane %v2708_v33, 4  ;;  %v2684_v32 = vpop.permute.xlu1 %2683 }
 0x4ad   : > { %2722 = vst [vmem:[#allocation3 + $0x80] sm:$0xf0] %v2718_v55  ;;  %v2680_v5 = vpop.permute.xlu0 %2679 }
 0x4ae   : > { %v2710_v37 = vsel %vm441_vm4, %v2709_v53, %v2680_v5 }
 0x4af   : > { %v2692_v52 = vpop.permute.xlu1 %2691  ;;  %v2711_v22 = vsel %vm443_vm5, %v2710_v37, %v2684_v32 }
 0x4b1   : > { %v2688_v7 = vpop.permute.xlu0 %2687 }
 0x4b2   : > { %v2712_v45 = vsel %vm445_vm6, %v2711_v22, %v2688_v7 }
 0x4b3   : > { %v2700_v34 = vpop.permute.xlu1 %2699  ;;  %v2713_v17 = vsel %vm447_vm7, %v2712_v45, %v2692_v52 }
 0x4b5   : > { %v2696_v39 = vpop.permute.xlu0 %2695 }
 0x4b6   : > { %v2714_v20 = vsel %vm449_vm8, %v2713_v17, %v2696_v39 }
 0x4b7   : > { %v2715_v63 = vsel %vm451_vm9, %v2714_v20, %v2700_v34  ;;  %v2743_v24 = vpop.permute.xlu1 %2742 }
 0x4b8   : > { %v2719_v47 = vrot.slane %v2715_v63, 4 }
 0x4b9   : > { %v2741_v60 = vpop.permute.xlu0 %2740 }
 0x4ba   : > { %2723 = vst [vmem:[#allocation3 + $0x88] sm:$0xf0] %v2719_v47 }
 0x4bb   : > { %v2747_v41 = vpop.permute.xlu1 %2746 }
 0x4bd   : > { %v2745_v19 = vpop.permute.xlu0 %2744 }
 0x4bf   : > { %v2751_v50 = vpop.permute.xlu1 %2750 }
 0x4c0   : > { %v2832_v26 = vcombine.low %v2743_v24, %v2751_v50  ;;  %v2833_v54 = vcombine.high %v2743_v24, %v2751_v50 }
 0x4c1   : > { %v2749_v56 = vpop.permute.xlu0 %2748 }
 0x4c2   : > { %v2764_v59 = vcombine.low %v2741_v60, %v2749_v56  ;;  %v2765_v31 = vcombine.high %v2741_v60, %v2749_v56  ;;  %v2840_v61 = vrot.slane %v2832_v26, %v12343_v3  ;;  %v2847_v13 = vrot.slane %v2833_v54, %v12343_v3 }
 0x4c3   : > { %v2755_v2 = vpop.permute.xlu1 %2754 }
 0x4c4   : > { %v2772_v27 = vrot.slane %v2764_v59, %v12343_v3  ;;  %v2848_v25 = vcombine.low %v2747_v41, %v2755_v2  ;;  %v2779_v30 = vrot.slane %v2765_v31, %v12343_v3  ;;  %v2849_v15 = vcombine.high %v2747_v41, %v2755_v2 }
 0x4c5   : > { %v2753_v9 = vpop.permute.xlu0 %2752 }
 0x4c6   : > { %v2780_v58 = vcombine.low %v2745_v19, %v2753_v9  ;;  %v2781_v18 = vcombine.high %v2745_v19, %v2753_v9  ;;  %v2856_v36 = vrot.slane %v2848_v25, %v12343_v3  ;;  %v2863_v48 = vrot.slane %v2849_v15, %v12343_v3 }
 0x4c8   : > { %v2788_v10 = vrot.slane %v2780_v58, %v12343_v3  ;;  %v2795_v6 = vrot.slane %v2781_v18, %v12343_v3  ;;  %v2864_v28 = vcombine.low %v2840_v61, %v2856_v36  ;;  %v2865_v51 = vcombine.high %v2840_v61, %v2856_v36 }
 0x4c9   : > { %v2880_v55 = vcombine.low %v2847_v13, %v2863_v48  ;;  %v2881_v37 = vcombine.high %v2847_v13, %v2863_v48 }
 0x4ca   : > { %v2796_v4 = vcombine.low %v2772_v27, %v2788_v10  ;;  %v2797_v11 = vcombine.high %v2772_v27, %v2788_v10  ;;  %v2812_v42 = vcombine.low %v2779_v30, %v2795_v6  ;;  %v2813_v0 = vcombine.high %v2779_v30, %v2795_v6 }
 0x4cb   : > { %v2872_v40 = vrot.slane %v2864_v28, %v8843_v12  ;;  %v2879_v53 = vrot.slane %v2865_v51, %v8843_v12  ;;  %v2888_v22 = vrot.slane %v2880_v55, %v8843_v12  ;;  %v2895_v45 = vrot.slane %v2881_v37, %v8843_v12 }
 0x4cc   : > { %v2811_v44 = vrot.slane %v2797_v11, %v8843_v12  ;;  %v2804_v62 = vrot.slane %v2796_v4, %v8843_v12  ;;  %v2820_v16 = vrot.slane %v2812_v42, %v8843_v12  ;;  %v2827_v21 = vrot.slane %v2813_v0, %v8843_v12 }
 0x4cd   : > { %v2896_v32 = vcombine.high %v2872_v40, %v12334_v43  ;;  %v2897_v52 = vcombine.high %v2879_v53, %v12334_v43  ;;  %v2898_v7 = vcombine.high %v2888_v22, %v12334_v43  ;;  %v2899_v34 = vcombine.high %v2895_v45, %v12334_v43 }
 0x4ce   : > { %2905 = vrot.lane.b32.xlu1 %v2811_v44, %s8676_s24  ;;  %v2828_v38 = vcombine.high %v2804_v62, %v12334_v43  ;;  %v2829_v46 = vcombine.high %v2811_v44, %v12334_v43  ;;  %v2830_v33 = vcombine.high %v2820_v16, %v12334_v43  ;;  %v2831_v5 = vcombine.high %v2827_v21, %v12334_v43 }
 0x4d0   : > { %2901 = vrot.lane.b32.xlu0 %v2828_v38, %s8679_s27 }
 0x4d2   : > { %2913 = vrot.lane.b32.xlu1 %v2820_v16, %s8677_s25 }
 0x4d4   : > { %2909 = vrot.lane.b32.xlu0 %v2829_v46, %s8680_s28 }
 0x4d6   : > { %2921 = vrot.lane.b32.xlu1 %v2827_v21, %s8678_s26 }
 0x4d8   : > { %2917 = vrot.lane.b32.xlu0 %v2830_v33, %s8681_s29 }
 0x4da   : > { %2929 = vrot.lane.b32.xlu1 %v2896_v32, %s8679_s27 }
 0x4dc   : > { %2925 = vrot.lane.b32.xlu0 %v2831_v5, %s8682_s30 }
 0x4de   : > { %2937 = vrot.lane.b32.xlu1 %v2897_v52, %s8680_s28 }
 0x4e0   : > { %2933 = vrot.lane.b32.xlu0 %v2879_v53, %s8676_s24 }
 0x4e2   : > { %2945 = vrot.lane.b32.xlu1 %v2898_v7, %s8681_s29 }
 0x4e4   : > { %2941 = vrot.lane.b32.xlu0 %v2888_v22, %s8677_s25 }
 0x4e6   : > { %2953 = vrot.lane.b32.xlu1 %v2899_v34, %s8682_s30 }
 0x4e8   : > { %2949 = vrot.lane.b32.xlu0 %v2895_v45, %s8678_s26 }
 0x4ea   : > { %2990 = vrot.lane.b32.xlu1 %v9749_v49, %s8686_s7 }
 0x4ec   : > { %2988 = vrot.lane.b32.xlu0 %v9753_v8, %s8686_s7 }
 0x4ee   : > { %2994 = vrot.lane.b32.xlu1 %v9757_v14, %s8686_s7 }
 0x4f0   : > { %2992 = vrot.lane.b32.xlu0 %v9761_v35, %s8686_s7 }
 0x4f2   : > { %2998 = vrot.lane.b32.xlu1 %v9765_v57, %s8686_s7 }
 0x4f4   : > { %2996 = vrot.lane.b32.xlu0 %v9769_v29, %s8686_s7 }
 0x4f6   : > { %3002 = vrot.lane.b32.xlu1 %v9773_v1, %s8686_s7 }
 0x4f8   : > { %3000 = vrot.lane.b32.xlu0 %v9777_v23, %s8686_s7 }
 0x540   : > { %v2906_v49 = vpop.permute.xlu1 %2905 }
 0x542   : > { %v2902_v8 = vpop.permute.xlu0 %2901 }
 0x543   : > { %v2956_v17 = vsel %vm439_vm3, %v2804_v62, %v2902_v8 }
 0x544   : > { %v2914_v14 = vpop.permute.xlu1 %2913  ;;  %v2957_v39 = vsel %vm441_vm4, %v2956_v17, %v2906_v49 }
 0x546   : > { %v2910_v35 = vpop.permute.xlu0 %2909 }
 0x547   : > { %v2958_v20 = vsel %vm443_vm5, %v2957_v39, %v2910_v35  ;;  %v9957_v35 = vld [vmem:[#allocation2 + $0x67] sm:$0xff] }
 0x548   : > { %v2922_v57 = vpop.permute.xlu1 %2921  ;;  %v2959_v63 = vsel %vm445_vm6, %v2958_v20, %v2914_v14 }
 0x54a   : > { %v2918_v29 = vpop.permute.xlu0 %2917 }
 0x54b   : > { %v2960_v24 = vsel %vm447_vm7, %v2959_v63, %v2918_v29  ;;  %v9963_v29 = vld [vmem:[#allocation2 + $0x27] sm:$0xff] }
 0x54c   : > { %v2930_v1 = vpop.permute.xlu1 %2929  ;;  %v2961_v47 = vsel %vm449_vm8, %v2960_v24, %v2922_v57  ;;  %v9965_v24 = vld [vmem:[#allocation2 + $0x47] sm:$0xff] }
 0x54d   : > { %v2963_v19 = vsel %vm439_vm3, %v2872_v40, %v2930_v1 }
 0x54e   : > { %v2926_v23 = vpop.permute.xlu0 %2925 }
 0x54f   : > { %v2962_v60 = vsel %vm451_vm9, %v2961_v47, %v2926_v23  ;;  %v3250_v47 = vcombine.low %v9963_v29, %v9957_v35  ;;  %v9971_v23 = vld [vmem:[#allocation2 + $0x7] sm:$0xff] }
 0x550   : > { %2970 = vst [vmem:[#allocation3 + $0xe8] sm:$0xf] %v2962_v60  ;;  %v2938_v41 = vpop.permute.xlu1 %2937 }
 0x552   : > { %v2934_v50 = vpop.permute.xlu0 %2933 }
 0x553   : > { %v2964_v56 = vsel %vm441_vm4, %v2963_v19, %v2934_v50  ;;  %v3234_v50 = vcombine.low %v9971_v23, %v9965_v24 }
 0x554   : > { %v2946_v59 = vpop.permute.xlu1 %2945  ;;  %v2965_v9 = vsel %vm443_vm5, %v2964_v56, %v2938_v41  ;;  %v3258_v56 = vrot.slane %v3250_v47, %v12343_v3 }
 0x556   : > { %v2942_v2 = vpop.permute.xlu0 %2941 }
 0x557   : > { %v2966_v58 = vsel %vm445_vm6, %v2965_v9, %v2942_v2  ;;  %v3242_v2 = vrot.slane %v3234_v50, %v12343_v3 }
 0x558   : > { %v2954_v18 = vpop.permute.xlu1 %2953  ;;  %v2967_v31 = vsel %vm447_vm7, %v2966_v58, %v2946_v59  ;;  %v3251_v58 = vcombine.high %v9963_v29, %v9957_v35 }
 0x55a   : > { %v2950_v27 = vpop.permute.xlu0 %2949 }
 0x55b   : > { %v2968_v25 = vsel %vm449_vm8, %v2967_v31, %v2950_v27  ;;  %v3266_v31 = vcombine.low %v3242_v2, %v3258_v56  ;;  %v3235_v27 = vcombine.high %v9971_v23, %v9965_v24 }
 0x55c   : > { %v2969_v10 = vsel %vm451_vm9, %v2968_v25, %v2954_v18  ;;  %v2991_v6 = vpop.permute.xlu1 %2990  ;;  %v9986_v18 = vld [vmem:[#allocation2 + $0x6f] sm:$0xff] }
 0x55d   : > { %2971 = vst [vmem:[#allocation3 + $0x100] sm:$0xf] %v2969_v10  ;;  %v9991_v25 = vld [vmem:[#allocation2 + $0x2f] sm:$0xff] }
 0x55e   : > { %v2989_v26 = vpop.permute.xlu0 %2988  ;;  %v9993_v10 = vld [vmem:[#allocation2 + $0x4f] sm:$0xff] }
 0x560   : > { %v2995_v30 = vpop.permute.xlu1 %2994 }
 0x562   : > { %v2993_v4 = vpop.permute.xlu0 %2992 }
 0x564   : > { %v2999_v11 = vpop.permute.xlu1 %2998 }
 0x565   : > { %v3080_v46 = vcombine.low %v2991_v6, %v2999_v11  ;;  %v3081_v7 = vcombine.high %v2991_v6, %v2999_v11  ;;  %v10000_v11 = vld [vmem:[#allocation2 + $0xf] sm:$0xff] }
 0x566   : > { %v2997_v36 = vpop.permute.xlu0 %2996 }
 0x567   : > { %v3012_v42 = vcombine.low %v2989_v26, %v2997_v36  ;;  %v3013_v15 = vcombine.high %v2989_v26, %v2997_v36  ;;  %v3088_v32 = vrot.slane %v3080_v46, %v12343_v3  ;;  %v3095_v14 = vrot.slane %v3081_v7, %v12343_v3 }
 0x568   : > { %v3003_v62 = vpop.permute.xlu1 %3002  ;;  %v3267_v26 = vcombine.high %v3242_v2, %v3258_v56  ;;  %v10004_v36 = vrot.slane %v3266_v31, %v8843_v12  ;;  %v3319_v46 = vcombine.high %v9991_v25, %v9986_v18 }
 0x569   : > { %v3020_v28 = vrot.slane %v3012_v42, %v12343_v3  ;;  %v3096_v0 = vcombine.low %v2995_v30, %v3003_v62  ;;  %v3027_v48 = vrot.slane %v3013_v15, %v12343_v3  ;;  %v3097_v5 = vcombine.high %v2995_v30, %v3003_v62 }
 0x56a   : > { %v3001_v44 = vpop.permute.xlu0 %3000  ;;  %v3265_v30 = vrot.slane %v3251_v58, %v12343_v3  ;;  %v3249_v42 = vrot.slane %v3235_v27, %v12343_v3  ;;  %v3281_v62 = vrot.slane %v3267_v26, %v8843_v12  ;;  %v3298_v15 = vcombine.high %v10004_v36, %v12334_v43 }
 0x56b   : > { %v3028_v61 = vcombine.low %v2993_v4, %v3001_v44  ;;  %v3029_v38 = vcombine.high %v2993_v4, %v3001_v44  ;;  %v3104_v40 = vrot.slane %v3096_v0, %v12343_v3  ;;  %v3111_v34 = vrot.slane %v3097_v5, %v12343_v3 }
 0x56c   : > { %v3318_v4 = vcombine.low %v9991_v25, %v9986_v18  ;;  %v3302_v44 = vcombine.low %v10000_v11, %v9993_v10 }
 0x56d   : > { %v3036_v16 = vrot.slane %v3028_v61, %v12343_v3  ;;  %v3043_v54 = vrot.slane %v3029_v38, %v12343_v3  ;;  %v3112_v37 = vcombine.low %v3088_v32, %v3104_v40  ;;  %v3113_v49 = vcombine.high %v3088_v32, %v3104_v40 }
 0x56e   : > { %v3128_v20 = vcombine.low %v3095_v14, %v3111_v34  ;;  %v3129_v60 = vcombine.high %v3095_v14, %v3111_v34  ;;  %v3282_v61 = vcombine.low %v3249_v42, %v3265_v30  ;;  %v3326_v38 = vrot.slane %v3318_v4, %v12343_v3 }
 0x56f   : > { %v3044_v51 = vcombine.low %v3020_v28, %v3036_v16  ;;  %v3045_v21 = vcombine.high %v3020_v28, %v3036_v16  ;;  %v3060_v13 = vcombine.low %v3027_v48, %v3043_v54  ;;  %v3061_v52 = vcombine.high %v3027_v48, %v3043_v54 }
 0x570   : > { %v9952_v17 = vrot.slane %v3112_v37, %v8843_v12  ;;  %v3127_v63 = vrot.slane %v3113_v49, %v8843_v12  ;;  %v3136_v19 = vrot.slane %v3128_v20, %v8843_v12  ;;  %v3143_v9 = vrot.slane %v3129_v60, %v8843_v12 }
 0x571   : > { %v3059_v33 = vrot.slane %v3045_v21, %v8843_v12  ;;  %v9938_v55 = vrot.slane %v3044_v51, %v8843_v12  ;;  %v3068_v22 = vrot.slane %v3060_v13, %v8843_v12  ;;  %v3075_v8 = vrot.slane %v3061_v52, %v8843_v12 }
 0x572   : > { %v3144_v57 = vcombine.high %v9952_v17, %v12334_v43  ;;  %v3145_v41 = vcombine.high %v3127_v63, %v12334_v43  ;;  %v3146_v59 = vcombine.high %v3136_v19, %v12334_v43  ;;  %v3147_v6 = vcombine.high %v3143_v9, %v12334_v43 }
 0x573   : > { %3153 = vrot.lane.b32.xlu1 %v3059_v33, %s8676_s24  ;;  %v3076_v53 = vcombine.high %v9938_v55, %v12334_v43  ;;  %v3077_v45 = vcombine.high %v3059_v33, %v12334_v43  ;;  %v3078_v39 = vcombine.high %v3068_v22, %v12334_v43  ;;  %v3079_v1 = vcombine.high %v3075_v8, %v12334_v43 }
 0x574   : > { %v3310_v28 = vrot.slane %v3302_v44, %v12343_v3  ;;  %v3290_v0 = vrot.slane %v3282_v61, %v8843_v12  ;;  %v3283_v16 = vcombine.high %v3249_v42, %v3265_v30  ;;  %v3299_v48 = vcombine.high %v3281_v62, %v12334_v43 }
 0x575   : > { %3149 = vrot.lane.b32.xlu0 %v3076_v53, %s8679_s27  ;;  %v3303_v51 = vcombine.high %v10000_v11, %v9993_v10  ;;  %v3333_v33 = vrot.slane %v3319_v46, %v12343_v3 }
 0x576   : > { %v3334_v54 = vcombine.low %v3310_v28, %v3326_v38  ;;  %v3297_v21 = vrot.slane %v3283_v16, %v8843_v12  ;;  %v3335_v13 = vcombine.high %v3310_v28, %v3326_v38  ;;  %v3300_v32 = vcombine.high %v3290_v0, %v12334_v43 }
 0x577   : > { %3161 = vrot.lane.b32.xlu1 %v3068_v22, %s8677_s25  ;;  %v3317_v53 = vrot.slane %v3303_v51, %v12343_v3 }
 0x578   : > { %v10027_v40 = vrot.slane %v3334_v54, %v8843_v12  ;;  %v3349_v37 = vrot.slane %v3335_v13, %v8843_v12  ;;  %v3301_v22 = vcombine.high %v3297_v21, %v12334_v43 }
 0x579   : > { %3157 = vrot.lane.b32.xlu0 %v3077_v45, %s8680_s28  ;;  %v3350_v52 = vcombine.low %v3317_v53, %v3333_v33  ;;  %v3351_v34 = vcombine.high %v3317_v53, %v3333_v33 }
 0x57a   : > { %v3366_v5 = vcombine.high %v10027_v40, %v12334_v43  ;;  %v3367_v7 = vcombine.high %v3349_v37, %v12334_v43 }
 0x57b   : > { %3169 = vrot.lane.b32.xlu1 %v3075_v8, %s8678_s26  ;;  %v3358_v45 = vrot.slane %v3350_v52, %v8843_v12  ;;  %v3365_v8 = vrot.slane %v3351_v34, %v8843_v12 }
 0x57d   : > { %3165 = vrot.lane.b32.xlu0 %v3078_v39, %s8681_s29  ;;  %v3368_v49 = vcombine.high %v3358_v45, %v12334_v43  ;;  %v3369_v14 = vcombine.high %v3365_v8, %v12334_v43 }
 0x57f   : > { %3177 = vrot.lane.b32.xlu1 %v3144_v57, %s8679_s27 }
 0x581   : > { %3173 = vrot.lane.b32.xlu0 %v3079_v1, %s8682_s30 }
 0x583   : > { %3185 = vrot.lane.b32.xlu1 %v3145_v41, %s8680_s28 }
 0x585   : > { %3181 = vrot.lane.b32.xlu0 %v3127_v63, %s8676_s24 }
 0x587   : > { %3193 = vrot.lane.b32.xlu1 %v3146_v59, %s8681_s29 }
 0x589   : > { %3189 = vrot.lane.b32.xlu0 %v3136_v19, %s8677_s25 }
 0x58b   : > { %3201 = vrot.lane.b32.xlu1 %v3147_v6, %s8682_s30 }
 0x58d   : > { %3197 = vrot.lane.b32.xlu0 %v3143_v9, %s8678_s26 }
 0x58f   : > { %3375 = vrot.lane.b32.xlu1 %v3281_v62, %s8676_s24 }
 0x591   : > { %3371 = vrot.lane.b32.xlu0 %v3298_v15, %s8679_s27 }
 0x593   : > { %3383 = vrot.lane.b32.xlu1 %v3290_v0, %s8677_s25 }
 0x595   : > { %3379 = vrot.lane.b32.xlu0 %v3299_v48, %s8680_s28 }
 0x597   : > { %3391 = vrot.lane.b32.xlu1 %v3297_v21, %s8678_s26 }
 0x599   : > { %3387 = vrot.lane.b32.xlu0 %v3300_v32, %s8681_s29 }
 0x59b   : > { %3399 = vrot.lane.b32.xlu1 %v3366_v5, %s8679_s27 }
 0x59d   : > { %3395 = vrot.lane.b32.xlu0 %v3301_v22, %s8682_s30 }
 0x59f   : > { %3407 = vrot.lane.b32.xlu1 %v3367_v7, %s8680_s28 }
 0x5a1   : > { %3403 = vrot.lane.b32.xlu0 %v3349_v37, %s8676_s24 }
 0x5a3   : > { %3415 = vrot.lane.b32.xlu1 %v3368_v49, %s8681_s29 }
 0x5a5   : > { %3411 = vrot.lane.b32.xlu0 %v3358_v45, %s8677_s25 }
 0x5a7   : > { %3423 = vrot.lane.b32.xlu1 %v3369_v14, %s8682_s30 }
 0x5a9   : > { %3419 = vrot.lane.b32.xlu0 %v3365_v8, %s8678_s26 }
 0x5ab   : > { %3460 = vrot.lane.b32.xlu1 %v10000_v11, %s8673_s22 }
 0x5ad   : > { %3458 = vrot.lane.b32.xlu0 %v9971_v23, %s8673_s22 }
 0x5af   : > { %3464 = vrot.lane.b32.xlu1 %v9991_v25, %s8673_s22 }
 0x5b1   : > { %3462 = vrot.lane.b32.xlu0 %v9963_v29, %s8673_s22 }
 0x5b3   : > { %3468 = vrot.lane.b32.xlu1 %v9993_v10, %s8673_s22 }
 0x5b5   : > { %3466 = vrot.lane.b32.xlu0 %v9965_v24, %s8673_s22 }
 0x5b7   : > { %3472 = vrot.lane.b32.xlu1 %v9986_v18, %s8673_s22 }
 0x5b9   : > { %3470 = vrot.lane.b32.xlu0 %v9957_v35, %s8673_s22 }
 0x5e5   : > { %v3154_v39 = vpop.permute.xlu1 %3153 }
 0x5e7   : > { %v3150_v20 = vpop.permute.xlu0 %3149 }
 0x5e8   : > { %v3204_v57 = vsel %vm439_vm3, %v9938_v55, %v3150_v20 }
 0x5e9   : > { %v3162_v63 = vpop.permute.xlu1 %3161  ;;  %v3205_v1 = vsel %vm441_vm4, %v3204_v57, %v3154_v39 }
 0x5eb   : > { %v3158_v47 = vpop.permute.xlu0 %3157 }
 0x5ec   : > { %v3206_v60 = vsel %vm443_vm5, %v3205_v1, %v3158_v47 }
 0x5ed   : > { %v3170_v41 = vpop.permute.xlu1 %3169  ;;  %v3207_v19 = vsel %vm445_vm6, %v3206_v60, %v3162_v63 }
 0x5ef   : > { %v3166_v50 = vpop.permute.xlu0 %3165 }
 0x5f0   : > { %v3208_v56 = vsel %vm447_vm7, %v3207_v19, %v3166_v50 }
 0x5f1   : > { %v3178_v59 = vpop.permute.xlu1 %3177  ;;  %v3209_v9 = vsel %vm449_vm8, %v3208_v56, %v3170_v41 }
 0x5f2   : > { %v3211_v27 = vsel %vm439_vm3, %v9952_v17, %v3178_v59 }
 0x5f3   : > { %v3174_v2 = vpop.permute.xlu0 %3173 }
 0x5f4   : > { %v3210_v58 = vsel %vm451_vm9, %v3209_v9, %v3174_v2 }
 0x5f5   : > { %v3220_v31 = vrot.slane %v3210_v58, 4  ;;  %v3186_v55 = vpop.permute.xlu1 %3185 }
 0x5f7   : > { %3224 = vst [vmem:[#allocation3 + $0xe8] sm:$0xf0] %v3220_v31  ;;  %v3182_v6 = vpop.permute.xlu0 %3181 }
 0x5f8   : > { %v3212_v26 = vsel %vm441_vm4, %v3211_v27, %v3182_v6 }
 0x5f9   : > { %v3194_v30 = vpop.permute.xlu1 %3193  ;;  %v3213_v4 = vsel %vm443_vm5, %v3212_v26, %v3186_v55 }
 0x5fb   : > { %v3190_v42 = vpop.permute.xlu0 %3189 }
 0x5fc   : > { %v3214_v44 = vsel %vm445_vm6, %v3213_v4, %v3190_v42 }
 0x5fd   : > { %v3202_v62 = vpop.permute.xlu1 %3201  ;;  %v3215_v61 = vsel %vm447_vm7, %v3214_v44, %v3194_v30 }
 0x5ff   : > { %v3198_v38 = vpop.permute.xlu0 %3197 }
 0x600   : > { %v3216_v15 = vsel %vm449_vm8, %v3215_v61, %v3198_v38 }
 0x601   : > { %v3217_v28 = vsel %vm451_vm9, %v3216_v15, %v3202_v62  ;;  %v3376_v0 = vpop.permute.xlu1 %3375 }
 0x602   : > { %v3221_v17 = vrot.slane %v3217_v28, 4 }
 0x603   : > { %v3372_v16 = vpop.permute.xlu0 %3371 }
 0x604   : > { %3225 = vst [vmem:[#allocation3 + $0x100] sm:$0xf0] %v3221_v17  ;;  %v3426_v54 = vsel %vm439_vm3, %v10004_v36, %v3372_v16 }
 0x605   : > { %v3384_v46 = vpop.permute.xlu1 %3383  ;;  %v3427_v48 = vsel %vm441_vm4, %v3426_v54, %v3376_v0 }
 0x607   : > { %v3380_v51 = vpop.permute.xlu0 %3379 }
 0x608   : > { %v3428_v21 = vsel %vm443_vm5, %v3427_v48, %v3380_v51 }
 0x609   : > { %v3392_v13 = vpop.permute.xlu1 %3391  ;;  %v3429_v33 = vsel %vm445_vm6, %v3428_v21, %v3384_v46 }
 0x60b   : > { %v3388_v32 = vpop.permute.xlu0 %3387 }
 0x60c   : > { %v3430_v53 = vsel %vm447_vm7, %v3429_v33, %v3388_v32 }
 0x60d   : > { %v3400_v5 = vpop.permute.xlu1 %3399  ;;  %v3431_v37 = vsel %vm449_vm8, %v3430_v53, %v3392_v13 }
 0x60e   : > { %v3433_v7 = vsel %vm439_vm3, %v10027_v40, %v3400_v5 }
 0x60f   : > { %v3396_v52 = vpop.permute.xlu0 %3395 }
 0x610   : > { %v3432_v22 = vsel %vm451_vm9, %v3431_v37, %v3396_v52 }
 0x611   : > { %3440 = vst [vmem:[#allocation3 + $0xc0] sm:$0xf] %v3432_v22  ;;  %v3408_v36 = vpop.permute.xlu1 %3407 }
 0x613   : > { %v3404_v45 = vpop.permute.xlu0 %3403 }
 0x614   : > { %v3434_v34 = vsel %vm441_vm4, %v3433_v7, %v3404_v45 }
 0x615   : > { %v3416_v49 = vpop.permute.xlu1 %3415  ;;  %v3435_v8 = vsel %vm443_vm5, %v3434_v34, %v3408_v36 }
 0x617   : > { %v3412_v14 = vpop.permute.xlu0 %3411 }
 0x618   : > { %v3436_v39 = vsel %vm445_vm6, %v3435_v8, %v3412_v14 }
 0x619   : > { %v3424_v20 = vpop.permute.xlu1 %3423  ;;  %v3437_v57 = vsel %vm447_vm7, %v3436_v39, %v3416_v49 }
 0x61b   : > { %v3420_v63 = vpop.permute.xlu0 %3419 }
 0x61c   : > { %v3438_v1 = vsel %vm449_vm8, %v3437_v57, %v3420_v63 }
 0x61d   : > { %v3439_v47 = vsel %vm451_vm9, %v3438_v1, %v3424_v20  ;;  %v3461_v60 = vpop.permute.xlu1 %3460 }
 0x61e   : > { %3441 = vst [vmem:[#allocation3 + $0x28] sm:$0xf] %v3439_v47 }
 0x61f   : > { %v3459_v40 = vpop.permute.xlu0 %3458 }
 0x621   : > { %v3465_v41 = vpop.permute.xlu1 %3464 }
 0x623   : > { %v3463_v19 = vpop.permute.xlu0 %3462 }
 0x625   : > { %v3469_v50 = vpop.permute.xlu1 %3468 }
 0x626   : > { %v3550_v4 = vcombine.low %v3461_v60, %v3469_v50  ;;  %v3551_v51 = vcombine.high %v3461_v60, %v3469_v50 }
 0x627   : > { %v3467_v56 = vpop.permute.xlu0 %3466 }
 0x628   : > { %v3482_v59 = vcombine.low %v3459_v40, %v3467_v56  ;;  %v3483_v55 = vcombine.high %v3459_v40, %v3467_v56  ;;  %v3558_v0 = vrot.slane %v3550_v4, %v12343_v3  ;;  %v3565_v5 = vrot.slane %v3551_v51, %v12343_v3 }
 0x629   : > { %v3473_v2 = vpop.permute.xlu1 %3472 }
 0x62a   : > { %v3490_v27 = vrot.slane %v3482_v59, %v12343_v3  ;;  %v3566_v6 = vcombine.low %v3465_v41, %v3473_v2  ;;  %v3497_v42 = vrot.slane %v3483_v55, %v12343_v3  ;;  %v3567_v16 = vcombine.high %v3465_v41, %v3473_v2 }
 0x62b   : > { %v3471_v9 = vpop.permute.xlu0 %3470 }
 0x62c   : > { %v3498_v58 = vcombine.low %v3463_v19, %v3471_v9  ;;  %v3499_v31 = vcombine.high %v3463_v19, %v3471_v9  ;;  %v3574_v61 = vrot.slane %v3566_v6, %v12343_v3  ;;  %v3581_v13 = vrot.slane %v3567_v16, %v12343_v3 }
 0x62e   : > { %v3506_v26 = vrot.slane %v3498_v58, %v12343_v3  ;;  %v3513_v30 = vrot.slane %v3499_v31, %v12343_v3  ;;  %v3582_v54 = vcombine.low %v3558_v0, %v3574_v61  ;;  %v3583_v33 = vcombine.high %v3558_v0, %v3574_v61 }
 0x62f   : > { %v3598_v52 = vcombine.low %v3565_v5, %v3581_v13  ;;  %v3599_v45 = vcombine.high %v3565_v5, %v3581_v13 }
 0x630   : > { %v3514_v44 = vcombine.low %v3490_v27, %v3506_v26  ;;  %v3515_v62 = vcombine.high %v3490_v27, %v3506_v26  ;;  %v3530_v38 = vcombine.low %v3497_v42, %v3513_v30  ;;  %v3531_v46 = vcombine.high %v3497_v42, %v3513_v30 }
 0x631   : > { %v3590_v53 = vrot.slane %v3582_v54, %v8843_v12  ;;  %v3597_v36 = vrot.slane %v3583_v33, %v8843_v12  ;;  %v3606_v49 = vrot.slane %v3598_v52, %v8843_v12  ;;  %v3613_v14 = vrot.slane %v3599_v45, %v8843_v12 }
 0x632   : > { %v3529_v15 = vrot.slane %v3515_v62, %v8843_v12  ;;  %v3522_v28 = vrot.slane %v3514_v44, %v8843_v12  ;;  %v3538_v48 = vrot.slane %v3530_v38, %v8843_v12  ;;  %v3545_v32 = vrot.slane %v3531_v46, %v8843_v12 }
 0x633   : > { %v3614_v22 = vcombine.high %v3590_v53, %v12334_v43  ;;  %v3615_v34 = vcombine.high %v3597_v36, %v12334_v43  ;;  %v3616_v8 = vcombine.high %v3606_v49, %v12334_v43  ;;  %v3617_v39 = vcombine.high %v3613_v14, %v12334_v43 }
 0x634   : > { %3623 = vrot.lane.b32.xlu1 %v3529_v15, %s8676_s24  ;;  %v3546_v17 = vcombine.high %v3522_v28, %v12334_v43  ;;  %v3547_v21 = vcombine.high %v3529_v15, %v12334_v43  ;;  %v3548_v37 = vcombine.high %v3538_v48, %v12334_v43  ;;  %v3549_v7 = vcombine.high %v3545_v32, %v12334_v43 }
 0x636   : > { %3619 = vrot.lane.b32.xlu0 %v3546_v17, %s8679_s27 }
 0x638   : > { %3631 = vrot.lane.b32.xlu1 %v3538_v48, %s8677_s25 }
 0x63a   : > { %3627 = vrot.lane.b32.xlu0 %v3547_v21, %s8680_s28 }
 0x63c   : > { %3639 = vrot.lane.b32.xlu1 %v3545_v32, %s8678_s26 }
 0x63e   : > { %3635 = vrot.lane.b32.xlu0 %v3548_v37, %s8681_s29 }
 0x640   : > { %3647 = vrot.lane.b32.xlu1 %v3614_v22, %s8679_s27 }
 0x642   : > { %3643 = vrot.lane.b32.xlu0 %v3549_v7, %s8682_s30 }
 0x644   : > { %3655 = vrot.lane.b32.xlu1 %v3615_v34, %s8680_s28 }
 0x646   : > { %3651 = vrot.lane.b32.xlu0 %v3597_v36, %s8676_s24 }
 0x648   : > { %3663 = vrot.lane.b32.xlu1 %v3616_v8, %s8681_s29 }
 0x64a   : > { %3659 = vrot.lane.b32.xlu0 %v3606_v49, %s8677_s25 }
 0x64c   : > { %3671 = vrot.lane.b32.xlu1 %v3617_v39, %s8682_s30 }
 0x64e   : > { %3667 = vrot.lane.b32.xlu0 %v3613_v14, %s8678_s26 }
 0x650   : > { %3714 = vrot.lane.b32.xlu1 %v10000_v11, %s8683_s4 }
 0x652   : > { %3712 = vrot.lane.b32.xlu0 %v9971_v23, %s8683_s4 }
 0x654   : > { %3718 = vrot.lane.b32.xlu1 %v9991_v25, %s8683_s4 }
 0x656   : > { %3716 = vrot.lane.b32.xlu0 %v9963_v29, %s8683_s4 }
 0x658   : > { %3722 = vrot.lane.b32.xlu1 %v9993_v10, %s8683_s4 }
 0x65a   : > { %3720 = vrot.lane.b32.xlu0 %v9965_v24, %s8683_s4 }
 0x65c   : > { %3726 = vrot.lane.b32.xlu1 %v9986_v18, %s8683_s4 }
 0x65e   : > { %3724 = vrot.lane.b32.xlu0 %v9957_v35, %s8683_s4 }
 0x6a6   : > { %v3624_v20 = vpop.permute.xlu1 %3623 }
 0x6a8   : > { %v3620_v57 = vpop.permute.xlu0 %3619 }
 0x6a9   : > { %v3674_v63 = vsel %vm439_vm3, %v3522_v28, %v3620_v57 }
 0x6aa   : > { %v3632_v1 = vpop.permute.xlu1 %3631  ;;  %v3675_v47 = vsel %vm441_vm4, %v3674_v63, %v3624_v20 }
 0x6ac   : > { %v3628_v60 = vpop.permute.xlu0 %3627 }
 0x6ad   : > { %v3676_v40 = vsel %vm443_vm5, %v3675_v47, %v3628_v60 }
 0x6ae   : > { %v3640_v41 = vpop.permute.xlu1 %3639  ;;  %v3677_v19 = vsel %vm445_vm6, %v3676_v40, %v3632_v1 }
 0x6b0   : > { %v3636_v50 = vpop.permute.xlu0 %3635 }
 0x6b1   : > { %v3678_v56 = vsel %vm447_vm7, %v3677_v19, %v3636_v50 }
 0x6b2   : > { %v3648_v59 = vpop.permute.xlu1 %3647  ;;  %v3679_v9 = vsel %vm449_vm8, %v3678_v56, %v3640_v41 }
 0x6b3   : > { %v3681_v27 = vsel %vm439_vm3, %v3590_v53, %v3648_v59 }
 0x6b4   : > { %v3644_v2 = vpop.permute.xlu0 %3643 }
 0x6b5   : > { %v3680_v58 = vsel %vm451_vm9, %v3679_v9, %v3644_v2 }
 0x6b6   : > { %v3690_v31 = vrot.slane %v3680_v58, 4  ;;  %v3656_v55 = vpop.permute.xlu1 %3655 }
 0x6b8   : > { %3694 = vst [vmem:[#allocation3 + $0xc0] sm:$0xf0] %v3690_v31  ;;  %v3652_v6 = vpop.permute.xlu0 %3651 }
 0x6b9   : > { %v3682_v26 = vsel %vm441_vm4, %v3681_v27, %v3652_v6 }
 0x6ba   : > { %v3664_v30 = vpop.permute.xlu1 %3663  ;;  %v3683_v4 = vsel %vm443_vm5, %v3682_v26, %v3656_v55 }
 0x6bc   : > { %v3660_v42 = vpop.permute.xlu0 %3659 }
 0x6bd   : > { %v3684_v44 = vsel %vm445_vm6, %v3683_v4, %v3660_v42 }
 0x6be   : > { %v3672_v62 = vpop.permute.xlu1 %3671  ;;  %v3685_v61 = vsel %vm447_vm7, %v3684_v44, %v3664_v30 }
 0x6c0   : > { %v3668_v38 = vpop.permute.xlu0 %3667 }
 0x6c1   : > { %v3686_v15 = vsel %vm449_vm8, %v3685_v61, %v3668_v38 }
 0x6c2   : > { %v3687_v28 = vsel %vm451_vm9, %v3686_v15, %v3672_v62  ;;  %v3715_v0 = vpop.permute.xlu1 %3714 }
 0x6c3   : > { %v3691_v17 = vrot.slane %v3687_v28, 4 }
 0x6c4   : > { %v3713_v16 = vpop.permute.xlu0 %3712 }
 0x6c5   : > { %3695 = vst [vmem:[#allocation3 + $0x28] sm:$0xf0] %v3691_v17 }
 0x6c6   : > { %v3719_v54 = vpop.permute.xlu1 %3718 }
 0x6c8   : > { %v3717_v46 = vpop.permute.xlu0 %3716 }
 0x6ca   : > { %v3723_v48 = vpop.permute.xlu1 %3722 }
 0x6cb   : > { %v3804_v7 = vcombine.low %v3715_v0, %v3723_v48  ;;  %v3805_v41 = vcombine.high %v3715_v0, %v3723_v48 }
 0x6cc   : > { %v3721_v51 = vpop.permute.xlu0 %3720 }
 0x6cd   : > { %v3736_v21 = vcombine.low %v3713_v16, %v3721_v51  ;;  %v3737_v5 = vcombine.high %v3713_v16, %v3721_v51  ;;  %v3812_v57 = vrot.slane %v3804_v7, %v12343_v3  ;;  %v3819_v2 = vrot.slane %v3805_v41, %v12343_v3 }
 0x6ce   : > { %v3727_v33 = vpop.permute.xlu1 %3726 }
 0x6cf   : > { %v3744_v37 = vrot.slane %v3736_v21, %v12343_v3  ;;  %v3820_v52 = vcombine.low %v3719_v54, %v3727_v33  ;;  %v3751_v45 = vrot.slane %v3737_v5, %v12343_v3  ;;  %v3821_v1 = vcombine.high %v3719_v54, %v3727_v33 }
 0x6d0   : > { %v3725_v13 = vpop.permute.xlu0 %3724 }
 0x6d1   : > { %v3752_v32 = vcombine.low %v3717_v46, %v3725_v13  ;;  %v3753_v53 = vcombine.high %v3717_v46, %v3725_v13  ;;  %v3828_v8 = vrot.slane %v3820_v52, %v12343_v3  ;;  %v3835_v50 = vrot.slane %v3821_v1, %v12343_v3 }
 0x6d3   : > { %v3760_v22 = vrot.slane %v3752_v32, %v12343_v3  ;;  %v3767_v36 = vrot.slane %v3753_v53, %v12343_v3  ;;  %v3836_v47 = vcombine.low %v3812_v57, %v3828_v8  ;;  %v3837_v56 = vcombine.high %v3812_v57, %v3828_v8 }
 0x6d4   : > { %v3852_v31 = vcombine.low %v3819_v2, %v3835_v50  ;;  %v3853_v26 = vcombine.high %v3819_v2, %v3835_v50 }
 0x6d5   : > { %v3768_v34 = vcombine.low %v3744_v37, %v3760_v22  ;;  %v3769_v49 = vcombine.high %v3744_v37, %v3760_v22  ;;  %v3784_v14 = vcombine.low %v3751_v45, %v3767_v36  ;;  %v3785_v60 = vcombine.high %v3751_v45, %v3767_v36 }
 0x6d6   : > { %v3844_v9 = vrot.slane %v3836_v47, %v8843_v12  ;;  %v3851_v27 = vrot.slane %v3837_v56, %v8843_v12  ;;  %v3860_v4 = vrot.slane %v3852_v31, %v8843_v12  ;;  %v3867_v44 = vrot.slane %v3853_v26, %v8843_v12 }
 0x6d7   : > { %v3783_v39 = vrot.slane %v3769_v49, %v8843_v12  ;;  %v3776_v20 = vrot.slane %v3768_v34, %v8843_v12  ;;  %v3792_v40 = vrot.slane %v3784_v14, %v8843_v12  ;;  %v3799_v59 = vrot.slane %v3785_v60, %v8843_v12 }
 0x6d8   : > { %v3868_v55 = vcombine.high %v3844_v9, %v12334_v43  ;;  %v3869_v30 = vcombine.high %v3851_v27, %v12334_v43  ;;  %v3870_v42 = vcombine.high %v3860_v4, %v12334_v43  ;;  %v3871_v62 = vcombine.high %v3867_v44, %v12334_v43 }
 0x6d9   : > { %3877 = vrot.lane.b32.xlu1 %v3783_v39, %s8676_s24  ;;  %v3800_v63 = vcombine.high %v3776_v20, %v12334_v43  ;;  %v3801_v19 = vcombine.high %v3783_v39, %v12334_v43  ;;  %v3802_v58 = vcombine.high %v3792_v40, %v12334_v43  ;;  %v3803_v6 = vcombine.high %v3799_v59, %v12334_v43 }
 0x6db   : > { %3873 = vrot.lane.b32.xlu0 %v3800_v63, %s8679_s27 }
 0x6dd   : > { %3885 = vrot.lane.b32.xlu1 %v3792_v40, %s8677_s25 }
 0x6df   : > { %3881 = vrot.lane.b32.xlu0 %v3801_v19, %s8680_s28 }
 0x6e1   : > { %3893 = vrot.lane.b32.xlu1 %v3799_v59, %s8678_s26 }
 0x6e3   : > { %3889 = vrot.lane.b32.xlu0 %v3802_v58, %s8681_s29 }
 0x6e5   : > { %3901 = vrot.lane.b32.xlu1 %v3868_v55, %s8679_s27 }
 0x6e7   : > { %3897 = vrot.lane.b32.xlu0 %v3803_v6, %s8682_s30 }
 0x6e9   : > { %3909 = vrot.lane.b32.xlu1 %v3869_v30, %s8680_s28 }
 0x6eb   : > { %3905 = vrot.lane.b32.xlu0 %v3851_v27, %s8676_s24 }
 0x6ed   : > { %3917 = vrot.lane.b32.xlu1 %v3870_v42, %s8681_s29 }
 0x6ef   : > { %3913 = vrot.lane.b32.xlu0 %v3860_v4, %s8677_s25 }
 0x6f1   : > { %3925 = vrot.lane.b32.xlu1 %v3871_v62, %s8682_s30 }
 0x6f3   : > { %3921 = vrot.lane.b32.xlu0 %v3867_v44, %s8678_s26 }
 0x6f5   : > { %3962 = vrot.lane.b32.xlu1 %v10000_v11, %s8685_s6 }
 0x6f7   : > { %3960 = vrot.lane.b32.xlu0 %v9971_v23, %s8685_s6 }
 0x6f9   : > { %3966 = vrot.lane.b32.xlu1 %v9991_v25, %s8685_s6 }
 0x6fb   : > { %3964 = vrot.lane.b32.xlu0 %v9963_v29, %s8685_s6 }
 0x6fd   : > { %3970 = vrot.lane.b32.xlu1 %v9993_v10, %s8685_s6 }
 0x6ff   : > { %3968 = vrot.lane.b32.xlu0 %v9965_v24, %s8685_s6 }
 0x701   : > { %3974 = vrot.lane.b32.xlu1 %v9986_v18, %s8685_s6 }
 0x703   : > { %3972 = vrot.lane.b32.xlu0 %v9957_v35, %s8685_s6 }
 0x74b   : > { %v3878_v61 = vpop.permute.xlu1 %3877 }
 0x74d   : > { %v3874_v38 = vpop.permute.xlu0 %3873 }
 0x74e   : > { %v3928_v15 = vsel %vm439_vm3, %v3776_v20, %v3874_v38 }
 0x74f   : > { %v3886_v28 = vpop.permute.xlu1 %3885  ;;  %v3929_v0 = vsel %vm441_vm4, %v3928_v15, %v3878_v61 }
 0x751   : > { %v3882_v17 = vpop.permute.xlu0 %3881 }
 0x752   : > { %v3930_v16 = vsel %vm443_vm5, %v3929_v0, %v3882_v17 }
 0x753   : > { %v3894_v54 = vpop.permute.xlu1 %3893  ;;  %v3931_v46 = vsel %vm445_vm6, %v3930_v16, %v3886_v28 }
 0x755   : > { %v3890_v48 = vpop.permute.xlu0 %3889 }
 0x756   : > { %v3932_v51 = vsel %vm447_vm7, %v3931_v46, %v3890_v48 }
 0x757   : > { %v3902_v21 = vpop.permute.xlu1 %3901  ;;  %v3933_v13 = vsel %vm449_vm8, %v3932_v51, %v3894_v54 }
 0x758   : > { %v3935_v5 = vsel %vm439_vm3, %v3844_v9, %v3902_v21 }
 0x759   : > { %v3898_v33 = vpop.permute.xlu0 %3897 }
 0x75a   : > { %v3934_v32 = vsel %vm451_vm9, %v3933_v13, %v3898_v33 }
 0x75b   : > { %3942 = vst [vmem:[#allocation3 + $0xf8] sm:$0xf] %v3934_v32  ;;  %v3910_v53 = vpop.permute.xlu1 %3909 }
 0x75d   : > { %v3906_v37 = vpop.permute.xlu0 %3905 }
 0x75e   : > { %v3936_v52 = vsel %vm441_vm4, %v3935_v5, %v3906_v37 }
 0x75f   : > { %v3918_v22 = vpop.permute.xlu1 %3917  ;;  %v3937_v36 = vsel %vm443_vm5, %v3936_v52, %v3910_v53 }
 0x761   : > { %v3914_v7 = vpop.permute.xlu0 %3913 }
 0x762   : > { %v3938_v45 = vsel %vm445_vm6, %v3937_v36, %v3914_v7 }
 0x763   : > { %v3926_v34 = vpop.permute.xlu1 %3925  ;;  %v3939_v49 = vsel %vm447_vm7, %v3938_v45, %v3918_v22 }
 0x765   : > { %v3922_v8 = vpop.permute.xlu0 %3921 }
 0x766   : > { %v3940_v14 = vsel %vm449_vm8, %v3939_v49, %v3922_v8 }
 0x767   : > { %v3941_v39 = vsel %vm451_vm9, %v3940_v14, %v3926_v34  ;;  %v3963_v20 = vpop.permute.xlu1 %3962 }
 0x768   : > { %3943 = vst [vmem:[#allocation3 + $0xb8] sm:$0xf] %v3941_v39 }
 0x769   : > { %v3961_v57 = vpop.permute.xlu0 %3960 }
 0x76b   : > { %v3967_v63 = vpop.permute.xlu1 %3966 }
 0x76d   : > { %v3965_v1 = vpop.permute.xlu0 %3964 }
 0x76f   : > { %v3971_v47 = vpop.permute.xlu1 %3970 }
 0x770   : > { %v4052_v55 = vcombine.low %v3963_v20, %v3971_v47  ;;  %v4053_v17 = vcombine.high %v3963_v20, %v3971_v47 }
 0x771   : > { %v3969_v60 = vpop.permute.xlu0 %3968 }
 0x772   : > { %v3984_v40 = vcombine.low %v3961_v57, %v3969_v60  ;;  %v3985_v59 = vcombine.high %v3961_v57, %v3969_v60  ;;  %v4060_v62 = vrot.slane %v4052_v55, %v12343_v3  ;;  %v4067_v21 = vrot.slane %v4053_v17, %v12343_v3 }
 0x773   : > { %v3975_v19 = vpop.permute.xlu1 %3974 }
 0x774   : > { %v3992_v9 = vrot.slane %v3984_v40, %v12343_v3  ;;  %v4068_v2 = vcombine.low %v3967_v63, %v3975_v19  ;;  %v3999_v27 = vrot.slane %v3985_v59, %v12343_v3  ;;  %v4069_v38 = vcombine.high %v3967_v63, %v3975_v19 }
 0x775   : > { %v3973_v41 = vpop.permute.xlu0 %3972 }
 0x776   : > { %v4000_v50 = vcombine.low %v3965_v1, %v3973_v41  ;;  %v4001_v56 = vcombine.high %v3965_v1, %v3973_v41  ;;  %v4076_v30 = vrot.slane %v4068_v2, %v12343_v3  ;;  %v4083_v54 = vrot.slane %v4069_v38, %v12343_v3 }
 0x778   : > { %v4008_v58 = vrot.slane %v4000_v50, %v12343_v3  ;;  %v4015_v31 = vrot.slane %v4001_v56, %v12343_v3  ;;  %v4084_v15 = vcombine.low %v4060_v62, %v4076_v30  ;;  %v4085_v46 = vcombine.high %v4060_v62, %v4076_v30 }
 0x779   : > { %v4100_v33 = vcombine.low %v4067_v21, %v4083_v54  ;;  %v4101_v37 = vcombine.high %v4067_v21, %v4083_v54 }
 0x77a   : > { %v4016_v6 = vcombine.low %v3992_v9, %v4008_v58  ;;  %v4017_v26 = vcombine.high %v3992_v9, %v4008_v58  ;;  %v4032_v4 = vcombine.low %v3999_v27, %v4015_v31  ;;  %v4033_v28 = vcombine.high %v3999_v27, %v4015_v31 }
 0x77b   : > { %v4092_v51 = vrot.slane %v4084_v15, %v8843_v12  ;;  %v4099_v53 = vrot.slane %v4085_v46, %v8843_v12  ;;  %v4108_v22 = vrot.slane %v4100_v33, %v8843_v12  ;;  %v4115_v7 = vrot.slane %v4101_v37, %v8843_v12 }
 0x77c   : > { %v4031_v42 = vrot.slane %v4017_v26, %v8843_v12  ;;  %v4024_v44 = vrot.slane %v4016_v6, %v8843_v12  ;;  %v4040_v0 = vrot.slane %v4032_v4, %v8843_v12  ;;  %v4047_v48 = vrot.slane %v4033_v28, %v8843_v12 }
 0x77d   : > { %v4116_v32 = vcombine.high %v4092_v51, %v12334_v43  ;;  %v4117_v52 = vcombine.high %v4099_v53, %v12334_v43  ;;  %v4118_v36 = vcombine.high %v4108_v22, %v12334_v43  ;;  %v4119_v45 = vcombine.high %v4115_v7, %v12334_v43 }
 0x77e   : > { %4125 = vrot.lane.b32.xlu1 %v4031_v42, %s8676_s24  ;;  %v4048_v61 = vcombine.high %v4024_v44, %v12334_v43  ;;  %v4049_v16 = vcombine.high %v4031_v42, %v12334_v43  ;;  %v4050_v13 = vcombine.high %v4040_v0, %v12334_v43  ;;  %v4051_v5 = vcombine.high %v4047_v48, %v12334_v43 }
 0x780   : > { %4121 = vrot.lane.b32.xlu0 %v4048_v61, %s8679_s27 }
 0x782   : > { %4133 = vrot.lane.b32.xlu1 %v4040_v0, %s8677_s25 }
 0x784   : > { %4129 = vrot.lane.b32.xlu0 %v4049_v16, %s8680_s28 }
 0x786   : > { %4141 = vrot.lane.b32.xlu1 %v4047_v48, %s8678_s26 }
 0x788   : > { %4137 = vrot.lane.b32.xlu0 %v4050_v13, %s8681_s29 }
 0x78a   : > { %4149 = vrot.lane.b32.xlu1 %v4116_v32, %s8679_s27 }
 0x78c   : > { %4145 = vrot.lane.b32.xlu0 %v4051_v5, %s8682_s30 }
 0x78e   : > { %4157 = vrot.lane.b32.xlu1 %v4117_v52, %s8680_s28 }
 0x790   : > { %4153 = vrot.lane.b32.xlu0 %v4099_v53, %s8676_s24 }
 0x792   : > { %4165 = vrot.lane.b32.xlu1 %v4118_v36, %s8681_s29 }
 0x794   : > { %4161 = vrot.lane.b32.xlu0 %v4108_v22, %s8677_s25 }
 0x796   : > { %4173 = vrot.lane.b32.xlu1 %v4119_v45, %s8682_s30 }
 0x798   : > { %4169 = vrot.lane.b32.xlu0 %v4115_v7, %s8678_s26 }
 0x79a   : > { %4216 = vrot.lane.b32.xlu1 %v10000_v11, %s8670_s20 }
 0x79c   : > { %4214 = vrot.lane.b32.xlu0 %v9971_v23, %s8670_s20 }
 0x79e   : > { %4220 = vrot.lane.b32.xlu1 %v9991_v25, %s8670_s20 }
 0x7a0   : > { %4218 = vrot.lane.b32.xlu0 %v9963_v29, %s8670_s20 }
 0x7a2   : > { %4224 = vrot.lane.b32.xlu1 %v9993_v10, %s8670_s20 }
 0x7a4   : > { %4222 = vrot.lane.b32.xlu0 %v9965_v24, %s8670_s20 }
 0x7a6   : > { %4228 = vrot.lane.b32.xlu1 %v9986_v18, %s8670_s20 }
 0x7a8   : > { %4226 = vrot.lane.b32.xlu0 %v9957_v35, %s8670_s20 }
 0x7f0   : > { %v4126_v34 = vpop.permute.xlu1 %4125 }
 0x7f2   : > { %v4122_v23 = vpop.permute.xlu0 %4121 }
 0x7f3   : > { %v4176_v49 = vsel %vm439_vm3, %v4024_v44, %v4122_v23 }
 0x7f4   : > { %v4134_v8 = vpop.permute.xlu1 %4133  ;;  %v4177_v14 = vsel %vm441_vm4, %v4176_v49, %v4126_v34 }
 0x7f6   : > { %v4130_v29 = vpop.permute.xlu0 %4129 }
 0x7f7   : > { %v4178_v39 = vsel %vm443_vm5, %v4177_v14, %v4130_v29 }
 0x7f8   : > { %v4142_v20 = vpop.permute.xlu1 %4141  ;;  %v4179_v57 = vsel %vm445_vm6, %v4178_v39, %v4134_v8 }
 0x7fa   : > { %v4138_v24 = vpop.permute.xlu0 %4137 }
 0x7fb   : > { %v4180_v63 = vsel %vm447_vm7, %v4179_v57, %v4138_v24 }
 0x7fc   : > { %v4150_v1 = vpop.permute.xlu1 %4149  ;;  %v4181_v47 = vsel %vm449_vm8, %v4180_v63, %v4142_v20 }
 0x7fd   : > { %v4183_v19 = vsel %vm439_vm3, %v4092_v51, %v4150_v1 }
 0x7fe   : > { %v4146_v35 = vpop.permute.xlu0 %4145 }
 0x7ff   : > { %v4182_v60 = vsel %vm451_vm9, %v4181_v47, %v4146_v35 }
 0x800   : > { %v4192_v40 = vrot.slane %v4182_v60, 4  ;;  %v4158_v41 = vpop.permute.xlu1 %4157 }
 0x802   : > { %4196 = vst [vmem:[#allocation3 + $0xf8] sm:$0xf0] %v4192_v40  ;;  %v4154_v50 = vpop.permute.xlu0 %4153 }
 0x803   : > { %v4184_v56 = vsel %vm441_vm4, %v4183_v19, %v4154_v50 }
 0x804   : > { %v4166_v59 = vpop.permute.xlu1 %4165  ;;  %v4185_v9 = vsel %vm443_vm5, %v4184_v56, %v4158_v41 }
 0x806   : > { %v4162_v2 = vpop.permute.xlu0 %4161 }
 0x807   : > { %v4186_v58 = vsel %vm445_vm6, %v4185_v9, %v4162_v2  ;;  %v10343_v9 = vld [vmem:[#allocation2 + $0x7] sm:$0xff] }
 0x808   : > { %v4174_v31 = vpop.permute.xlu1 %4173  ;;  %v4187_v55 = vsel %vm447_vm7, %v4186_v58, %v4166_v59  ;;  %v10349_v2 = vld [vmem:[#allocation2 + $0x27] sm:$0xff] }
 0x809   : > { %v10355_v58 = vld [vmem:[#allocation2 + $0x47] sm:$0xff] }
 0x80a   : > { %v4170_v27 = vpop.permute.xlu0 %4169 }
 0x80b   : > { %v4188_v6 = vsel %vm449_vm8, %v4187_v55, %v4170_v27 }
 0x80c   : > { %v4189_v26 = vsel %vm451_vm9, %v4188_v6, %v4174_v31  ;;  %v4217_v30 = vpop.permute.xlu1 %4216 }
 0x80d   : > { %v4193_v4 = vrot.slane %v4189_v26, 4 }
 0x80e   : > { %v4215_v42 = vpop.permute.xlu0 %4214 }
 0x80f   : > { %4197 = vst [vmem:[#allocation3 + $0xb8] sm:$0xf0] %v4193_v4 }
 0x810   : > { %v4221_v44 = vpop.permute.xlu1 %4220 }
 0x812   : > { %v4219_v62 = vpop.permute.xlu0 %4218 }
 0x814   : > { %v4225_v61 = vpop.permute.xlu1 %4224 }
 0x815   : > { %v4306_v13 = vcombine.low %v4217_v30, %v4225_v61  ;;  %v4307_v8 = vcombine.high %v4217_v30, %v4225_v61 }
 0x816   : > { %v4223_v38 = vpop.permute.xlu0 %4222 }
 0x817   : > { %v4238_v15 = vcombine.low %v4215_v42, %v4223_v38  ;;  %v4239_v54 = vcombine.high %v4215_v42, %v4223_v38  ;;  %v4314_v36 = vrot.slane %v4306_v13, %v12343_v3  ;;  %v4321_v24 = vrot.slane %v4307_v8, %v12343_v3 }
 0x818   : > { %v4229_v0 = vpop.permute.xlu1 %4228 }
 0x819   : > { %v4246_v46 = vrot.slane %v4238_v15, %v12343_v3  ;;  %v4322_v48 = vcombine.low %v4221_v44, %v4229_v0  ;;  %v4253_v33 = vrot.slane %v4239_v54, %v12343_v3  ;;  %v4323_v45 = vcombine.high %v4221_v44, %v4229_v0 }
 0x81a   : > { %v4227_v28 = vpop.permute.xlu0 %4226 }
 0x81b   : > { %v4254_v17 = vcombine.low %v4219_v62, %v4227_v28  ;;  %v4255_v16 = vcombine.high %v4219_v62, %v4227_v28  ;;  %v4330_v5 = vrot.slane %v4322_v48, %v12343_v3  ;;  %v4337_v29 = vrot.slane %v4323_v45, %v12343_v3 }
 0x81d   : > { %v4262_v51 = vrot.slane %v4254_v17, %v12343_v3  ;;  %v4269_v21 = vrot.slane %v4255_v16, %v12343_v3  ;;  %v4338_v34 = vcombine.low %v4314_v36, %v4330_v5  ;;  %v4339_v39 = vcombine.high %v4314_v36, %v4330_v5 }
 0x81e   : > { %v4354_v1 = vcombine.low %v4321_v24, %v4337_v29  ;;  %v4355_v40 = vcombine.high %v4321_v24, %v4337_v29 }
 0x81f   : > { %v4270_v32 = vcombine.low %v4246_v46, %v4262_v51  ;;  %v4271_v53 = vcombine.high %v4246_v46, %v4262_v51  ;;  %v4286_v37 = vcombine.low %v4253_v33, %v4269_v21  ;;  %v4287_v23 = vcombine.high %v4253_v33, %v4269_v21 }
 0x820   : > { %v4346_v57 = vrot.slane %v4338_v34, %v8843_v12  ;;  %v4353_v35 = vrot.slane %v4339_v39, %v8843_v12  ;;  %v4362_v19 = vrot.slane %v4354_v1, %v8843_v12  ;;  %v4369_v56 = vrot.slane %v4355_v40, %v8843_v12 }
 0x821   : > { %v4285_v52 = vrot.slane %v4271_v53, %v8843_v12  ;;  %v4278_v22 = vrot.slane %v4270_v32, %v8843_v12  ;;  %v4294_v49 = vrot.slane %v4286_v37, %v8843_v12  ;;  %v4301_v20 = vrot.slane %v4287_v23, %v8843_v12 }
 0x822   : > { %v4370_v47 = vcombine.high %v4346_v57, %v12334_v43  ;;  %v4371_v41 = vcombine.high %v4353_v35, %v12334_v43  ;;  %v4372_v50 = vcombine.high %v4362_v19, %v12334_v43  ;;  %v4373_v59 = vcombine.high %v4369_v56, %v12334_v43 }
 0x823   : > { %4379 = vrot.lane.b32.xlu1 %v4285_v52, %s8676_s24  ;;  %v4302_v7 = vcombine.high %v4278_v22, %v12334_v43  ;;  %v4303_v14 = vcombine.high %v4285_v52, %v12334_v43  ;;  %v4304_v63 = vcombine.high %v4294_v49, %v12334_v43  ;;  %v4305_v60 = vcombine.high %v4301_v20, %v12334_v43 }
 0x825   : > { %4375 = vrot.lane.b32.xlu0 %v4302_v7, %s8679_s27 }
 0x827   : > { %4387 = vrot.lane.b32.xlu1 %v4294_v49, %s8677_s25 }
 0x829   : > { %4383 = vrot.lane.b32.xlu0 %v4303_v14, %s8680_s28 }
 0x82b   : > { %4395 = vrot.lane.b32.xlu1 %v4301_v20, %s8678_s26 }
 0x82d   : > { %4391 = vrot.lane.b32.xlu0 %v4304_v63, %s8681_s29 }
 0x82f   : > { %4403 = vrot.lane.b32.xlu1 %v4370_v47, %s8679_s27 }
 0x831   : > { %4399 = vrot.lane.b32.xlu0 %v4305_v60, %s8682_s30 }
 0x833   : > { %4411 = vrot.lane.b32.xlu1 %v4371_v41, %s8680_s28 }
 0x835   : > { %4407 = vrot.lane.b32.xlu0 %v4353_v35, %s8676_s24 }
 0x837   : > { %4419 = vrot.lane.b32.xlu1 %v4372_v50, %s8681_s29 }
 0x839   : > { %4415 = vrot.lane.b32.xlu0 %v4362_v19, %s8677_s25 }
 0x83b   : > { %4427 = vrot.lane.b32.xlu1 %v4373_v59, %s8682_s30 }
 0x83d   : > { %4423 = vrot.lane.b32.xlu0 %v4369_v56, %s8678_s26 }
 0x83f   : > { %4464 = vrot.lane.b32.xlu1 %v10000_v11, %s8686_s7  ;;  %v10361_v11 = vld [vmem:[#allocation2 + $0x67] sm:$0xff] }
 0x841   : > { %4462 = vrot.lane.b32.xlu0 %v10343_v9, %s8686_s7 }
 0x843   : > { %4468 = vrot.lane.b32.xlu1 %v9991_v25, %s8686_s7 }
 0x845   : > { %4466 = vrot.lane.b32.xlu0 %v10349_v2, %s8686_s7 }
 0x847   : > { %4472 = vrot.lane.b32.xlu1 %v9993_v10, %s8686_s7 }
 0x849   : > { %4470 = vrot.lane.b32.xlu0 %v10355_v58, %s8686_s7 }
 0x84b   : > { %4476 = vrot.lane.b32.xlu1 %v9986_v18, %s8686_s7 }
 0x84d   : > { %4474 = vrot.lane.b32.xlu0 %v10361_v11, %s8686_s7 }
 0x895   : > { %v4380_v25 = vpop.permute.xlu1 %4379 }
 0x897   : > { %v4376_v31 = vpop.permute.xlu0 %4375 }
 0x898   : > { %v4430_v55 = vsel %vm439_vm3, %v4278_v22, %v4376_v31 }
 0x899   : > { %v4388_v27 = vpop.permute.xlu1 %4387  ;;  %v4431_v10 = vsel %vm441_vm4, %v4430_v55, %v4380_v25 }
 0x89b   : > { %v4384_v6 = vpop.permute.xlu0 %4383 }
 0x89c   : > { %v4432_v26 = vsel %vm443_vm5, %v4431_v10, %v4384_v6 }
 0x89d   : > { %v4396_v30 = vpop.permute.xlu1 %4395  ;;  %v4433_v4 = vsel %vm445_vm6, %v4432_v26, %v4388_v27 }
 0x89f   : > { %v4392_v42 = vpop.permute.xlu0 %4391 }
 0x8a0   : > { %v4434_v18 = vsel %vm447_vm7, %v4433_v4, %v4392_v42 }
 0x8a1   : > { %v4404_v44 = vpop.permute.xlu1 %4403  ;;  %v4435_v62 = vsel %vm449_vm8, %v4434_v18, %v4396_v30 }
 0x8a2   : > { %v4437_v28 = vsel %vm439_vm3, %v4346_v57, %v4404_v44 }
 0x8a3   : > { %v4400_v61 = vpop.permute.xlu0 %4399 }
 0x8a4   : > { %v4436_v38 = vsel %vm451_vm9, %v4435_v62, %v4400_v61 }
 0x8a5   : > { %4444 = vst [vmem:[#allocation3 + $0x40] sm:$0xf] %v4436_v38  ;;  %v4412_v15 = vpop.permute.xlu1 %4411 }
 0x8a7   : > { %v4408_v0 = vpop.permute.xlu0 %4407 }
 0x8a8   : > { %v4438_v17 = vsel %vm441_vm4, %v4437_v28, %v4408_v0 }
 0x8a9   : > { %v4420_v16 = vpop.permute.xlu1 %4419  ;;  %v4439_v54 = vsel %vm443_vm5, %v4438_v17, %v4412_v15 }
 0x8ab   : > { %v4416_v46 = vpop.permute.xlu0 %4415 }
 0x8ac   : > { %v4440_v48 = vsel %vm445_vm6, %v4439_v54, %v4416_v46  ;;  %v10423_v54 = vld [vmem:[#allocation2 + $0x2f] sm:$0xff] }
 0x8ad   : > { %v4428_v51 = vpop.permute.xlu1 %4427  ;;  %v4441_v21 = vsel %vm447_vm7, %v4440_v48, %v4420_v16  ;;  %v10417_v16 = vld [vmem:[#allocation2 + $0xf] sm:$0xff] }
 0x8ae   : > { %v10429_v46 = vld [vmem:[#allocation2 + $0x4f] sm:$0xff] }
 0x8af   : > { %v4424_v13 = vpop.permute.xlu0 %4423  ;;  %v10435_v48 = vld [vmem:[#allocation2 + $0x6f] sm:$0xff] }
 0x8b0   : > { %v4442_v33 = vsel %vm449_vm8, %v4441_v21, %v4424_v13 }
 0x8b1   : > { %v4443_v32 = vsel %vm451_vm9, %v4442_v33, %v4428_v51  ;;  %v4465_v53 = vpop.permute.xlu1 %4464 }
 0x8b2   : > { %4445 = vst [vmem:[#allocation3 + $0x90] sm:$0xf] %v4443_v32 }
 0x8b3   : > { %v4463_v5 = vpop.permute.xlu0 %4462 }
 0x8b5   : > { %v4469_v37 = vpop.permute.xlu1 %4468 }
 0x8b7   : > { %v4467_v52 = vpop.permute.xlu0 %4466 }
 0x8b9   : > { %v4473_v22 = vpop.permute.xlu1 %4472 }
 0x8ba   : > { %v4554_v57 = vcombine.low %v4465_v53, %v4473_v22  ;;  %v4555_v31 = vcombine.high %v4465_v53, %v4473_v22 }
 0x8bb   : > { %v4471_v36 = vpop.permute.xlu0 %4470 }
 0x8bc   : > { %v4486_v7 = vcombine.low %v4463_v5, %v4471_v36  ;;  %v4487_v8 = vcombine.high %v4463_v5, %v4471_v36  ;;  %v4562_v41 = vrot.slane %v4554_v57, %v12343_v3  ;;  %v4569_v30 = vrot.slane %v4555_v31, %v12343_v3 }
 0x8bd   : > { %v4477_v34 = vpop.permute.xlu1 %4476 }
 0x8be   : > { %v4494_v14 = vrot.slane %v4486_v7, %v12343_v3  ;;  %v4570_v29 = vcombine.low %v4469_v37, %v4477_v34  ;;  %v4501_v24 = vrot.slane %v4487_v8, %v12343_v3  ;;  %v4571_v50 = vcombine.high %v4469_v37, %v4477_v34 }
 0x8bf   : > { %v4475_v45 = vpop.permute.xlu0 %4474 }
 0x8c0   : > { %v4502_v23 = vcombine.low %v4467_v52, %v4475_v45  ;;  %v4503_v49 = vcombine.high %v4467_v52, %v4475_v45  ;;  %v4578_v47 = vrot.slane %v4570_v29, %v12343_v3  ;;  %v4585_v27 = vrot.slane %v4571_v50, %v12343_v3 }
 0x8c2   : > { %v4510_v39 = vrot.slane %v4502_v23, %v12343_v3  ;;  %v4517_v20 = vrot.slane %v4503_v49, %v12343_v3  ;;  %v4586_v56 = vcombine.low %v4562_v41, %v4578_v47  ;;  %v4587_v10 = vcombine.high %v4562_v41, %v4578_v47 }
 0x8c3   : > { %v4602_v42 = vcombine.low %v4569_v30, %v4585_v27  ;;  %v4603_v61 = vcombine.high %v4569_v30, %v4585_v27 }
 0x8c4   : > { %v4518_v63 = vcombine.low %v4494_v14, %v4510_v39  ;;  %v4519_v1 = vcombine.high %v4494_v14, %v4510_v39  ;;  %v4534_v35 = vcombine.low %v4501_v24, %v4517_v20  ;;  %v4535_v59 = vcombine.high %v4501_v24, %v4517_v20 }
 0x8c5   : > { %v4594_v26 = vrot.slane %v4586_v56, %v8843_v12  ;;  %v4601_v44 = vrot.slane %v4587_v10, %v8843_v12  ;;  %v4610_v15 = vrot.slane %v4602_v42, %v8843_v12  ;;  %v4617_v0 = vrot.slane %v4603_v61, %v8843_v12 }
 0x8c6   : > { %v4533_v60 = vrot.slane %v4519_v1, %v8843_v12  ;;  %v4526_v40 = vrot.slane %v4518_v63, %v8843_v12  ;;  %v4542_v25 = vrot.slane %v4534_v35, %v8843_v12  ;;  %v4549_v6 = vrot.slane %v4535_v59, %v8843_v12 }
 0x8c7   : > { %v4618_v18 = vcombine.high %v4594_v26, %v12334_v43  ;;  %v4619_v38 = vcombine.high %v4601_v44, %v12334_v43  ;;  %v4620_v28 = vcombine.high %v4610_v15, %v12334_v43  ;;  %v4621_v17 = vcombine.high %v4617_v0, %v12334_v43 }
 0x8c8   : > { %4627 = vrot.lane.b32.xlu1 %v4533_v60, %s8676_s24  ;;  %v4550_v19 = vcombine.high %v4526_v40, %v12334_v43  ;;  %v4551_v55 = vcombine.high %v4533_v60, %v12334_v43  ;;  %v4552_v4 = vcombine.high %v4542_v25, %v12334_v43  ;;  %v4553_v62 = vcombine.high %v4549_v6, %v12334_v43 }
 0x8ca   : > { %4623 = vrot.lane.b32.xlu0 %v4550_v19, %s8679_s27 }
 0x8cc   : > { %4635 = vrot.lane.b32.xlu1 %v4542_v25, %s8677_s25 }
 0x8ce   : > { %4631 = vrot.lane.b32.xlu0 %v4551_v55, %s8680_s28 }
 0x8d0   : > { %4643 = vrot.lane.b32.xlu1 %v4549_v6, %s8678_s26 }
 0x8d2   : > { %4639 = vrot.lane.b32.xlu0 %v4552_v4, %s8681_s29 }
 0x8d4   : > { %4651 = vrot.lane.b32.xlu1 %v4618_v18, %s8679_s27 }
 0x8d6   : > { %4647 = vrot.lane.b32.xlu0 %v4553_v62, %s8682_s30 }
 0x8d8   : > { %4659 = vrot.lane.b32.xlu1 %v4619_v38, %s8680_s28 }
 0x8da   : > { %4655 = vrot.lane.b32.xlu0 %v4601_v44, %s8676_s24 }
 0x8dc   : > { %4667 = vrot.lane.b32.xlu1 %v4620_v28, %s8681_s29 }
 0x8de   : > { %4663 = vrot.lane.b32.xlu0 %v4610_v15, %s8677_s25 }
 0x8e0   : > { %4675 = vrot.lane.b32.xlu1 %v4621_v17, %s8682_s30 }
 0x8e2   : > { %4671 = vrot.lane.b32.xlu0 %v4617_v0, %s8678_s26 }
 0x8e4   : > { %4718 = vrot.lane.b32.xlu1 %v10417_v16, %s8684_s5 }
 0x8e6   : > { %4716 = vrot.lane.b32.xlu0 %v10343_v9, %s8684_s5 }
 0x8e8   : > { %4722 = vrot.lane.b32.xlu1 %v10423_v54, %s8684_s5 }
 0x8ea   : > { %4720 = vrot.lane.b32.xlu0 %v10349_v2, %s8684_s5 }
 0x8ec   : > { %4726 = vrot.lane.b32.xlu1 %v10429_v46, %s8684_s5 }
 0x8ee   : > { %4724 = vrot.lane.b32.xlu0 %v10355_v58, %s8684_s5 }
 0x8f0   : > { %4730 = vrot.lane.b32.xlu1 %v10435_v48, %s8684_s5 }
 0x8f2   : > { %4728 = vrot.lane.b32.xlu0 %v10361_v11, %s8684_s5 }
 0x93a   : > { %v4628_v51 = vpop.permute.xlu1 %4627 }
 0x93c   : > { %v4624_v21 = vpop.permute.xlu0 %4623 }
 0x93d   : > { %v4678_v13 = vsel %vm439_vm3, %v4526_v40, %v4624_v21 }
 0x93e   : > { %v4636_v33 = vpop.permute.xlu1 %4635  ;;  %v4679_v32 = vsel %vm441_vm4, %v4678_v13, %v4628_v51 }
 0x940   : > { %v4632_v53 = vpop.permute.xlu0 %4631 }
 0x941   : > { %v4680_v5 = vsel %vm443_vm5, %v4679_v32, %v4632_v53 }
 0x942   : > { %v4644_v37 = vpop.permute.xlu1 %4643  ;;  %v4681_v52 = vsel %vm445_vm6, %v4680_v5, %v4636_v33 }
 0x944   : > { %v4640_v22 = vpop.permute.xlu0 %4639 }
 0x945   : > { %v4682_v36 = vsel %vm447_vm7, %v4681_v52, %v4640_v22 }
 0x946   : > { %v4652_v7 = vpop.permute.xlu1 %4651  ;;  %v4683_v45 = vsel %vm449_vm8, %v4682_v36, %v4644_v37 }
 0x947   : > { %v4685_v14 = vsel %vm439_vm3, %v4594_v26, %v4652_v7 }
 0x948   : > { %v4648_v34 = vpop.permute.xlu0 %4647 }
 0x949   : > { %v4684_v23 = vsel %vm451_vm9, %v4683_v45, %v4648_v34 }
 0x94a   : > { %v4694_v49 = vrot.slane %v4684_v23, 4  ;;  %v4660_v8 = vpop.permute.xlu1 %4659 }
 0x94c   : > { %4698 = vst [vmem:[#allocation3 + $0x40] sm:$0xf0] %v4694_v49  ;;  %v4656_v29 = vpop.permute.xlu0 %4655 }
 0x94d   : > { %v4686_v39 = vsel %vm441_vm4, %v4685_v14, %v4656_v29 }
 0x94e   : > { %v4668_v20 = vpop.permute.xlu1 %4667  ;;  %v4687_v57 = vsel %vm443_vm5, %v4686_v39, %v4660_v8 }
 0x950   : > { %v4664_v24 = vpop.permute.xlu0 %4663 }
 0x951   : > { %v4688_v63 = vsel %vm445_vm6, %v4687_v57, %v4664_v24 }
 0x952   : > { %v4676_v1 = vpop.permute.xlu1 %4675  ;;  %v4689_v47 = vsel %vm447_vm7, %v4688_v63, %v4668_v20 }
 0x954   : > { %v4672_v35 = vpop.permute.xlu0 %4671 }
 0x955   : > { %v4690_v60 = vsel %vm449_vm8, %v4689_v47, %v4672_v35 }
 0x956   : > { %v4691_v40 = vsel %vm451_vm9, %v4690_v60, %v4676_v1  ;;  %v4719_v41 = vpop.permute.xlu1 %4718 }
 0x957   : > { %v4695_v19 = vrot.slane %v4691_v40, 4 }
 0x958   : > { %v4717_v50 = vpop.permute.xlu0 %4716 }
 0x959   : > { %4699 = vst [vmem:[#allocation3 + $0x90] sm:$0xf0] %v4695_v19 }
 0x95a   : > { %v4723_v56 = vpop.permute.xlu1 %4722 }
 0x95c   : > { %v4721_v59 = vpop.permute.xlu0 %4720 }
 0x95e   : > { %v4727_v25 = vpop.permute.xlu1 %4726 }
 0x95f   : > { %v4808_v62 = vcombine.low %v4719_v41, %v4727_v25  ;;  %v4809_v37 = vcombine.high %v4719_v41, %v4727_v25 }
 0x960   : > { %v4725_v31 = vpop.permute.xlu0 %4724 }
 0x961   : > { %v4740_v55 = vcombine.low %v4717_v50, %v4725_v31  ;;  %v4741_v30 = vcombine.high %v4717_v50, %v4725_v31  ;;  %v4816_v21 = vrot.slane %v4808_v62, %v12343_v3  ;;  %v4823_v34 = vrot.slane %v4809_v37, %v12343_v3 }
 0x962   : > { %v4731_v10 = vpop.permute.xlu1 %4730 }
 0x963   : > { %v4748_v4 = vrot.slane %v4740_v55, %v12343_v3  ;;  %v4824_v42 = vcombine.low %v4723_v56, %v4731_v10  ;;  %v4755_v61 = vrot.slane %v4741_v30, %v12343_v3  ;;  %v4825_v33 = vcombine.high %v4723_v56, %v4731_v10 }
 0x964   : > { %v4729_v27 = vpop.permute.xlu0 %4728 }
 0x965   : > { %v4756_v6 = vcombine.low %v4721_v59, %v4729_v27  ;;  %v4757_v26 = vcombine.high %v4721_v59, %v4729_v27  ;;  %v4832_v28 = vrot.slane %v4824_v42, %v12343_v3  ;;  %v4839_v22 = vrot.slane %v4825_v33, %v12343_v3 }
 0x967   : > { %v4764_v18 = vrot.slane %v4756_v6, %v12343_v3  ;;  %v4771_v44 = vrot.slane %v4757_v26, %v12343_v3  ;;  %v4840_v32 = vcombine.low %v4816_v21, %v4832_v28  ;;  %v4841_v36 = vcombine.high %v4816_v21, %v4832_v28 }
 0x968   : > { %v4856_v49 = vcombine.low %v4823_v34, %v4839_v22  ;;  %v4857_v39 = vcombine.high %v4823_v34, %v4839_v22 }
 0x969   : > { %v4772_v38 = vcombine.low %v4748_v4, %v4764_v18  ;;  %v4773_v15 = vcombine.high %v4748_v4, %v4764_v18  ;;  %v4788_v0 = vcombine.low %v4755_v61, %v4771_v44  ;;  %v4789_v53 = vcombine.high %v4755_v61, %v4771_v44 }
 0x96a   : > { %v4848_v45 = vrot.slane %v4840_v32, %v8843_v12  ;;  %v4855_v14 = vrot.slane %v4841_v36, %v8843_v12  ;;  %v4864_v57 = vrot.slane %v4856_v49, %v8843_v12  ;;  %v4871_v63 = vrot.slane %v4857_v39, %v8843_v12 }
 0x96b   : > { %v4787_v17 = vrot.slane %v4773_v15, %v8843_v12  ;;  %v4780_v51 = vrot.slane %v4772_v38, %v8843_v12  ;;  %v4796_v5 = vrot.slane %v4788_v0, %v8843_v12  ;;  %v4803_v7 = vrot.slane %v4789_v53, %v8843_v12 }
 0x96c   : > { %v4872_v8 = vcombine.high %v4848_v45, %v12334_v43  ;;  %v4873_v20 = vcombine.high %v4855_v14, %v12334_v43  ;;  %v4874_v24 = vcombine.high %v4864_v57, %v12334_v43  ;;  %v4875_v1 = vcombine.high %v4871_v63, %v12334_v43 }
 0x96d   : > { %4881 = vrot.lane.b32.xlu1 %v4787_v17, %s8676_s24  ;;  %v4804_v13 = vcombine.high %v4780_v51, %v12334_v43  ;;  %v4805_v52 = vcombine.high %v4787_v17, %v12334_v43  ;;  %v4806_v23 = vcombine.high %v4796_v5, %v12334_v43  ;;  %v4807_v29 = vcombine.high %v4803_v7, %v12334_v43 }
 0x96f   : > { %4877 = vrot.lane.b32.xlu0 %v4804_v13, %s8679_s27 }
 0x971   : > { %4889 = vrot.lane.b32.xlu1 %v4796_v5, %s8677_s25 }
 0x973   : > { %4885 = vrot.lane.b32.xlu0 %v4805_v52, %s8680_s28 }
 0x975   : > { %4897 = vrot.lane.b32.xlu1 %v4803_v7, %s8678_s26 }
 0x977   : > { %4893 = vrot.lane.b32.xlu0 %v4806_v23, %s8681_s29 }
 0x979   : > { %4905 = vrot.lane.b32.xlu1 %v4872_v8, %s8679_s27 }
 0x97b   : > { %4901 = vrot.lane.b32.xlu0 %v4807_v29, %s8682_s30 }
 0x97d   : > { %4913 = vrot.lane.b32.xlu1 %v4873_v20, %s8680_s28 }
 0x97f   : > { %4909 = vrot.lane.b32.xlu0 %v4855_v14, %s8676_s24 }
 0x981   : > { %4921 = vrot.lane.b32.xlu1 %v4874_v24, %s8681_s29 }
 0x983   : > { %4917 = vrot.lane.b32.xlu0 %v4864_v57, %s8677_s25 }
 0x985   : > { %4929 = vrot.lane.b32.xlu1 %v4875_v1, %s8682_s30 }
 0x987   : > { %4925 = vrot.lane.b32.xlu0 %v4871_v63, %s8678_s26 }
 0x989   : > { %4966 = vrot.lane.b32.xlu1 %v10417_v16, %s8674_s23 }
 0x98b   : > { %4964 = vrot.lane.b32.xlu0 %v10343_v9, %s8674_s23 }
 0x98d   : > { %4970 = vrot.lane.b32.xlu1 %v10423_v54, %s8674_s23 }
 0x98f   : > { %4968 = vrot.lane.b32.xlu0 %v10349_v2, %s8674_s23 }
 0x991   : > { %4974 = vrot.lane.b32.xlu1 %v10429_v46, %s8674_s23 }
 0x993   : > { %4972 = vrot.lane.b32.xlu0 %v10355_v58, %s8674_s23 }
 0x995   : > { %4978 = vrot.lane.b32.xlu1 %v10435_v48, %s8674_s23 }
 0x997   : > { %4976 = vrot.lane.b32.xlu0 %v10361_v11, %s8674_s23 }
 0x9df   : > { %v4882_v47 = vpop.permute.xlu1 %4881 }
 0x9e1   : > { %v4878_v35 = vpop.permute.xlu0 %4877 }
 0x9e2   : > { %v4932_v60 = vsel %vm439_vm3, %v4780_v51, %v4878_v35 }
 0x9e3   : > { %v4890_v40 = vpop.permute.xlu1 %4889  ;;  %v4933_v41 = vsel %vm441_vm4, %v4932_v60, %v4882_v47 }
 0x9e5   : > { %v4886_v19 = vpop.permute.xlu0 %4885 }
 0x9e6   : > { %v4934_v50 = vsel %vm443_vm5, %v4933_v41, %v4886_v19 }
 0x9e7   : > { %v4898_v56 = vpop.permute.xlu1 %4897  ;;  %v4935_v59 = vsel %vm445_vm6, %v4934_v50, %v4890_v40 }
 0x9e9   : > { %v4894_v25 = vpop.permute.xlu0 %4893 }
 0x9ea   : > { %v4936_v31 = vsel %vm447_vm7, %v4935_v59, %v4894_v25 }
 0x9eb   : > { %v4906_v55 = vpop.permute.xlu1 %4905  ;;  %v4937_v27 = vsel %vm449_vm8, %v4936_v31, %v4898_v56 }
 0x9ec   : > { %v4939_v30 = vsel %vm439_vm3, %v4848_v45, %v4906_v55 }
 0x9ed   : > { %v4902_v10 = vpop.permute.xlu0 %4901 }
 0x9ee   : > { %v4938_v6 = vsel %vm451_vm9, %v4937_v27, %v4902_v10 }
 0x9ef   : > { %4946 = vst [vmem:[#allocation3 + $0x60] sm:$0xf] %v4938_v6  ;;  %v4914_v26 = vpop.permute.xlu1 %4913 }
 0x9f1   : > { %v4910_v4 = vpop.permute.xlu0 %4909 }
 0x9f2   : > { %v4940_v42 = vsel %vm441_vm4, %v4939_v30, %v4910_v4 }
 0x9f3   : > { %v4922_v18 = vpop.permute.xlu1 %4921  ;;  %v4941_v44 = vsel %vm443_vm5, %v4940_v42, %v4914_v26 }
 0x9f5   : > { %v4918_v62 = vpop.permute.xlu0 %4917 }
 0x9f6   : > { %v4942_v61 = vsel %vm445_vm6, %v4941_v44, %v4918_v62 }
 0x9f7   : > { %v4930_v38 = vpop.permute.xlu1 %4929  ;;  %v4943_v15 = vsel %vm447_vm7, %v4942_v61, %v4922_v18 }
 0x9f9   : > { %v4926_v28 = vpop.permute.xlu0 %4925 }
 0x9fa   : > { %v4944_v0 = vsel %vm449_vm8, %v4943_v15, %v4926_v28 }
 0x9fb   : > { %v4945_v17 = vsel %vm451_vm9, %v4944_v0, %v4930_v38  ;;  %v4967_v51 = vpop.permute.xlu1 %4966 }
 0x9fc   : > { %4947 = vst [vmem:[#allocation3 + $0x38] sm:$0xf] %v4945_v17 }
 0x9fd   : > { %v4965_v21 = vpop.permute.xlu0 %4964 }
 0x9ff   : > { %v4971_v13 = vpop.permute.xlu1 %4970 }
 0xa01   : > { %v4969_v33 = vpop.permute.xlu0 %4968 }
 0xa03   : > { %v4975_v32 = vpop.permute.xlu1 %4974 }
 0xa04   : > { %v5056_v8 = vcombine.low %v4967_v51, %v4975_v32  ;;  %v5057_v19 = vcombine.high %v4967_v51, %v4975_v32 }
 0xa05   : > { %v4973_v53 = vpop.permute.xlu0 %4972 }
 0xa06   : > { %v4988_v5 = vcombine.low %v4965_v21, %v4973_v53  ;;  %v4989_v7 = vcombine.high %v4965_v21, %v4973_v53  ;;  %v5064_v1 = vrot.slane %v5056_v8, %v12343_v3  ;;  %v5071_v55 = vrot.slane %v5057_v19, %v12343_v3 }
 0xa07   : > { %v4979_v52 = vpop.permute.xlu1 %4978 }
 0xa08   : > { %v4996_v45 = vrot.slane %v4988_v5, %v12343_v3  ;;  %v5072_v34 = vcombine.low %v4971_v13, %v4979_v52  ;;  %v5003_v14 = vrot.slane %v4989_v7, %v12343_v3  ;;  %v5073_v35 = vcombine.high %v4971_v13, %v4979_v52 }
 0xa09   : > { %v4977_v37 = vpop.permute.xlu0 %4976 }
 0xa0a   : > { %v5004_v22 = vcombine.low %v4969_v33, %v4977_v37  ;;  %v5005_v36 = vcombine.high %v4969_v33, %v4977_v37  ;;  %v5080_v20 = vrot.slane %v5072_v34, %v12343_v3  ;;  %v5087_v56 = vrot.slane %v5073_v35, %v12343_v3 }
 0xa0c   : > { %v5012_v23 = vrot.slane %v5004_v22, %v12343_v3  ;;  %v5019_v49 = vrot.slane %v5005_v36, %v12343_v3  ;;  %v5088_v60 = vcombine.low %v5064_v1, %v5080_v20  ;;  %v5089_v59 = vcombine.high %v5064_v1, %v5080_v20 }
 0xa0d   : > { %v5104_v10 = vcombine.low %v5071_v55, %v5087_v56  ;;  %v5105_v4 = vcombine.high %v5071_v55, %v5087_v56 }
 0xa0e   : > { %v5020_v29 = vcombine.low %v4996_v45, %v5012_v23  ;;  %v5021_v39 = vcombine.high %v4996_v45, %v5012_v23  ;;  %v5036_v57 = vcombine.low %v5003_v14, %v5019_v49  ;;  %v5037_v40 = vcombine.high %v5003_v14, %v5019_v49 }
 0xa0f   : > { %v5096_v31 = vrot.slane %v5088_v60, %v8843_v12  ;;  %v5103_v26 = vrot.slane %v5089_v59, %v8843_v12  ;;  %v5112_v18 = vrot.slane %v5104_v10, %v8843_v12  ;;  %v5119_v62 = vrot.slane %v5105_v4, %v8843_v12 }
 0xa10   : > { %v5035_v24 = vrot.slane %v5021_v39, %v8843_v12  ;;  %v5028_v63 = vrot.slane %v5020_v29, %v8843_v12  ;;  %v5044_v41 = vrot.slane %v5036_v57, %v8843_v12  ;;  %v5051_v25 = vrot.slane %v5037_v40, %v8843_v12 }
 0xa11   : > { %v5120_v6 = vcombine.high %v5096_v31, %v12334_v43  ;;  %v5121_v42 = vcombine.high %v5103_v26, %v12334_v43  ;;  %v5122_v44 = vcombine.high %v5112_v18, %v12334_v43  ;;  %v5123_v61 = vcombine.high %v5119_v62, %v12334_v43 }
 0xa12   : > { %5129 = vrot.lane.b32.xlu1 %v5035_v24, %s8676_s24  ;;  %v5052_v47 = vcombine.high %v5028_v63, %v12334_v43  ;;  %v5053_v50 = vcombine.high %v5035_v24, %v12334_v43  ;;  %v5054_v27 = vcombine.high %v5044_v41, %v12334_v43  ;;  %v5055_v30 = vcombine.high %v5051_v25, %v12334_v43 }
 0xa14   : > { %5125 = vrot.lane.b32.xlu0 %v5052_v47, %s8679_s27 }
 0xa16   : > { %5137 = vrot.lane.b32.xlu1 %v5044_v41, %s8677_s25 }
 0xa18   : > { %5133 = vrot.lane.b32.xlu0 %v5053_v50, %s8680_s28 }
 0xa1a   : > { %5145 = vrot.lane.b32.xlu1 %v5051_v25, %s8678_s26 }
 0xa1c   : > { %5141 = vrot.lane.b32.xlu0 %v5054_v27, %s8681_s29 }
 0xa1e   : > { %5153 = vrot.lane.b32.xlu1 %v5120_v6, %s8679_s27 }
 0xa20   : > { %5149 = vrot.lane.b32.xlu0 %v5055_v30, %s8682_s30 }
 0xa22   : > { %5161 = vrot.lane.b32.xlu1 %v5121_v42, %s8680_s28 }
 0xa24   : > { %5157 = vrot.lane.b32.xlu0 %v5103_v26, %s8676_s24 }
 0xa26   : > { %5169 = vrot.lane.b32.xlu1 %v5122_v44, %s8681_s29 }
 0xa28   : > { %5165 = vrot.lane.b32.xlu0 %v5112_v18, %s8677_s25 }
 0xa2a   : > { %5177 = vrot.lane.b32.xlu1 %v5123_v61, %s8682_s30 }
 0xa2c   : > { %5173 = vrot.lane.b32.xlu0 %v5119_v62, %s8678_s26 }
 0xa2e   : > { %5220 = vrot.lane.b32.xlu1 %v10417_v16, %s8672_s21 }
 0xa30   : > { %5218 = vrot.lane.b32.xlu0 %v10343_v9, %s8672_s21 }
 0xa32   : > { %5224 = vrot.lane.b32.xlu1 %v10423_v54, %s8672_s21 }
 0xa34   : > { %5222 = vrot.lane.b32.xlu0 %v10349_v2, %s8672_s21 }
 0xa36   : > { %5228 = vrot.lane.b32.xlu1 %v10429_v46, %s8672_s21 }
 0xa38   : > { %5226 = vrot.lane.b32.xlu0 %v10355_v58, %s8672_s21 }
 0xa3a   : > { %5232 = vrot.lane.b32.xlu1 %v10435_v48, %s8672_s21 }
 0xa3c   : > { %5230 = vrot.lane.b32.xlu0 %v10361_v11, %s8672_s21 }
 0xa84   : > { %v5130_v16 = vpop.permute.xlu1 %5129 }
 0xa86   : > { %v5126_v9 = vpop.permute.xlu0 %5125 }
 0xa87   : > { %v5180_v38 = vsel %vm439_vm3, %v5028_v63, %v5126_v9 }
 0xa88   : > { %v5138_v54 = vpop.permute.xlu1 %5137  ;;  %v5181_v15 = vsel %vm441_vm4, %v5180_v38, %v5130_v16 }
 0xa8a   : > { %v5134_v2 = vpop.permute.xlu0 %5133 }
 0xa8b   : > { %v5182_v28 = vsel %vm443_vm5, %v5181_v15, %v5134_v2 }
 0xa8c   : > { %v5146_v46 = vpop.permute.xlu1 %5145  ;;  %v5183_v0 = vsel %vm445_vm6, %v5182_v28, %v5138_v54 }
 0xa8e   : > { %v5142_v58 = vpop.permute.xlu0 %5141 }
 0xa8f   : > { %v5184_v17 = vsel %vm447_vm7, %v5183_v0, %v5142_v58 }
 0xa90   : > { %v5154_v48 = vpop.permute.xlu1 %5153  ;;  %v5185_v51 = vsel %vm449_vm8, %v5184_v17, %v5146_v46 }
 0xa91   : > { %v5187_v32 = vsel %vm439_vm3, %v5096_v31, %v5154_v48 }
 0xa92   : > { %v5150_v11 = vpop.permute.xlu0 %5149 }
 0xa93   : > { %v5186_v21 = vsel %vm451_vm9, %v5185_v51, %v5150_v11 }
 0xa94   : > { %v5196_v13 = vrot.slane %v5186_v21, 4  ;;  %v5162_v33 = vpop.permute.xlu1 %5161 }
 0xa96   : > { %5200 = vst [vmem:[#allocation3 + $0x60] sm:$0xf0] %v5196_v13  ;;  %v5158_v53 = vpop.permute.xlu0 %5157 }
 0xa97   : > { %v5188_v5 = vsel %vm441_vm4, %v5187_v32, %v5158_v53  ;;  %v10629_v32 = vld [vmem:[#allocation2 + $0x10] sm:$0xff]  ;;  %v10633_v53 = vld [vmem:[#allocation2 + $0x8] sm:$0xff] }
 0xa98   : > { %v5170_v37 = vpop.permute.xlu1 %5169  ;;  %v5189_v52 = vsel %vm443_vm5, %v5188_v5, %v5162_v33  ;;  %v10637_v5 = vld [vmem:[#allocation2 + $0x30] sm:$0xff] }
 0xa9a   : > { %v5166_v22 = vpop.permute.xlu0 %5165 }
 0xa9b   : > { %v5190_v36 = vsel %vm445_vm6, %v5189_v52, %v5166_v22  ;;  %v10645_v52 = vld [vmem:[#allocation2 + $0x50] sm:$0xff]  ;;  %v10649_v22 = vld [vmem:[#allocation2 + $0x48] sm:$0xff] }
 0xa9c   : > { %v5178_v7 = vpop.permute.xlu1 %5177  ;;  %v5191_v45 = vsel %vm447_vm7, %v5190_v36, %v5170_v37  ;;  %v10641_v37 = vld [vmem:[#allocation2 + $0x28] sm:$0xff]  ;;  %v10653_v36 = vld [vmem:[#allocation2 + $0x70] sm:$0xff] }
 0xa9e   : > { %v5174_v34 = vpop.permute.xlu0 %5173 }
 0xa9f   : > { %v5192_v23 = vsel %vm449_vm8, %v5191_v45, %v5174_v34 }
 0xaa0   : > { %v5193_v49 = vsel %vm451_vm9, %v5192_v23, %v5178_v7  ;;  %v5221_v8 = vpop.permute.xlu1 %5220  ;;  %v10657_v7 = vld [vmem:[#allocation2 + $0x68] sm:$0xff] }
 0xaa1   : > { %v5197_v14 = vrot.slane %v5193_v49, 4 }
 0xaa2   : > { %v5219_v29 = vpop.permute.xlu0 %5218 }
 0xaa3   : > { %5201 = vst [vmem:[#allocation3 + $0x38] sm:$0xf0] %v5197_v14 }
 0xaa4   : > { %v5225_v39 = vpop.permute.xlu1 %5224 }
 0xaa6   : > { %v5223_v20 = vpop.permute.xlu0 %5222 }
 0xaa8   : > { %v5229_v57 = vpop.permute.xlu1 %5228 }
 0xaa9   : > { %v5310_v59 = vcombine.low %v5221_v8, %v5229_v57  ;;  %v5311_v61 = vcombine.high %v5221_v8, %v5229_v57 }
 0xaaa   : > { %v5227_v24 = vpop.permute.xlu0 %5226 }
 0xaab   : > { %v5242_v63 = vcombine.low %v5219_v29, %v5227_v24  ;;  %v5243_v40 = vcombine.high %v5219_v29, %v5227_v24  ;;  %v5318_v30 = vrot.slane %v5310_v59, %v12343_v3  ;;  %v5325_v2 = vrot.slane %v5311_v61, %v12343_v3 }
 0xaac   : > { %v5233_v47 = vpop.permute.xlu1 %5232 }
 0xaad   : > { %v5250_v41 = vrot.slane %v5242_v63, %v12343_v3  ;;  %v5326_v19 = vcombine.low %v5225_v39, %v5233_v47  ;;  %v5257_v25 = vrot.slane %v5243_v40, %v12343_v3  ;;  %v5327_v42 = vcombine.high %v5225_v39, %v5233_v47 }
 0xaae   : > { %v5231_v1 = vpop.permute.xlu0 %5230 }
 0xaaf   : > { %v5258_v35 = vcombine.low %v5223_v20, %v5231_v1  ;;  %v5259_v60 = vcombine.high %v5223_v20, %v5231_v1  ;;  %v5334_v27 = vrot.slane %v5326_v19, %v12343_v3  ;;  %v5341_v9 = vrot.slane %v5327_v42, %v12343_v3 }
 0xab1   : > { %v5266_v50 = vrot.slane %v5258_v35, %v12343_v3  ;;  %v5273_v56 = vrot.slane %v5259_v60, %v12343_v3  ;;  %v5342_v18 = vcombine.low %v5318_v30, %v5334_v27  ;;  %v5343_v38 = vcombine.high %v5318_v30, %v5334_v27 }
 0xab2   : > { %v5358_v46 = vcombine.low %v5325_v2, %v5341_v9  ;;  %v5359_v48 = vcombine.high %v5325_v2, %v5341_v9 }
 0xab3   : > { %v5274_v31 = vcombine.low %v5250_v41, %v5266_v50  ;;  %v5275_v55 = vcombine.high %v5250_v41, %v5266_v50  ;;  %v5290_v10 = vcombine.low %v5257_v25, %v5273_v56  ;;  %v5291_v44 = vcombine.high %v5257_v25, %v5273_v56 }
 0xab4   : > { %v5350_v15 = vrot.slane %v5342_v18, %v8843_v12  ;;  %v5357_v58 = vrot.slane %v5343_v38, %v8843_v12  ;;  %v5366_v11 = vrot.slane %v5358_v46, %v8843_v12  ;;  %v5373_v13 = vrot.slane %v5359_v48, %v8843_v12 }
 0xab5   : > { %v5289_v6 = vrot.slane %v5275_v55, %v8843_v12  ;;  %v5282_v26 = vrot.slane %v5274_v31, %v8843_v12  ;;  %v5298_v62 = vrot.slane %v5290_v10, %v8843_v12  ;;  %v5305_v54 = vrot.slane %v5291_v44, %v8843_v12 }
 0xab6   : > { %v5374_v0 = vcombine.high %v5350_v15, %v12334_v43  ;;  %v5375_v51 = vcombine.high %v5357_v58, %v12334_v43  ;;  %v5376_v21 = vcombine.high %v5366_v11, %v12334_v43  ;;  %v5377_v33 = vcombine.high %v5373_v13, %v12334_v43 }
 0xab7   : > { %5383 = vrot.lane.b32.xlu1 %v5289_v6, %s8676_s24  ;;  %v5306_v4 = vcombine.high %v5282_v26, %v12334_v43  ;;  %v5307_v16 = vcombine.high %v5289_v6, %v12334_v43  ;;  %v5308_v28 = vcombine.high %v5298_v62, %v12334_v43  ;;  %v5309_v17 = vcombine.high %v5305_v54, %v12334_v43 }
 0xab9   : > { %5379 = vrot.lane.b32.xlu0 %v5306_v4, %s8679_s27 }
 0xabb   : > { %5391 = vrot.lane.b32.xlu1 %v5298_v62, %s8677_s25 }
 0xabd   : > { %5387 = vrot.lane.b32.xlu0 %v5307_v16, %s8680_s28 }
 0xabf   : > { %5399 = vrot.lane.b32.xlu1 %v5305_v54, %s8678_s26 }
 0xac1   : > { %5395 = vrot.lane.b32.xlu0 %v5308_v28, %s8681_s29 }
 0xac3   : > { %5407 = vrot.lane.b32.xlu1 %v5374_v0, %s8679_s27 }
 0xac5   : > { %5403 = vrot.lane.b32.xlu0 %v5309_v17, %s8682_s30 }
 0xac7   : > { %5415 = vrot.lane.b32.xlu1 %v5375_v51, %s8680_s28 }
 0xac9   : > { %5411 = vrot.lane.b32.xlu0 %v5357_v58, %s8676_s24 }
 0xacb   : > { %5423 = vrot.lane.b32.xlu1 %v5376_v21, %s8681_s29 }
 0xacd   : > { %5419 = vrot.lane.b32.xlu0 %v5366_v11, %s8677_s25 }
 0xacf   : > { %5431 = vrot.lane.b32.xlu1 %v5377_v33, %s8682_s30 }
 0xad1   : > { %5427 = vrot.lane.b32.xlu0 %v5373_v13, %s8678_s26 }
 0xad3   : > { %5468 = vrot.lane.b32.xlu1 %v10629_v32, %s8685_s6 }
 0xad5   : > { %5466 = vrot.lane.b32.xlu0 %v10633_v53, %s8685_s6 }
 0xad7   : > { %5472 = vrot.lane.b32.xlu1 %v10637_v5, %s8685_s6 }
 0xad9   : > { %5470 = vrot.lane.b32.xlu0 %v10641_v37, %s8685_s6 }
 0xadb   : > { %5476 = vrot.lane.b32.xlu1 %v10645_v52, %s8685_s6 }
 0xadd   : > { %5474 = vrot.lane.b32.xlu0 %v10649_v22, %s8685_s6 }
 0xadf   : > { %5480 = vrot.lane.b32.xlu1 %v10653_v36, %s8685_s6 }
 0xae1   : > { %5478 = vrot.lane.b32.xlu0 %v10657_v7, %s8685_s6 }
 0xb29   : > { %v5384_v45 = vpop.permute.xlu1 %5383 }
 0xb2b   : > { %v5380_v34 = vpop.permute.xlu0 %5379 }
 0xb2c   : > { %v5434_v23 = vsel %vm439_vm3, %v5282_v26, %v5380_v34 }
 0xb2d   : > { %v5392_v49 = vpop.permute.xlu1 %5391  ;;  %v5435_v8 = vsel %vm441_vm4, %v5434_v23, %v5384_v45 }
 0xb2f   : > { %v5388_v14 = vpop.permute.xlu0 %5387 }
 0xb30   : > { %v5436_v29 = vsel %vm443_vm5, %v5435_v8, %v5388_v14 }
 0xb31   : > { %v5400_v39 = vpop.permute.xlu1 %5399  ;;  %v5437_v20 = vsel %vm445_vm6, %v5436_v29, %v5392_v49 }
 0xb33   : > { %v5396_v57 = vpop.permute.xlu0 %5395 }
 0xb34   : > { %v5438_v24 = vsel %vm447_vm7, %v5437_v20, %v5396_v57 }
 0xb35   : > { %v5408_v63 = vpop.permute.xlu1 %5407  ;;  %v5439_v1 = vsel %vm449_vm8, %v5438_v24, %v5400_v39 }
 0xb36   : > { %v5441_v40 = vsel %vm439_vm3, %v5350_v15, %v5408_v63 }
 0xb37   : > { %v5404_v47 = vpop.permute.xlu0 %5403 }
 0xb38   : > { %v5440_v35 = vsel %vm451_vm9, %v5439_v1, %v5404_v47 }
 0xb39   : > { %5448 = vst [vmem:[#allocation3 + $0x8] sm:$0xf] %v5440_v35  ;;  %v5416_v60 = vpop.permute.xlu1 %5415 }
 0xb3b   : > { %v5412_v41 = vpop.permute.xlu0 %5411 }
 0xb3c   : > { %v5442_v19 = vsel %vm441_vm4, %v5441_v40, %v5412_v41 }
 0xb3d   : > { %v5424_v50 = vpop.permute.xlu1 %5423  ;;  %v5443_v56 = vsel %vm443_vm5, %v5442_v19, %v5416_v60 }
 0xb3f   : > { %v5420_v59 = vpop.permute.xlu0 %5419 }
 0xb40   : > { %v5444_v25 = vsel %vm445_vm6, %v5443_v56, %v5420_v59 }
 0xb41   : > { %v5432_v31 = vpop.permute.xlu1 %5431  ;;  %v5445_v55 = vsel %vm447_vm7, %v5444_v25, %v5424_v50 }
 0xb43   : > { %v5428_v27 = vpop.permute.xlu0 %5427 }
 0xb44   : > { %v5446_v10 = vsel %vm449_vm8, %v5445_v55, %v5428_v27 }
 0xb45   : > { %v5447_v6 = vsel %vm451_vm9, %v5446_v10, %v5432_v31  ;;  %v5469_v26 = vpop.permute.xlu1 %5468 }
 0xb46   : > { %5449 = vst [vmem:[#allocation3 + $0x50] sm:$0xf] %v5447_v6 }
 0xb47   : > { %v5467_v30 = vpop.permute.xlu0 %5466 }
 0xb49   : > { %v5473_v4 = vpop.permute.xlu1 %5472 }
 0xb4b   : > { %v5471_v42 = vpop.permute.xlu0 %5470 }
 0xb4d   : > { %v5477_v18 = vpop.permute.xlu1 %5476 }
 0xb4e   : > { %v5558_v0 = vcombine.low %v5469_v26, %v5477_v18  ;;  %v5559_v14 = vcombine.high %v5469_v26, %v5477_v18 }
 0xb4f   : > { %v5475_v44 = vpop.permute.xlu0 %5474 }
 0xb50   : > { %v5490_v62 = vcombine.low %v5467_v30, %v5475_v44  ;;  %v5491_v54 = vcombine.high %v5467_v30, %v5475_v44  ;;  %v5566_v33 = vrot.slane %v5558_v0, %v12343_v3  ;;  %v5573_v63 = vrot.slane %v5559_v14, %v12343_v3 }
 0xb51   : > { %v5481_v16 = vpop.permute.xlu1 %5480 }
 0xb52   : > { %v5498_v15 = vrot.slane %v5490_v62, %v12343_v3  ;;  %v5574_v2 = vcombine.low %v5473_v4, %v5481_v16  ;;  %v5505_v58 = vrot.slane %v5491_v54, %v12343_v3  ;;  %v5575_v34 = vcombine.high %v5473_v4, %v5481_v16 }
 0xb53   : > { %v5479_v61 = vpop.permute.xlu0 %5478 }
 0xb54   : > { %v5506_v9 = vcombine.low %v5471_v42, %v5479_v61  ;;  %v5507_v38 = vcombine.high %v5471_v42, %v5479_v61  ;;  %v5582_v51 = vrot.slane %v5574_v2, %v12343_v3  ;;  %v5589_v39 = vrot.slane %v5575_v34, %v12343_v3 }
 0xb56   : > { %v5514_v28 = vrot.slane %v5506_v9, %v12343_v3  ;;  %v5521_v46 = vrot.slane %v5507_v38, %v12343_v3  ;;  %v5590_v23 = vcombine.low %v5566_v33, %v5582_v51  ;;  %v5591_v20 = vcombine.high %v5566_v33, %v5582_v51 }
 0xb57   : > { %v5606_v47 = vcombine.low %v5573_v63, %v5589_v39  ;;  %v5607_v41 = vcombine.high %v5573_v63, %v5589_v39 }
 0xb58   : > { %v5522_v17 = vcombine.low %v5498_v15, %v5514_v28  ;;  %v5523_v48 = vcombine.high %v5498_v15, %v5514_v28  ;;  %v5538_v11 = vcombine.low %v5505_v58, %v5521_v46  ;;  %v5539_v49 = vcombine.high %v5505_v58, %v5521_v46 }
 0xb59   : > { %v5598_v24 = vrot.slane %v5590_v23, %v8843_v12  ;;  %v5605_v60 = vrot.slane %v5591_v20, %v8843_v12  ;;  %v5614_v50 = vrot.slane %v5606_v47, %v8843_v12  ;;  %v5621_v59 = vrot.slane %v5607_v41, %v8843_v12 }
 0xb5a   : > { %v5537_v21 = vrot.slane %v5523_v48, %v8843_v12  ;;  %v5530_v13 = vrot.slane %v5522_v17, %v8843_v12  ;;  %v5546_v8 = vrot.slane %v5538_v11, %v8843_v12  ;;  %v5553_v57 = vrot.slane %v5539_v49, %v8843_v12 }
 0xb5b   : > { %v5622_v35 = vcombine.high %v5598_v24, %v12334_v43  ;;  %v5623_v19 = vcombine.high %v5605_v60, %v12334_v43  ;;  %v5624_v56 = vcombine.high %v5614_v50, %v12334_v43  ;;  %v5625_v25 = vcombine.high %v5621_v59, %v12334_v43 }
 0xb5c   : > { %5631 = vrot.lane.b32.xlu1 %v5537_v21, %s8676_s24  ;;  %v5554_v45 = vcombine.high %v5530_v13, %v12334_v43  ;;  %v5555_v29 = vcombine.high %v5537_v21, %v12334_v43  ;;  %v5556_v1 = vcombine.high %v5546_v8, %v12334_v43  ;;  %v5557_v40 = vcombine.high %v5553_v57, %v12334_v43 }
 0xb5e   : > { %5627 = vrot.lane.b32.xlu0 %v5554_v45, %s8679_s27 }
 0xb60   : > { %5639 = vrot.lane.b32.xlu1 %v5546_v8, %s8677_s25 }
 0xb62   : > { %5635 = vrot.lane.b32.xlu0 %v5555_v29, %s8680_s28 }
 0xb64   : > { %5647 = vrot.lane.b32.xlu1 %v5553_v57, %s8678_s26 }
 0xb66   : > { %5643 = vrot.lane.b32.xlu0 %v5556_v1, %s8681_s29 }
 0xb68   : > { %5655 = vrot.lane.b32.xlu1 %v5622_v35, %s8679_s27 }
 0xb6a   : > { %5651 = vrot.lane.b32.xlu0 %v5557_v40, %s8682_s30 }
 0xb6c   : > { %5663 = vrot.lane.b32.xlu1 %v5623_v19, %s8680_s28 }
 0xb6e   : > { %5659 = vrot.lane.b32.xlu0 %v5605_v60, %s8676_s24 }
 0xb70   : > { %5671 = vrot.lane.b32.xlu1 %v5624_v56, %s8681_s29 }
 0xb72   : > { %5667 = vrot.lane.b32.xlu0 %v5614_v50, %s8677_s25 }
 0xb74   : > { %5679 = vrot.lane.b32.xlu1 %v5625_v25, %s8682_s30 }
 0xb76   : > { %5675 = vrot.lane.b32.xlu0 %v5621_v59, %s8678_s26 }
 0xb78   : > { %5722 = vrot.lane.b32.xlu1 %v10629_v32, %s8670_s20 }
 0xb7a   : > { %5720 = vrot.lane.b32.xlu0 %v10633_v53, %s8670_s20 }
 0xb7c   : > { %5726 = vrot.lane.b32.xlu1 %v10637_v5, %s8670_s20 }
 0xb7e   : > { %5724 = vrot.lane.b32.xlu0 %v10641_v37, %s8670_s20 }
 0xb80   : > { %5730 = vrot.lane.b32.xlu1 %v10645_v52, %s8670_s20 }
 0xb82   : > { %5728 = vrot.lane.b32.xlu0 %v10649_v22, %s8670_s20 }
 0xb84   : > { %5734 = vrot.lane.b32.xlu1 %v10653_v36, %s8670_s20 }
 0xb86   : > { %5732 = vrot.lane.b32.xlu0 %v10657_v7, %s8670_s20 }
 0xbce   : > { %v5632_v31 = vpop.permute.xlu1 %5631 }
 0xbd0   : > { %v5628_v55 = vpop.permute.xlu0 %5627 }
 0xbd1   : > { %v5682_v27 = vsel %vm439_vm3, %v5530_v13, %v5628_v55 }
 0xbd2   : > { %v5640_v10 = vpop.permute.xlu1 %5639  ;;  %v5683_v6 = vsel %vm441_vm4, %v5682_v27, %v5632_v31 }
 0xbd4   : > { %v5636_v26 = vpop.permute.xlu0 %5635 }
 0xbd5   : > { %v5684_v30 = vsel %vm443_vm5, %v5683_v6, %v5636_v26 }
 0xbd6   : > { %v5648_v4 = vpop.permute.xlu1 %5647  ;;  %v5685_v42 = vsel %vm445_vm6, %v5684_v30, %v5640_v10 }
 0xbd8   : > { %v5644_v18 = vpop.permute.xlu0 %5643 }
 0xbd9   : > { %v5686_v44 = vsel %vm447_vm7, %v5685_v42, %v5644_v18 }
 0xbda   : > { %v5656_v62 = vpop.permute.xlu1 %5655  ;;  %v5687_v61 = vsel %vm449_vm8, %v5686_v44, %v5648_v4 }
 0xbdb   : > { %v5689_v15 = vsel %vm439_vm3, %v5598_v24, %v5656_v62 }
 0xbdc   : > { %v5652_v16 = vpop.permute.xlu0 %5651 }
 0xbdd   : > { %v5688_v9 = vsel %vm451_vm9, %v5687_v61, %v5652_v16 }
 0xbde   : > { %v5698_v38 = vrot.slane %v5688_v9, 4  ;;  %v5664_v54 = vpop.permute.xlu1 %5663 }
 0xbe0   : > { %5702 = vst [vmem:[#allocation3 + $0x8] sm:$0xf0] %v5698_v38  ;;  %v5660_v2 = vpop.permute.xlu0 %5659 }
 0xbe1   : > { %v5690_v28 = vsel %vm441_vm4, %v5689_v15, %v5660_v2 }
 0xbe2   : > { %v5672_v46 = vpop.permute.xlu1 %5671  ;;  %v5691_v0 = vsel %vm443_vm5, %v5690_v28, %v5664_v54 }
 0xbe4   : > { %v5668_v58 = vpop.permute.xlu0 %5667 }
 0xbe5   : > { %v5692_v17 = vsel %vm445_vm6, %v5691_v0, %v5668_v58 }
 0xbe6   : > { %v5680_v48 = vpop.permute.xlu1 %5679  ;;  %v5693_v51 = vsel %vm447_vm7, %v5692_v17, %v5672_v46 }
 0xbe8   : > { %v5676_v11 = vpop.permute.xlu0 %5675 }
 0xbe9   : > { %v5694_v21 = vsel %vm449_vm8, %v5693_v51, %v5676_v11 }
 0xbea   : > { %v5695_v13 = vsel %vm451_vm9, %v5694_v21, %v5680_v48  ;;  %v5723_v33 = vpop.permute.xlu1 %5722 }
 0xbeb   : > { %v5699_v45 = vrot.slane %v5695_v13, 4 }
 0xbec   : > { %v5721_v34 = vpop.permute.xlu0 %5720 }
 0xbed   : > { %5703 = vst [vmem:[#allocation3 + $0x50] sm:$0xf0] %v5699_v45 }
 0xbee   : > { %v5727_v23 = vpop.permute.xlu1 %5726 }
 0xbf0   : > { %v5725_v49 = vpop.permute.xlu0 %5724 }
 0xbf2   : > { %v5731_v8 = vpop.permute.xlu1 %5730 }
 0xbf3   : > { %v5812_v40 = vcombine.low %v5723_v33, %v5731_v8  ;;  %v5813_v4 = vcombine.high %v5723_v33, %v5731_v8 }
 0xbf4   : > { %v5729_v14 = vpop.permute.xlu0 %5728 }
 0xbf5   : > { %v5744_v29 = vcombine.low %v5721_v34, %v5729_v14  ;;  %v5745_v63 = vcombine.high %v5721_v34, %v5729_v14  ;;  %v5820_v55 = vrot.slane %v5812_v40, %v12343_v3  ;;  %v5827_v16 = vrot.slane %v5813_v4, %v12343_v3 }
 0xbf6   : > { %v5735_v20 = vpop.permute.xlu1 %5734 }
 0xbf7   : > { %v5752_v1 = vrot.slane %v5744_v29, %v12343_v3  ;;  %v5828_v47 = vcombine.low %v5727_v23, %v5735_v20  ;;  %v5759_v41 = vrot.slane %v5745_v63, %v12343_v3  ;;  %v5829_v10 = vcombine.high %v5727_v23, %v5735_v20 }
 0xbf8   : > { %v5733_v39 = vpop.permute.xlu0 %5732 }
 0xbf9   : > { %v5760_v57 = vcombine.low %v5725_v49, %v5733_v39  ;;  %v5761_v24 = vcombine.high %v5725_v49, %v5733_v39  ;;  %v5836_v56 = vrot.slane %v5828_v47, %v12343_v3  ;;  %v5843_v18 = vrot.slane %v5829_v10, %v12343_v3 }
 0xbfb   : > { %v5768_v35 = vrot.slane %v5760_v57, %v12343_v3  ;;  %v5775_v60 = vrot.slane %v5761_v24, %v12343_v3  ;;  %v5844_v6 = vcombine.low %v5820_v55, %v5836_v56  ;;  %v5845_v44 = vcombine.high %v5820_v55, %v5836_v56 }
 0xbfc   : > { %v5860_v38 = vcombine.low %v5827_v16, %v5843_v18  ;;  %v5861_v28 = vcombine.high %v5827_v16, %v5843_v18 }
 0xbfd   : > { %v5776_v19 = vcombine.low %v5752_v1, %v5768_v35  ;;  %v5777_v50 = vcombine.high %v5752_v1, %v5768_v35  ;;  %v5792_v59 = vcombine.low %v5759_v41, %v5775_v60  ;;  %v5793_v26 = vcombine.high %v5759_v41, %v5775_v60 }
 0xbfe   : > { %v5852_v61 = vrot.slane %v5844_v6, %v8843_v12  ;;  %v5859_v15 = vrot.slane %v5845_v44, %v8843_v12  ;;  %v5868_v0 = vrot.slane %v5860_v38, %v8843_v12  ;;  %v5875_v17 = vrot.slane %v5861_v28, %v8843_v12 }
 0xbff   : > { %v5791_v25 = vrot.slane %v5777_v50, %v8843_v12  ;;  %v5784_v31 = vrot.slane %v5776_v19, %v8843_v12  ;;  %v5800_v30 = vrot.slane %v5792_v59, %v8843_v12  ;;  %v5807_v62 = vrot.slane %v5793_v26, %v8843_v12 }
 0xc00   : > { %v5876_v54 = vcombine.high %v5852_v61, %v12334_v43  ;;  %v5877_v46 = vcombine.high %v5859_v15, %v12334_v43  ;;  %v5878_v58 = vcombine.high %v5868_v0, %v12334_v43  ;;  %v5879_v48 = vcombine.high %v5875_v17, %v12334_v43 }
 0xc01   : > { %5885 = vrot.lane.b32.xlu1 %v5791_v25, %s8676_s24  ;;  %v5808_v27 = vcombine.high %v5784_v31, %v12334_v43  ;;  %v5809_v42 = vcombine.high %v5791_v25, %v12334_v43  ;;  %v5810_v9 = vcombine.high %v5800_v30, %v12334_v43  ;;  %v5811_v2 = vcombine.high %v5807_v62, %v12334_v43 }
 0xc03   : > { %5881 = vrot.lane.b32.xlu0 %v5808_v27, %s8679_s27 }
 0xc05   : > { %5893 = vrot.lane.b32.xlu1 %v5800_v30, %s8677_s25 }
 0xc07   : > { %5889 = vrot.lane.b32.xlu0 %v5809_v42, %s8680_s28 }
 0xc09   : > { %5901 = vrot.lane.b32.xlu1 %v5807_v62, %s8678_s26 }
 0xc0b   : > { %5897 = vrot.lane.b32.xlu0 %v5810_v9, %s8681_s29 }
 0xc0d   : > { %5909 = vrot.lane.b32.xlu1 %v5876_v54, %s8679_s27 }
 0xc0f   : > { %5905 = vrot.lane.b32.xlu0 %v5811_v2, %s8682_s30 }
 0xc11   : > { %5917 = vrot.lane.b32.xlu1 %v5877_v46, %s8680_s28 }
 0xc13   : > { %5913 = vrot.lane.b32.xlu0 %v5859_v15, %s8676_s24 }
 0xc15   : > { %5925 = vrot.lane.b32.xlu1 %v5878_v58, %s8681_s29 }
 0xc17   : > { %5921 = vrot.lane.b32.xlu0 %v5868_v0, %s8677_s25 }
 0xc19   : > { %5933 = vrot.lane.b32.xlu1 %v5879_v48, %s8682_s30 }
 0xc1b   : > { %5929 = vrot.lane.b32.xlu0 %v5875_v17, %s8678_s26 }
 0xc1d   : > { %5970 = vrot.lane.b32.xlu1 %v10629_v32, %s8686_s7 }
 0xc1f   : > { %5968 = vrot.lane.b32.xlu0 %v10633_v53, %s8686_s7 }
 0xc21   : > { %5974 = vrot.lane.b32.xlu1 %v10637_v5, %s8686_s7 }
 0xc23   : > { %5972 = vrot.lane.b32.xlu0 %v10641_v37, %s8686_s7 }
 0xc25   : > { %5978 = vrot.lane.b32.xlu1 %v10645_v52, %s8686_s7 }
 0xc27   : > { %5976 = vrot.lane.b32.xlu0 %v10649_v22, %s8686_s7 }
 0xc29   : > { %5982 = vrot.lane.b32.xlu1 %v10653_v36, %s8686_s7 }
 0xc2b   : > { %5980 = vrot.lane.b32.xlu0 %v10657_v7, %s8686_s7 }
 0xc73   : > { %v5886_v32 = vpop.permute.xlu1 %5885 }
 0xc75   : > { %v5882_v53 = vpop.permute.xlu0 %5881 }
 0xc76   : > { %v5936_v51 = vsel %vm439_vm3, %v5784_v31, %v5882_v53 }
 0xc77   : > { %v5894_v5 = vpop.permute.xlu1 %5893  ;;  %v5937_v11 = vsel %vm441_vm4, %v5936_v51, %v5886_v32 }
 0xc79   : > { %v5890_v37 = vpop.permute.xlu0 %5889 }
 0xc7a   : > { %v5938_v21 = vsel %vm443_vm5, %v5937_v11, %v5890_v37 }
 0xc7b   : > { %v5902_v52 = vpop.permute.xlu1 %5901  ;;  %v5939_v13 = vsel %vm445_vm6, %v5938_v21, %v5894_v5 }
 0xc7d   : > { %v5898_v22 = vpop.permute.xlu0 %5897 }
 0xc7e   : > { %v5940_v33 = vsel %vm447_vm7, %v5939_v13, %v5898_v22 }
 0xc7f   : > { %v5910_v36 = vpop.permute.xlu1 %5909  ;;  %v5941_v45 = vsel %vm449_vm8, %v5940_v33, %v5902_v52 }
 0xc80   : > { %v5943_v49 = vsel %vm439_vm3, %v5852_v61, %v5910_v36 }
 0xc81   : > { %v5906_v7 = vpop.permute.xlu0 %5905 }
 0xc82   : > { %v5942_v34 = vsel %vm451_vm9, %v5941_v45, %v5906_v7 }
 0xc83   : > { %5950 = vst [vmem:[#allocation3 + $0x98] sm:$0xf] %v5942_v34  ;;  %v5918_v23 = vpop.permute.xlu1 %5917 }
 0xc85   : > { %v5914_v8 = vpop.permute.xlu0 %5913 }
 0xc86   : > { %v5944_v14 = vsel %vm441_vm4, %v5943_v49, %v5914_v8  ;;  %v10859_v49 = vld [vmem:[#allocation2 + $0xa] sm:$0xff]  ;;  %v7461_v8 = vld [vmem:[#allocation2 + $0x34] sm:$0xff] }
 0xc87   : > { %v5926_v29 = vpop.permute.xlu1 %5925  ;;  %v5945_v39 = vsel %vm443_vm5, %v5944_v14, %v5918_v23  ;;  %v10855_v23 = vld [vmem:[#allocation2 + $0x12] sm:$0xff] }
 0xc88   : > { %v7459_v14 = vld [vmem:[#allocation2 + $0x14] sm:$0xff] }
 0xc89   : > { %v5922_v20 = vpop.permute.xlu0 %5921 }
 0xc8a   : > { %v5946_v57 = vsel %vm445_vm6, %v5945_v39, %v5922_v20  ;;  %v7463_v39 = vld [vmem:[#allocation2 + $0x54] sm:$0xff] }
 0xc8b   : > { %v5934_v24 = vpop.permute.xlu1 %5933  ;;  %v5947_v63 = vsel %vm447_vm7, %v5946_v57, %v5926_v29  ;;  %v7465_v29 = vld [vmem:[#allocation2 + $0x74] sm:$0xff] }
 0xc8c   : > { %v10867_v20 = vld [vmem:[#allocation2 + $0x36] sm:$0xff] }
 0xc8d   : > { %v5930_v1 = vpop.permute.xlu0 %5929  ;;  %v10871_v57 = vld [vmem:[#allocation2 + $0x16] sm:$0xff] }
 0xc8e   : > { %v5948_v47 = vsel %vm449_vm8, %v5947_v63, %v5930_v1  ;;  %v10879_v63 = vld [vmem:[#allocation2 + $0x56] sm:$0xff]  ;;  %v7460_v1 = vld [vmem:[#allocation2 + $0x2c] sm:$0xff] }
 0xc8f   : > { %v5949_v35 = vsel %vm451_vm9, %v5948_v47, %v5934_v24  ;;  %v5971_v60 = vpop.permute.xlu1 %5970  ;;  %v10875_v24 = vld [vmem:[#allocation2 + $0x76] sm:$0xff]  ;;  %v7458_v47 = vld [vmem:[#allocation2 + $0xc] sm:$0xff] }
 0xc90   : > { %5951 = vst [vmem:[#allocation3 + $0x78] sm:$0xf] %v5949_v35  ;;  %v7464_v35 = vld [vmem:[#allocation2 + $0x6c] sm:$0xff] }
 0xc91   : > { %v5969_v40 = vpop.permute.xlu0 %5968 }
 0xc93   : > { %v5975_v41 = vpop.permute.xlu1 %5974 }
 0xc95   : > { %v5973_v19 = vpop.permute.xlu0 %5972 }
 0xc97   : > { %v5979_v50 = vpop.permute.xlu1 %5978 }
 0xc98   : > { %v6060_v42 = vcombine.low %v5971_v60, %v5979_v50  ;;  %v6061_v58 = vcombine.high %v5971_v60, %v5979_v50  ;;  %v7462_v60 = vld [vmem:[#allocation2 + $0x4c] sm:$0xff] }
 0xc99   : > { %v5977_v56 = vpop.permute.xlu0 %5976  ;;  %v10899_v50 = vld [vmem:[#allocation2 + $0x4e] sm:$0xff] }
 0xc9a   : > { %v5992_v59 = vcombine.low %v5969_v40, %v5977_v56  ;;  %v5993_v10 = vcombine.high %v5969_v40, %v5977_v56  ;;  %v6068_v54 = vrot.slane %v6060_v42, %v12343_v3  ;;  %v6075_v5 = vrot.slane %v6061_v58, %v12343_v3  ;;  %v10887_v40 = vld [vmem:[#allocation2 + $0x2e] sm:$0xff] }
 0xc9b   : > { %v5983_v31 = vpop.permute.xlu1 %5982  ;;  %v6457_v56 = vld [vmem:[#allocation2 + $0x32] sm:$0xff] }
 0xc9c   : > { %v6000_v6 = vrot.slane %v5992_v59, %v12343_v3  ;;  %v6076_v26 = vcombine.low %v5975_v41, %v5983_v31  ;;  %v6007_v18 = vrot.slane %v5993_v10, %v12343_v3  ;;  %v6077_v2 = vcombine.high %v5975_v41, %v5983_v31  ;;  %v10891_v41 = vld [vmem:[#allocation2 + $0xe] sm:$0xff] }
 0xc9d   : > { %v5981_v25 = vpop.permute.xlu0 %5980  ;;  %v6461_v59 = vld [vmem:[#allocation2 + $0x72] sm:$0xff]  ;;  %v6456_v31 = vld [vmem:[#allocation2 + $0x2a] sm:$0xff] }
 0xc9e   : > { %v6008_v55 = vcombine.low %v5973_v19, %v5981_v25  ;;  %v6009_v27 = vcombine.high %v5973_v19, %v5981_v25  ;;  %v6084_v61 = vrot.slane %v6076_v26, %v12343_v3  ;;  %v6091_v48 = vrot.slane %v6077_v2, %v12343_v3  ;;  %v10895_v19 = vld [vmem:[#allocation2 + $0x6e] sm:$0xff] }
 0xc9f   : > { %v6459_v25 = vld [vmem:[#allocation2 + $0x52] sm:$0xff] }
 0xca0   : > { %v6016_v30 = vrot.slane %v6008_v55, %v12343_v3  ;;  %v6023_v4 = vrot.slane %v6009_v27, %v12343_v3  ;;  %v6092_v28 = vcombine.low %v6068_v54, %v6084_v61  ;;  %v6093_v32 = vcombine.high %v6068_v54, %v6084_v61  ;;  %v6460_v55 = vld [vmem:[#allocation2 + $0x6a] sm:$0xff] }
 0xca1   : > { %v6108_v37 = vcombine.low %v6075_v5, %v6091_v48  ;;  %v6109_v22 = vcombine.high %v6075_v5, %v6091_v48  ;;  %v6458_v27 = vld [vmem:[#allocation2 + $0x4a] sm:$0xff] }
 0xca2   : > { %v6024_v44 = vcombine.low %v6000_v6, %v6016_v30  ;;  %v6025_v62 = vcombine.high %v6000_v6, %v6016_v30  ;;  %v6040_v16 = vcombine.low %v6007_v18, %v6023_v4  ;;  %v6041_v46 = vcombine.high %v6007_v18, %v6023_v4 }
 0xca3   : > { %v10832_v51 = vrot.slane %v6092_v28, %v8843_v12  ;;  %v6107_v52 = vrot.slane %v6093_v32, %v8843_v12  ;;  %v6116_v36 = vrot.slane %v6108_v37, %v8843_v12  ;;  %v6123_v7 = vrot.slane %v6109_v22, %v8843_v12 }
 0xca4   : > { %v6039_v9 = vrot.slane %v6025_v62, %v8843_v12  ;;  %v10818_v38 = vrot.slane %v6024_v44, %v8843_v12  ;;  %v6048_v0 = vrot.slane %v6040_v16, %v8843_v12  ;;  %v6055_v53 = vrot.slane %v6041_v46, %v8843_v12 }
 0xca5   : > { %v6124_v21 = vcombine.high %v10832_v51, %v12334_v43  ;;  %v6125_v33 = vcombine.high %v6107_v52, %v12334_v43  ;;  %v6126_v45 = vcombine.high %v6116_v36, %v12334_v43  ;;  %v6127_v34 = vcombine.high %v6123_v7, %v12334_v43 }
 0xca6   : > { %6133 = vrot.lane.b32.xlu1 %v6039_v9, %s8676_s24  ;;  %v6056_v15 = vcombine.high %v10818_v38, %v12334_v43  ;;  %v6057_v17 = vcombine.high %v6039_v9, %v12334_v43  ;;  %v6058_v11 = vcombine.high %v6048_v0, %v12334_v43  ;;  %v6059_v13 = vcombine.high %v6055_v53, %v12334_v43 }
 0xca8   : > { %6129 = vrot.lane.b32.xlu0 %v6056_v15, %s8679_s27 }
 0xcaa   : > { %6141 = vrot.lane.b32.xlu1 %v6048_v0, %s8677_s25 }
 0xcac   : > { %6137 = vrot.lane.b32.xlu0 %v6057_v17, %s8680_s28 }
 0xcae   : > { %6149 = vrot.lane.b32.xlu1 %v6055_v53, %s8678_s26 }
 0xcb0   : > { %6145 = vrot.lane.b32.xlu0 %v6058_v11, %s8681_s29 }
 0xcb2   : > { %6157 = vrot.lane.b32.xlu1 %v6124_v21, %s8679_s27 }
 0xcb4   : > { %6153 = vrot.lane.b32.xlu0 %v6059_v13, %s8682_s30 }
 0xcb6   : > { %6165 = vrot.lane.b32.xlu1 %v6125_v33, %s8680_s28 }
 0xcb8   : > { %6161 = vrot.lane.b32.xlu0 %v6107_v52, %s8676_s24 }
 0xcba   : > { %6173 = vrot.lane.b32.xlu1 %v6126_v45, %s8681_s29 }
 0xcbc   : > { %6169 = vrot.lane.b32.xlu0 %v6116_v36, %s8677_s25 }
 0xcbe   : > { %6181 = vrot.lane.b32.xlu1 %v6127_v34, %s8682_s30 }
 0xcc0   : > { %6177 = vrot.lane.b32.xlu0 %v6123_v7, %s8678_s26 }
 0xcc2   : > { %6224 = vrot.lane.b32.xlu1 %v10855_v23, %s8683_s4 }
 0xcc4   : > { %6222 = vrot.lane.b32.xlu0 %v10859_v49, %s8683_s4 }
 0xcc6   : > { %7480 = vrot.lane.b32.xlu1 %v7461_v8, %s8674_s23 }
 0xcc8   : > { %7476 = vrot.lane.b32.xlu0 %v7459_v14, %s8674_s23 }
 0xcca   : > { %7488 = vrot.lane.b32.xlu1 %v7465_v29, %s8674_s23 }
 0xccc   : > { %7484 = vrot.lane.b32.xlu0 %v7463_v39, %s8674_s23 }
 0xcce   : > { %7950 = vrot.lane.b32.xlu1 %v10867_v20, %s8670_s20 }
 0xcd0   : > { %7946 = vrot.lane.b32.xlu0 %v10871_v57, %s8670_s20 }
 0xcd2   : > { %7958 = vrot.lane.b32.xlu1 %v10875_v24, %s8670_s20 }
 0xcd4   : > { %7954 = vrot.lane.b32.xlu0 %v10879_v63, %s8670_s20 }
 0xcd6   : > { %7478 = vrot.lane.b32.xlu1 %v7460_v1, %s8674_s23 }
 0xcd8   : > { %7474 = vrot.lane.b32.xlu0 %v7458_v47, %s8674_s23 }
 0xcda   : > { %7486 = vrot.lane.b32.xlu1 %v7464_v35, %s8674_s23 }
 0xcdc   : > { %7482 = vrot.lane.b32.xlu0 %v7462_v60, %s8674_s23 }
 0xcde   : > { %7948 = vrot.lane.b32.xlu1 %v10887_v40, %s8670_s20 }
 0xce0   : > { %7944 = vrot.lane.b32.xlu0 %v10891_v41, %s8670_s20 }
 0xce2   : > { %7956 = vrot.lane.b32.xlu1 %v10895_v19, %s8670_s20 }
 0xce4   : > { %7952 = vrot.lane.b32.xlu0 %v10899_v50, %s8670_s20 }
 0xce6   : > { %7232 = vrot.lane.b32.xlu1 %v7461_v8, %s8670_s20 }
 0xce8   : > { %7228 = vrot.lane.b32.xlu0 %v7459_v14, %s8670_s20 }
 0xcea   : > { %7240 = vrot.lane.b32.xlu1 %v7465_v29, %s8670_s20 }
 0xcec   : > { %7236 = vrot.lane.b32.xlu0 %v7463_v39, %s8670_s20 }
 0xcee   : > { %7230 = vrot.lane.b32.xlu1 %v7460_v1, %s8670_s20 }
 0xcf0   : > { %7226 = vrot.lane.b32.xlu0 %v7458_v47, %s8670_s20 }
 0xcf2   : > { %7238 = vrot.lane.b32.xlu1 %v7464_v35, %s8670_s20 }
 0xcf4   : > { %7234 = vrot.lane.b32.xlu0 %v7462_v60, %s8670_s20 }
 0xcf6   : > { %6476 = vrot.lane.b32.xlu1 %v6457_v56, %s8670_s20 }
 0xcf8   : > { %6472 = vrot.lane.b32.xlu0 %v10855_v23, %s8670_s20 }
 0xcfa   : > { %6484 = vrot.lane.b32.xlu1 %v6461_v59, %s8670_s20 }
 0xcfc   : > { %6480 = vrot.lane.b32.xlu0 %v6459_v25, %s8670_s20 }
 0xcfe   : > { %6978 = vrot.lane.b32.xlu1 %v7461_v8, %s8673_s22 }
 0xd00   : > { %6974 = vrot.lane.b32.xlu0 %v7459_v14, %s8673_s22 }
 0xd02   : > { %6986 = vrot.lane.b32.xlu1 %v7465_v29, %s8673_s22 }
 0xd04   : > { %6982 = vrot.lane.b32.xlu0 %v7463_v39, %s8673_s22 }
 0xd06   : > { %6474 = vrot.lane.b32.xlu1 %v6456_v31, %s8670_s20 }
 0xd08   : > { %6470 = vrot.lane.b32.xlu0 %v10859_v49, %s8670_s20 }
 0xd0a   : > { %6482 = vrot.lane.b32.xlu1 %v6460_v55, %s8670_s20 }
 0xd0c   : > { %6478 = vrot.lane.b32.xlu0 %v6458_v27, %s8670_s20 }
 0xd0e   : > { %6976 = vrot.lane.b32.xlu1 %v7460_v1, %s8673_s22 }
 0xd10   : > { %6972 = vrot.lane.b32.xlu0 %v7458_v47, %s8673_s22 }
 0xd12   : > { %6984 = vrot.lane.b32.xlu1 %v7464_v35, %s8673_s22 }
 0xd14   : > { %6980 = vrot.lane.b32.xlu0 %v7462_v60, %s8673_s22 }
 0xd16   : > { %6232 = vrot.lane.b32.xlu1 %v6459_v25, %s8683_s4 }
 0xd18   : > { %v6134_v10 = vpop.permute.xlu1 %6133  ;;  %6228 = vrot.lane.b32.xlu0 %v6457_v56, %s8683_s4 }
 0xd1a   : > { %6726 = vrot.lane.b32.xlu1 %v10855_v23, %s8684_s5  ;;  %v6130_v6 = vpop.permute.xlu0 %6129 }
 0xd1b   : > { %v6184_v26 = vsel %vm439_vm3, %v10818_v38, %v6130_v6 }
 0xd1c   : > { %v6142_v30 = vpop.permute.xlu1 %6141  ;;  %6236 = vrot.lane.b32.xlu0 %v6461_v59, %s8683_s4  ;;  %v6185_v4 = vsel %vm441_vm4, %v6184_v26, %v6134_v10 }
 0xd1e   : > { %6734 = vrot.lane.b32.xlu1 %v6459_v25, %s8684_s5  ;;  %v6138_v42 = vpop.permute.xlu0 %6137 }
 0xd1f   : > { %v6186_v18 = vsel %vm443_vm5, %v6185_v4, %v6138_v42 }
 0xd20   : > { %v6150_v44 = vpop.permute.xlu1 %6149  ;;  %6730 = vrot.lane.b32.xlu0 %v6457_v56, %s8684_s5  ;;  %v6187_v62 = vsel %vm445_vm6, %v6186_v18, %v6142_v30 }
 0xd22   : > { %6226 = vrot.lane.b32.xlu1 %v6456_v31, %s8683_s4  ;;  %v6146_v61 = vpop.permute.xlu0 %6145 }
 0xd23   : > { %v6188_v16 = vsel %vm447_vm7, %v6187_v62, %v6146_v61  ;;  %v7804_v61 = vcombine.low %v10867_v20, %v10875_v24 }
 0xd24   : > { %v6158_v9 = vpop.permute.xlu1 %6157  ;;  %6738 = vrot.lane.b32.xlu0 %v6461_v59, %s8684_s5  ;;  %v6189_v38 = vsel %vm449_vm8, %v6188_v16, %v6150_v44 }
 0xd25   : > { %v6191_v46 = vsel %vm439_vm3, %v10832_v51, %v6158_v9 }
 0xd26   : > { %6234 = vrot.lane.b32.xlu1 %v6460_v55, %s8683_s4  ;;  %v6154_v54 = vpop.permute.xlu0 %6153 }
 0xd27   : > { %v6190_v15 = vsel %vm451_vm9, %v6189_v38, %v6154_v54  ;;  %v7788_v54 = vcombine.low %v10871_v57, %v10879_v63 }
 0xd28   : > { %v6200_v2 = vrot.slane %v6190_v15, 4  ;;  %v6166_v28 = vpop.permute.xlu1 %6165  ;;  %6230 = vrot.lane.b32.xlu0 %v6458_v27, %s8683_s4 }
 0xd2a   : > { %6204 = vst [vmem:[#allocation3 + $0x98] sm:$0xf0] %v6200_v2  ;;  %6728 = vrot.lane.b32.xlu1 %v6456_v31, %s8684_s5  ;;  %v6162_v0 = vpop.permute.xlu0 %6161 }
 0xd2b   : > { %v6192_v58 = vsel %vm441_vm4, %v6191_v46, %v6162_v0 }
 0xd2c   : > { %v6174_v17 = vpop.permute.xlu1 %6173  ;;  %6724 = vrot.lane.b32.xlu0 %v10859_v49, %s8684_s5  ;;  %v6193_v48 = vsel %vm443_vm5, %v6192_v58, %v6166_v28 }
 0xd2e   : > { %6736 = vrot.lane.b32.xlu1 %v6460_v55, %s8684_s5  ;;  %v6170_v32 = vpop.permute.xlu0 %6169 }
 0xd2f   : > { %v6194_v53 = vsel %vm445_vm6, %v6193_v48, %v6170_v32 }
 0xd30   : > { %v6182_v5 = vpop.permute.xlu1 %6181  ;;  %6732 = vrot.lane.b32.xlu0 %v6458_v27, %s8684_s5  ;;  %v6195_v51 = vsel %vm447_vm7, %v6194_v53, %v6174_v17 }
 0xd32   : > { %8200 = vrot.lane.b32.xlu1 %v10871_v57, %s8672_s21  ;;  %v6178_v11 = vpop.permute.xlu0 %6177 }
 0xd33   : > { %v6196_v37 = vsel %vm449_vm8, %v6195_v51, %v6178_v11 }
 0xd34   : > { %v6197_v21 = vsel %vm451_vm9, %v6196_v37, %v6182_v5  ;;  %v10963_v52 = vpop.permute.xlu1 %6224  ;;  %8198 = vrot.lane.b32.xlu0 %v10891_v41, %s8672_s21 }
 0xd35   : > { %v6201_v13 = vrot.slane %v6197_v21, 4 }
 0xd36   : > { %8204 = vrot.lane.b32.xlu1 %v10867_v20, %s8672_s21  ;;  %v10969_v22 = vpop.permute.xlu0 %6222  ;;  %v11049_v20 = vrot.slane %v7804_v61, %v12343_v3 }
 0xd37   : > { %6205 = vst [vmem:[#allocation3 + $0x78] sm:$0xf0] %v6201_v13 }
 0xd38   : > { %v10971_v33 = vpop.permute.xlu1 %7480  ;;  %8202 = vrot.lane.b32.xlu0 %v10887_v40, %s8672_s21 }
 0xd3a   : > { %8208 = vrot.lane.b32.xlu1 %v10879_v63, %s8672_s21  ;;  %v10977_v36 = vpop.permute.xlu0 %7476  ;;  %v11061_v63 = vrot.slane %v7788_v54, %v12343_v3 }
 0xd3c   : > { %v10979_v45 = vpop.permute.xlu1 %7488  ;;  %8206 = vrot.lane.b32.xlu0 %v10899_v50, %s8672_s21  ;;  %v7820_v5 = vcombine.low %v11061_v63, %v11049_v20 }
 0xd3d   : > { %v7582_v7 = vcombine.low %v10971_v33, %v10979_v45 }
 0xd3e   : > { %8212 = vrot.lane.b32.xlu1 %v10875_v24, %s8672_s21  ;;  %v10987_v34 = vpop.permute.xlu0 %7484 }
 0xd3f   : > { %v7566_v23 = vcombine.low %v10977_v36, %v10987_v34  ;;  %v7590_v8 = vrot.slane %v7582_v7, %v12343_v3 }
 0xd40   : > { %v10991_v49 = vpop.permute.xlu1 %7950  ;;  %8210 = vrot.lane.b32.xlu0 %v10895_v19, %s8672_s21 }
 0xd41   : > { %v7574_v14 = vrot.slane %v7566_v23, %v12343_v3  ;;  %v11090_v23 = vrot.slane %v7820_v5, %v8843_v12 }
 0xd42   : > { %v10997_v29 = vpop.permute.xlu0 %7946 }
 0xd43   : > { %v7598_v39 = vcombine.low %v7574_v14, %v7590_v8  ;;  %v7599_v18 = vcombine.high %v7574_v14, %v7590_v8  ;;  %12352 = vst [vmem:[#allocation9_spill] sm:$0xff] %v11090_v23 }
 0xd44   : > { %v10999_v1 = vpop.permute.xlu1 %7958 }
 0xd45   : > { %v8052_v47 = vcombine.low %v10991_v49, %v10999_v1  ;;  %v11004_v35 = vrot.slane %v7598_v39, %v8843_v12  ;;  %v11046_v46 = vrot.slane %v7599_v18, %v8843_v12  ;;  %v8053_v5 = vcombine.high %v10991_v49, %v10999_v1 }
 0xd46   : > { %v11006_v60 = vpop.permute.xlu0 %7954 }
 0xd47   : > { %12349 = vst [vmem:[#allocation7_spill] sm:$0xff] %v11004_v35  ;;  %v8036_v56 = vcombine.low %v10997_v29, %v11006_v60  ;;  %v7630_v25 = vcombine.high %v11004_v35, %v12334_v43  ;;  %v8060_v31 = vrot.slane %v8052_v47, %v12343_v3  ;;  %v7567_v47 = vcombine.high %v10977_v36, %v10987_v34 }
 0xd48   : > { %v11010_v59 = vpop.permute.xlu1 %7478 }
 0xd49   : > { %v8044_v55 = vrot.slane %v8036_v56, %v12343_v3  ;;  %7663 = vrot.lane.b32.xlu0 %v7630_v25, %s8679_s27  ;;  %v11120_v34 = vrot.slane %v7567_v47, %v12343_v3  ;;  %v7736_v47 = vcombine.low %v10887_v40, %v10895_v19 }
 0xd4a   : > { %v11017_v27 = vpop.permute.xlu0 %7474 }
 0xd4b   : > { %v8068_v10 = vcombine.low %v8044_v55, %v8060_v31  ;;  %v8069_v2 = vcombine.high %v8044_v55, %v8060_v31  ;;  %v7852_v31 = vcombine.high %v11090_v23, %v12334_v43 }
 0xd4c   : > { %v11019_v6 = vpop.permute.xlu1 %7486 }
 0xd4d   : > { %v7514_v26 = vcombine.low %v11010_v59, %v11019_v6  ;;  %v11024_v30 = vrot.slane %v8068_v10, %v8843_v12  ;;  %v8083_v32 = vrot.slane %v8069_v2, %v8843_v12  ;;  %v7583_v10 = vcombine.high %v10971_v33, %v10979_v45 }
 0xd4e   : > { %v11026_v4 = vpop.permute.xlu0 %7482 }
 0xd4f   : > { %12350 = vst [vmem:[#allocation4_spill] sm:$0xff] %v11024_v30  ;;  %v7498_v42 = vcombine.low %v11017_v27, %v11026_v4  ;;  %v8100_v62 = vcombine.high %v11024_v30, %v12334_v43  ;;  %v7522_v16 = vrot.slane %v7514_v26, %v12343_v3  ;;  %v11126_v33 = vrot.slane %v7583_v10, %v12343_v3 }
 0xd50   : > { %v11030_v44 = vpop.permute.xlu1 %7948  ;;  %v11181_v10 = vrot.slane %v8053_v5, %v12343_v3 }
 0xd51   : > { %v7506_v9 = vrot.slane %v7498_v42, %v12343_v3  ;;  %8133 = vrot.lane.b32.xlu1 %v8100_v62, %s8679_s27 }
 0xd52   : > { %v11039_v38 = vpop.permute.xlu0 %7944 }
 0xd53   : > { %v7530_v15 = vcombine.low %v7506_v9, %v7522_v16  ;;  %v7531_v17 = vcombine.high %v7506_v9, %v7522_v16  ;;  %v8101_v16 = vcombine.high %v8083_v32, %v12334_v43 }
 0xd54   : > { %v11043_v28 = vpop.permute.xlu1 %7956 }
 0xd55   : > { %v7984_v24 = vcombine.low %v11030_v44, %v11043_v28  ;;  %v11054_v0 = vrot.slane %v7530_v15, %v8843_v12  ;;  %7667 = vrot.lane.b32.xlu1 %v11046_v46, %s8676_s24  ;;  %v11087_v7 = vrot.slane %v7531_v17, %v8843_v12  ;;  %v7614_v15 = vcombine.low %v11120_v34, %v11126_v33 }
 0xd56   : > { %v11058_v57 = vpop.permute.xlu0 %7952 }
 0xd57   : > { %12351 = vst [vmem:[#allocation8_spill] sm:$0xff] %v11054_v0  ;;  %v7968_v58 = vcombine.low %v11039_v38, %v11058_v57  ;;  %v7562_v53 = vcombine.high %v11054_v0, %v12334_v43  ;;  %v11073_v51 = vrot.slane %v7984_v24, %v12343_v3  ;;  %v8037_v24 = vcombine.high %v10997_v29, %v11006_v60 }
 0xd58   : > { %v11065_v48 = vpop.permute.xlu1 %7232  ;;  %v11163_v60 = vrot.slane %v7614_v15, %v8843_v12 }
 0xd59   : > { %v11076_v11 = vrot.slane %v7968_v58, %v12343_v3  ;;  %8137 = vrot.lane.b32.xlu1 %v8083_v32, %s8676_s24  ;;  %7635 = vrot.lane.b32.xlu0 %v7562_v53, %s8679_s27  ;;  %v11170_v49 = vrot.slane %v8037_v24, %v12343_v3 }
 0xd5a   : > { %v11080_v37 = vpop.permute.xlu0 %7228 }
 0xd5b   : > { %v8000_v21 = vcombine.low %v11076_v11, %v11073_v51  ;;  %v8001_v1 = vcombine.high %v11076_v11, %v11073_v51  ;;  %v11191_v51 = vrot.slane %v7736_v47, %v12343_v3  ;;  %v8084_v11 = vcombine.low %v11170_v49, %v11181_v10 }
 0xd5c   : > { %v11084_v13 = vpop.permute.xlu1 %7240 }
 0xd5d   : > { %v7334_v8 = vcombine.low %v11065_v48, %v11084_v13  ;;  %v11095_v14 = vrot.slane %v8000_v21, %v8843_v12  ;;  %7639 = vrot.lane.b32.xlu1 %v11087_v7, %s8676_s24 }
 0xd5e   : > { %v11099_v39 = vpop.permute.xlu0 %7236 }
 0xd5f   : > { %12353 = vst [vmem:[#allocation10_spill] sm:$0xff] %v11095_v14  ;;  %v7318_v56 = vcombine.low %v11080_v37, %v11099_v39  ;;  %v8032_v55 = vcombine.high %v11095_v14, %v12334_v43  ;;  %v7342_v26 = vrot.slane %v7334_v8, %v12343_v3  ;;  %v7821_v8 = vcombine.high %v11061_v63, %v11049_v20 }
 0xd60   : > { %v11105_v25 = vpop.permute.xlu1 %7230  ;;  %v7720_v63 = vcombine.low %v10891_v41, %v10899_v50 }
 0xd61   : > { %v7326_v42 = vrot.slane %v7318_v56, %v12343_v3  ;;  %7885 = vrot.lane.b32.xlu1 %v7852_v31, %s8679_s27  ;;  %8105 = vrot.lane.b32.xlu0 %v8032_v55, %s8679_s27  ;;  %v7631_v55 = vcombine.high %v11046_v46, %v12334_v43 }
 0xd62   : > { %v11117_v36 = vpop.permute.xlu0 %7226 }
 0xd63   : > { %v7350_v18 = vcombine.low %v7326_v42, %v7342_v26  ;;  %v7351_v62 = vcombine.high %v7326_v42, %v7342_v26  ;;  %v11198_v26 = vrot.slane %v7821_v8, %v8843_v12  ;;  %v8015_v42 = vrot.slane %v8001_v1, %v8843_v12 }
 0xd64   : > { %v11122_v61 = vpop.permute.xlu1 %7238 }
 0xd65   : > { %v11129_v45 = vrot.slane %v7350_v18, %v8843_v12  ;;  %v7266_v9 = vcombine.low %v11105_v25, %v11122_v61  ;;  %8141 = vrot.lane.b32.xlu1 %v8101_v16, %s8680_s28  ;;  %v11145_v17 = vrot.slane %v7351_v62, %v8843_v12  ;;  %v11210_v16 = vrot.slane %v7720_v63, %v12343_v3 }
 0xd66   : > { %v11134_v54 = vpop.permute.xlu0 %7234  ;;  %v7563_v63 = vcombine.high %v11087_v7, %v12334_v43  ;;  %v8033_v30 = vcombine.high %v8015_v42, %v12334_v43 }
 0xd67   : > { %12354 = vst [vmem:[#allocation11_spill] sm:$0xff] %v11129_v45  ;;  %v7250_v2 = vcombine.low %v11117_v36, %v11134_v54  ;;  %v7382_v32 = vcombine.high %v11129_v45, %v12334_v43  ;;  %v11155_v21 = vrot.slane %v7266_v9, %v12343_v3 }
 0xd68   : > { %v11142_v58 = vpop.permute.xlu1 %6476 }
 0xd69   : > { %v11150_v53 = vrot.slane %v7250_v2, %v12343_v3  ;;  %7419 = vrot.lane.b32.xlu1 %v11145_v17, %s8676_s24  ;;  %7415 = vrot.lane.b32.xlu0 %v7382_v32, %s8679_s27  ;;  %v11217_v2 = vrot.slane %v8084_v11, %v8843_v12  ;;  %v7752_v32 = vcombine.low %v11210_v16, %v11191_v51 }
 0xd6a   : > { %v11160_v29 = vpop.permute.xlu0 %6472 }
 0xd6b   : > { %v7282_v56 = vcombine.low %v11150_v53, %v11155_v21  ;;  %v11242_v11 = vrot.slane %v7752_v32, %v8843_v12 }
 0xd6c   : > { %v11176_v31 = vpop.permute.xlu1 %6484 }
 0xd6d   : > { %7675 = vrot.lane.b32.xlu1 %v11163_v60, %s8677_s25  ;;  %7671 = vrot.lane.b32.xlu0 %v7631_v55, %s8680_s28  ;;  %v11202_v18 = vrot.slane %v7282_v56, %v8843_v12  ;;  %v6578_v8 = vcombine.low %v11142_v58, %v11176_v31  ;;  %12356 = vst [vmem:[#allocation13_spill] sm:$0xff] %v11242_v11 }
 0xd6e   : > { %v11186_v20 = vpop.permute.xlu0 %6480 }
 0xd6f   : > { %12355 = vst [vmem:[#allocation12_spill] sm:$0xff] %v11202_v18  ;;  %v6562_v9 = vcombine.low %v11160_v29, %v11186_v20  ;;  %v7314_v24 = vcombine.high %v11202_v18, %v12334_v43  ;;  %v11251_v45 = vrot.slane %v6578_v8, %v12343_v3 }
 0xd70   : > { %v11195_v46 = vpop.permute.xlu1 %6978 }
 0xd71   : > { %7889 = vrot.lane.b32.xlu1 %v11198_v26, %s8676_s24  ;;  %8109 = vrot.lane.b32.xlu0 %v8015_v42, %s8676_s24  ;;  %v11235_v56 = vrot.slane %v6562_v9, %v12343_v3 }
 0xd72   : > { %v11207_v62 = vpop.permute.xlu0 %6974 }
 0xd73   : > { %v6594_v7 = vcombine.low %v11235_v56, %v11251_v45 }
 0xd74   : > { %v11214_v15 = vpop.permute.xlu1 %6986 }
 0xd75   : > { %v7080_v5 = vcombine.low %v11195_v46, %v11214_v15  ;;  %8145 = vrot.lane.b32.xlu1 %v11217_v2, %s8677_s25  ;;  %7387 = vrot.lane.b32.xlu0 %v7314_v24, %s8679_s27  ;;  %v11278_v35 = vrot.slane %v6594_v7, %v8843_v12 }
 0xd76   : > { %v11230_v47 = vpop.permute.xlu0 %6982 }
 0xd77   : > { %v7064_v1 = vcombine.low %v11207_v62, %v11230_v47  ;;  %v11245_v23 = vrot.slane %v7080_v5, %v12343_v3  ;;  %v7784_v5 = vcombine.high %v11242_v11, %v12334_v43  ;;  %12359 = vst [vmem:[#allocation16_spill] sm:$0xff] %v11278_v35  ;;  %v6626_v7 = vcombine.high %v11278_v35, %v12334_v43 }
 0xd78   : > { %v11237_v55 = vpop.permute.xlu1 %6474 }
 0xd79   : > { %v11248_v24 = vrot.slane %v7064_v1, %v12343_v3  ;;  %7643 = vrot.lane.b32.xlu0 %v7563_v63, %s8680_s28  ;;  %v7499_v63 = vcombine.high %v11017_v27, %v11026_v4  ;;  %v7283_v4 = vcombine.high %v11150_v53, %v11155_v21  ;;  %v7969_v53 = vcombine.high %v11039_v38, %v11058_v57 }
 0xd7a   : > { %v11254_v9 = vpop.permute.xlu0 %6470 }
 0xd7b   : > { %v7096_v14 = vcombine.low %v11248_v24, %v11245_v23  ;;  %v11287_v27 = vrot.slane %v7499_v63, %v12343_v3  ;;  %v11322_v38 = vrot.slane %v7969_v53, %v12343_v3 }
 0xd7c   : > { %v11260_v32 = vpop.permute.xlu1 %6482 }
 0xd7d   : > { %v11265_v1 = vrot.slane %v7096_v14, %v8843_v12  ;;  %7857 = vrot.lane.b32.xlu0 %v7784_v5, %s8679_s27  ;;  %v7515_v14 = vcombine.high %v11010_v59, %v11019_v6  ;;  %v7383_v59 = vcombine.high %v11145_v17, %v12334_v43  ;;  %v7297_v17 = vrot.slane %v7283_v4, %v8843_v12 }
 0xd7e   : > { %v11268_v8 = vpop.permute.xlu0 %6478  ;;  %v7753_v4 = vcombine.high %v11210_v16, %v11191_v51 }
 0xd7f   : > { %12357 = vst [vmem:[#allocation14_spill] sm:$0xff] %v11265_v1  ;;  %v7128_v18 = vcombine.high %v11265_v1, %v12334_v43  ;;  %v11298_v6 = vrot.slane %v7515_v14, %v12343_v3  ;;  %v7632_v14 = vcombine.high %v11163_v60, %v12334_v43 }
 0xd80   : > { %v11272_v0 = vpop.permute.xlu1 %6976 }
 0xd81   : > { %12358 = vst [vmem:[#allocation15_spill] sm:$0xff] %v11272_v0  ;;  %8113 = vrot.lane.b32.xlu0 %v8033_v30, %s8680_s28  ;;  %7161 = vrot.lane.b32.xlu1 %v7128_v18, %s8679_s27  ;;  %v7546_v21 = vcombine.low %v11287_v27, %v11298_v6  ;;  %v6494_v18 = vcombine.low %v11254_v9, %v11268_v8 }
 0xd82   : > { %v11284_v5 = vpop.permute.xlu0 %6972 }
 0xd83   : > { %12360 = vst [vmem:[#allocation17_spill] sm:$0xff] %v11284_v5  ;;  %v11329_v60 = vrot.slane %v6494_v18, %v12343_v3  ;;  %v7554_v11 = vrot.slane %v7546_v21, %v8843_v12  ;;  %v7319_v21 = vcombine.high %v11080_v37, %v11099_v39  ;;  %v6595_v18 = vcombine.high %v11235_v56, %v11251_v45 }
 0xd84   : > { %v11291_v42 = vpop.permute.xlu1 %6984  ;;  %v7335_v37 = vcombine.high %v11065_v48, %v11084_v13 }
 0xd85   : > { %12361 = vst [vmem:[#allocation18_spill] sm:$0xff] %v11291_v42  ;;  %6659 = vrot.lane.b32.xlu0 %v6626_v7, %s8679_s27  ;;  %7423 = vrot.lane.b32.xlu1 %v7383_v59, %s8680_s28  ;;  %v7985_v7 = vcombine.high %v11030_v44, %v11043_v28  ;;  %v6510_v59 = vcombine.low %v11237_v55, %v11260_v32 }
 0xd86   : > { %v11302_v30 = vpop.permute.xlu0 %6980  ;;  %v7012_v51 = vcombine.low %v11272_v0, %v11291_v42  ;;  %v11374_v45 = vrot.slane %v7319_v21, %v12343_v3  ;;  %v11382_v48 = vrot.slane %v6595_v18, %v8843_v12 }
 0xd87   : > { %12362 = vst [vmem:[#allocation19_spill] sm:$0xff] %v11302_v30  ;;  %v6996_v44 = vcombine.low %v11284_v5, %v11302_v30  ;;  %v11339_v53 = vrot.slane %v7985_v7, %v12343_v3  ;;  %v11342_v35 = vrot.slane %v6510_v59, %v12343_v3 }
 0xd88   : > { %v11310_v63 = vpop.permute.xlu1 %6232  ;;  %v11369_v39 = vrot.slane %v7012_v51, %v12343_v3 }
 0xd89   : > { %7391 = vrot.lane.b32.xlu0 %v7297_v17, %s8676_s24  ;;  %7679 = vrot.lane.b32.xlu1 %v7632_v14, %s8681_s29  ;;  %v7853_v14 = vcombine.high %v11198_v26, %v12334_v43  ;;  %v8016_v16 = vcombine.low %v11322_v38, %v11339_v53  ;;  %v7767_v26 = vrot.slane %v7753_v4, %v8843_v12 }
 0xd8a   : > { %v11324_v57 = vpop.permute.xlu0 %6228  ;;  %v6526_v7 = vcombine.low %v11329_v60, %v11342_v35  ;;  %v11358_v59 = vrot.slane %v6996_v44, %v12343_v3  ;;  %v11388_v44 = vrot.slane %v7335_v37, %v12343_v3 }
 0xd8b   : > { %12363 = vst [vmem:[#allocation20_spill] sm:$0xff] %v11324_v57  ;;  %v8024_v56 = vrot.slane %v8016_v16, %v8843_v12 }
 0xd8c   : > { %v11333_v28 = vpop.permute.xlu1 %6726  ;;  %v7028_v4 = vcombine.low %v11358_v59, %v11369_v39  ;;  %v11385_v13 = vrot.slane %v6526_v7, %v8843_v12  ;;  %v7615_v7 = vcombine.high %v11120_v34, %v11126_v33 }
 0xd8d   : > { %12364 = vst [vmem:[#allocation21_spill] sm:$0xff] %v11333_v28  ;;  %7647 = vrot.lane.b32.xlu0 %v7554_v11, %s8677_s25  ;;  %7893 = vrot.lane.b32.xlu1 %v7853_v14, %s8680_s28  ;;  %v8102_v14 = vcombine.high %v11217_v2, %v12334_v43  ;;  %v7097_v2 = vcombine.high %v11248_v24, %v11245_v23 }
 0xd8e   : > { %v11364_v0 = vpop.permute.xlu0 %6236  ;;  %12366 = vst [vmem:[#allocation23_spill] sm:$0xff] %v11385_v13  ;;  %v7366_v24 = vcombine.low %v11374_v45, %v11388_v44  ;;  %v6558_v21 = vcombine.high %v11385_v13, %v12334_v43  ;;  %v11403_v18 = vrot.slane %v7028_v4, %v8843_v12  ;;  %v12370_v4 = vld [vmem:[#allocation5_spill] sm:$0xff]  ;;  %v12371_v13 = vld [vmem:[#allocation6_spill] sm:$0xff]  ;;  %v7629_v33 = vrot.slane %v7615_v7, %v8843_v12 }
 0xd8f   : > { %v7111_v16 = vrot.slane %v7097_v2, %v8843_v12  ;;  %v7836_v5 = vcombine.low %v12371_v13, %v12370_v4  ;;  %v8085_v7 = vcombine.high %v11170_v49, %v11181_v10  ;;  %v7785_v49 = vcombine.high %v7767_v26, %v12334_v43 }
 0xd90   : > { %v11360_v1 = vpop.permute.xlu1 %6734  ;;  %12368 = vst [vmem:[#allocation25_spill] sm:$0xff] %v11403_v18  ;;  %v7374_v37 = vrot.slane %v7366_v24, %v8843_v12  ;;  %v7060_v2 = vcombine.high %v11403_v18, %v12334_v43  ;;  %v7315_v24 = vcombine.high %v7297_v17, %v12334_v43  ;;  %v6314_v18 = vcombine.low %v10963_v52, %v11310_v63 }
 0xd91   : > { %12365 = vst [vmem:[#allocation22_spill] sm:$0xff] %v11360_v1  ;;  %7861 = vrot.lane.b32.xlu0 %v7767_v26, %s8676_s24  ;;  %8149 = vrot.lane.b32.xlu1 %v8102_v14, %s8681_s29  ;;  %v6816_v30 = vcombine.low %v11333_v28, %v11360_v1  ;;  %v7564_v28 = vcombine.high %v7554_v11, %v12334_v43 }
 0xd92   : > { %v11395_v23 = vpop.permute.xlu0 %6730  ;;  %v11447_v1 = vrot.slane %v6314_v18, %v12343_v3  ;;  %v6527_v10 = vcombine.high %v11329_v60, %v11342_v35  ;;  %v8034_v35 = vcombine.high %v8024_v56, %v12334_v43 }
 0xd93   : > { %12367 = vst [vmem:[#allocation24_spill] sm:$0xff] %v11395_v23 }
 0xd94   : > { %v11390_v51 = vpop.permute.xlu1 %6226 }
 0xd95   : > { %8117 = vrot.lane.b32.xlu0 %v8024_v56, %s8677_s25  ;;  %6663 = vrot.lane.b32.xlu1 %v11382_v48, %s8676_s24 }
 0xd96   : > { %v11414_v42 = vpop.permute.xlu0 %6738 }
 0xd97   : > { %12369 = vst [vmem:[#allocation26_spill] sm:$0xff] %v11414_v42  ;;  %v6832_v34 = vcombine.low %v11395_v23, %v11414_v42  ;;  %v11450_v42 = vrot.slane %v6816_v30, %v12343_v3 }
 0xd98   : > { %v11409_v14 = vpop.permute.xlu1 %6234 }
 0xd99   : > { %7165 = vrot.lane.b32.xlu1 %v7111_v16, %s8676_s24  ;;  %6631 = vrot.lane.b32.xlu0 %v6558_v21, %s8679_s27  ;;  %v6330_v21 = vcombine.low %v11324_v57, %v11364_v0  ;;  %v11435_v57 = vrot.slane %v7836_v5, %v8843_v12  ;;  %v11443_v23 = vrot.slane %v6832_v34, %v12343_v3 }
 0xd9a   : > { %v11462_v18 = vpop.permute.xlu0 %6230 }
 0xd9b   : > { %v11440_v17 = vrot.slane %v6330_v21, %v12343_v3  ;;  %v6848_v11 = vcombine.low %v11450_v42, %v11443_v23  ;;  %v8099_v21 = vrot.slane %v8085_v7, %v8843_v12  ;;  %v7251_v7 = vcombine.high %v11117_v36, %v11134_v54 }
 0xd9d   : > { %7427 = vrot.lane.b32.xlu1 %v7374_v37, %s8677_s25  ;;  %7133 = vrot.lane.b32.xlu0 %v7060_v2, %s8679_s27  ;;  %v11430_v2 = vpop.permute.xlu1 %6728  ;;  %v6346_v5 = vcombine.low %v11447_v1, %v11440_v17  ;;  %v11477_v26 = vrot.slane %v6848_v11, %v8843_v12  ;;  %v7029_v11 = vcombine.high %v11358_v59, %v11369_v39 }
 0xd9e   : > { %v11479_v34 = vpop.permute.xlu0 %6724 }
 0xd9f   : > { %v11474_v60 = vrot.slane %v6346_v5, %v8843_v12  ;;  %12373 = vst [vmem:[#allocation6_spill] sm:$0xff] %v11477_v26  ;;  %v11497_v5 = vrot.slane %v7251_v7, %v12343_v3  ;;  %v11518_v39 = vrot.slane %v7029_v11, %v8843_v12 }
 0xda1   : > { %7683 = vrot.lane.b32.xlu1 %v7629_v33, %s8678_s26  ;;  %7395 = vrot.lane.b32.xlu0 %v7315_v24, %s8680_s28  ;;  %v11464_v30 = vpop.permute.xlu1 %6736  ;;  %12372 = vst [vmem:[#allocation5_spill] sm:$0xff] %v11474_v60  ;;  %v6378_v56 = vcombine.high %v11474_v60, %v12334_v43 }
 0xda2   : > { %v11501_v36 = vpop.permute.xlu0 %6732 }
 0xda5   : > { %7897 = vrot.lane.b32.xlu1 %v11435_v57, %s8677_s25  ;;  %7651 = vrot.lane.b32.xlu0 %v7564_v28, %s8681_s29  ;;  %v11470_v28 = vrot.slane %v6527_v10, %v8843_v12  ;;  %v11481_v24 = vpop.permute.xlu1 %8200  ;;  %v7267_v10 = vcombine.high %v11105_v25, %v11122_v61  ;;  %v7737_v61 = vcombine.high %v10887_v40, %v10895_v19 }
 0xda6   : > { %v11523_v7 = vpop.permute.xlu0 %8198  ;;  %v7547_v19 = vcombine.high %v11287_v27, %v11298_v6  ;;  %v6563_v27 = vcombine.high %v11160_v29, %v11186_v20  ;;  %v8017_v20 = vcombine.high %v11322_v38, %v11339_v53  ;;  %v6764_v53 = vcombine.low %v11430_v2, %v11464_v30 }
 0xda7   : > { %v11509_v25 = vrot.slane %v7267_v10, %v12343_v3  ;;  %v11531_v40 = vrot.slane %v7737_v61, %v12343_v3  ;;  %v7854_v61 = vcombine.high %v11435_v57, %v12334_v43  ;;  %v6347_v57 = vcombine.high %v11447_v1, %v11440_v17 }
 0xda8   : > { %v8031_v17 = vrot.slane %v8017_v20, %v8843_v12  ;;  %v6849_v20 = vcombine.high %v11450_v42, %v11443_v23 }
 0xda9   : > { %8153 = vrot.lane.b32.xlu1 %v8099_v21, %s8678_s26  ;;  %7865 = vrot.lane.b32.xlu0 %v7785_v49, %s8680_s28  ;;  %v6880_v49 = vcombine.high %v11477_v26, %v12334_v43  ;;  %v11503_v54 = vpop.permute.xlu1 %8204  ;;  %v7129_v26 = vcombine.high %v7111_v16, %v12334_v43  ;;  %v7298_v59 = vcombine.low %v11497_v5, %v11509_v25 }
 0xdaa   : > { %v7721_v16 = vcombine.high %v10891_v41, %v10899_v50  ;;  %v7633_v50 = vcombine.high %v7629_v33, %v12334_v43  ;;  %v11556_v33 = vpop.permute.xlu0 %8202 }
 0xdab   : > { %v11538_v41 = vrot.slane %v7298_v59, %v8843_v12  ;;  %v6579_v59 = vcombine.high %v11142_v58, %v11176_v31  ;;  %v6748_v31 = vcombine.low %v11479_v34, %v11501_v36 }
 0xdad   : > { %6635 = vrot.lane.b32.xlu1 %v11470_v28, %s8676_s24  ;;  %8121 = vrot.lane.b32.xlu0 %v8034_v35, %s8681_s29  ;;  %v6627_v35 = vcombine.high %v11382_v48, %v12334_v43  ;;  %v7384_v48 = vcombine.high %v7374_v37, %v12334_v43  ;;  %v6246_v37 = vcombine.low %v10969_v22, %v11462_v18 }
 0xdae   : > { %v11589_v38 = vrot.slane %v6579_v59, %v12343_v3  ;;  %v7081_v59 = vcombine.high %v11195_v46, %v11214_v15 }
 0xdaf   : > { %v11554_v10 = vrot.slane %v6246_v37, %v12343_v3  ;;  %v8103_v37 = vcombine.high %v8099_v21, %v12334_v43  ;;  %v7065_v21 = vcombine.high %v11207_v62, %v11230_v47 }
 0xdb1   : > { %6411 = vrot.lane.b32.xlu0 %v6378_v56, %s8679_s27  ;;  %6913 = vrot.lane.b32.xlu1 %v6880_v49, %s8679_s27  ;;  %v11525_v56 = vpop.permute.xlu1 %8208  ;;  %v6262_v49 = vcombine.low %v11390_v51, %v11409_v14  ;;  %v11620_v47 = vrot.slane %v7065_v21, %v12343_v3  ;;  %v6559_v21 = vcombine.high %v11470_v28, %v12334_v43 }
 0xdb3   : > { %v11568_v29 = vrot.slane %v6262_v49, %v12343_v3  ;;  %v11603_v49 = vrot.slane %v6748_v31, %v12343_v3  ;;  %v11633_v31 = vrot.slane %v7081_v59, %v12343_v3  ;;  %v7367_v59 = vcombine.high %v11374_v45, %v11388_v44 }
 0xdb4   : > { %v7061_v45 = vcombine.high %v11518_v39, %v12334_v43 }
 0xdb5   : > { %6667 = vrot.lane.b32.xlu0 %v6627_v35, %s8680_s28  ;;  %7169 = vrot.lane.b32.xlu1 %v7129_v26, %s8680_s28  ;;  %v11542_v26 = vrot.slane %v7721_v16, %v12343_v3  ;;  %v11558_v11 = vpop.permute.xlu1 %8212  ;;  %v11561_v35 = vrot.slane %v7547_v19, %v8843_v12  ;;  %v6278_v58 = vcombine.low %v11554_v10, %v11568_v29 }
 0xdb6   : > { %v7112_v42 = vcombine.low %v11620_v47, %v11633_v31 }
 0xdb7   : > { %v7768_v6 = vcombine.low %v11542_v26, %v11531_v40 }
 0xdb9   : > { %7137 = vrot.lane.b32.xlu0 %v11518_v39, %s8676_s24  ;;  %7431 = vrot.lane.b32.xlu1 %v7384_v48, %s8681_s29  ;;  %v11576_v48 = vrot.slane %v6563_v27, %v12343_v3  ;;  %v7776_v16 = vrot.slane %v7768_v6, %v8843_v12  ;;  %v6361_v6 = vrot.slane %v6347_v57, %v8843_v12 }
 0xdba   : > { %v6495_v39 = vcombine.high %v11254_v9, %v11268_v8  ;;  %v6279_v9 = vcombine.high %v11554_v10, %v11568_v29  ;;  %v12381_v29 = vld [vmem:[#allocation19_spill] sm:$0xff] }
 0xdbb   : > { %v6610_v1 = vcombine.low %v11576_v48, %v11589_v38 }
 0xdbd   : > { %7399 = vrot.lane.b32.xlu0 %v11538_v41, %s8677_s25  ;;  %7687 = vrot.lane.b32.xlu1 %v7633_v50, %s8682_s30  ;;  %v11593_v50 = vpop.permute.xlu0 %8206  ;;  %v6618_v62 = vrot.slane %v6610_v1, %v8843_v12  ;;  %v6863_v1 = vrot.slane %v6849_v20, %v8843_v12 }
 0xdc1   : > { %7655 = vrot.lane.b32.xlu0 %v11561_v35, %s8678_s26  ;;  %7901 = vrot.lane.b32.xlu1 %v7854_v61, %s8681_s29  ;;  %v11609_v61 = vrot.slane %v6278_v58, %v8843_v12  ;;  %v11626_v58 = vpop.permute.xlu0 %8210 }
 0xdc3   : > { %v11585_v19 = vpop.permute.xlu1 %8133  ;;  %12374 = vst [vmem:[#allocation27_spill] sm:$0xff] %v11609_v61  ;;  %v6310_v15 = vcombine.high %v11609_v61, %v12334_v43 }
 0xdc5   : > { %7869 = vrot.lane.b32.xlu0 %v7776_v16, %s8677_s25  ;;  %8157 = vrot.lane.b32.xlu1 %v8103_v37, %s8682_s30  ;;  %v11614_v37 = vrot.slane %v6764_v53, %v12343_v3  ;;  %v11639_v23 = vpop.permute.xlu0 %7663 }
 0xdc7   : > { %v11605_v27 = vpop.permute.xlu1 %7667  ;;  %v6780_v57 = vcombine.low %v11603_v49, %v11614_v37 }
 0xdc9   : > { %8125 = vrot.lane.b32.xlu0 %v8031_v17, %s8678_s26  ;;  %6415 = vrot.lane.b32.xlu1 %v6361_v6, %s8676_s24  ;;  %v11647_v61 = vrot.slane %v6780_v57, %v8843_v12 }
 0xdcb   : > { %v11628_v46 = vpop.permute.xlu1 %8137  ;;  %12376 = vst [vmem:[#allocation29_spill] sm:$0xff] %v11647_v61  ;;  %v6812_v20 = vcombine.high %v11647_v61, %v12334_v43  ;;  %v7565_v61 = vcombine.high %v11561_v35, %v12334_v43 }
 0xdcd   : > { %6671 = vrot.lane.b32.xlu1 %v6618_v62, %s8677_s25  ;;  %6383 = vrot.lane.b32.xlu0 %v6310_v15, %s8679_s27  ;;  %v11653_v15 = vpop.permute.xlu0 %7635 }
 0xdcf   : > { %v11641_v53 = vpop.permute.xlu1 %7639 }
 0xdd0   : > { %12375 = vst [vmem:[#allocation28_spill] sm:$0xff] %v11641_v53  ;;  %v7120_v53 = vrot.slane %v7112_v42, %v8843_v12  ;;  %v7786_v42 = vcombine.high %v7776_v16, %v12334_v43  ;;  %v6511_v16 = vcombine.high %v11237_v55, %v11260_v32  ;;  %v12380_v55 = vcombine.high %v12371_v13, %v12370_v4  ;;  %v12383_v4 = vld [vmem:[#allocation18_spill] sm:$0xff] }
 0xdd1   : > { %6917 = vrot.lane.b32.xlu1 %v6863_v1, %s8676_s24  ;;  %6639 = vrot.lane.b32.xlu0 %v6559_v21, %s8680_s28  ;;  %v7381_v21 = vrot.slane %v7367_v59, %v8843_v12  ;;  %v6293_v13 = vrot.slane %v6279_v9, %v8843_v12 }
 0xdd2   : > { %v7851_v32 = vrot.slane %v12380_v55, %v8843_v12  ;;  %v11706_v35 = vrot.slane %v6511_v16, %v12343_v3 }
 0xdd3   : > { %v11655_v60 = vpop.permute.xlu1 %7885  ;;  %v11662_v28 = vpop.permute.xlu0 %8105 }
 0xdd4   : > { %12377 = vst [vmem:[#allocation30_spill] sm:$0xff] %v11655_v60 }
 0xdd5   : > { %7173 = vrot.lane.b32.xlu1 %v7120_v53, %s8677_s25  ;;  %6885 = vrot.lane.b32.xlu0 %v6812_v20, %s8679_s27  ;;  %v7316_v20 = vcombine.high %v11538_v41, %v12334_v43  ;;  %v11692_v41 = vrot.slane %v6495_v39, %v12343_v3 }
 0xdd7   : > { %v11664_v57 = vpop.permute.xlu1 %8141  ;;  %v6542_v10 = vcombine.low %v11692_v41, %v11706_v35 }
 0xdd9   : > { %7435 = vrot.lane.b32.xlu1 %v7381_v21, %s8678_s26  ;;  %7141 = vrot.lane.b32.xlu0 %v7061_v45, %s8680_s28  ;;  %v8035_v45 = vcombine.high %v8031_v17, %v12334_v43  ;;  %v6379_v17 = vcombine.high %v6361_v6, %v12334_v43  ;;  %v6628_v6 = vcombine.high %v6618_v62, %v12334_v43 }
 0xdda   : > { %v6881_v62 = vcombine.high %v6863_v1, %v12334_v43  ;;  %v6550_v9 = vrot.slane %v6542_v10, %v8843_v12  ;;  %v7130_v1 = vcombine.high %v7120_v53, %v12334_v43  ;;  %v7385_v53 = vcombine.high %v7381_v21, %v12334_v43 }
 0xddb   : > { %v11671_v44 = vpop.permute.xlu0 %7415  ;;  %v11676_v60 = vpop.permute.xlu1 %7419 }
 0xddc   : > { %12378 = vst [vmem:[#allocation31_spill] sm:$0xff] %v11671_v44  ;;  %12379 = vst [vmem:[#allocation32_spill] sm:$0xff] %v11676_v60  ;;  %v12392_v44 = vld [vmem:[#allocation21_spill] sm:$0xff] }
 0xddd   : > { %7873 = vrot.lane.b32.xlu1 %v7786_v42, %s8681_s29  ;;  %7403 = vrot.lane.b32.xlu0 %v7316_v20, %s8681_s29 }
 0xddf   : > { %v11682_v59 = vpop.permute.xlu0 %7671  ;;  %v11696_v8 = vpop.permute.xlu1 %7675 }
 0xde1   : > { %8129 = vrot.lane.b32.xlu1 %v8035_v45, %s8682_s30  ;;  %7659 = vrot.lane.b32.xlu0 %v7565_v61, %s8682_s30  ;;  %v12382_v61 = vld [vmem:[#allocation17_spill] sm:$0xff]  ;;  %v12384_v45 = vld [vmem:[#allocation15_spill] sm:$0xff] }
 0xde2   : > { %v6997_v20 = vcombine.high %v12382_v61, %v12381_v29  ;;  %v7013_v16 = vcombine.high %v12384_v45, %v12383_v4  ;;  %v6781_v29 = vcombine.high %v11603_v49, %v11614_v37 }
 0xde3   : > { %v11698_v42 = vpop.permute.xlu0 %8109  ;;  %v11720_v55 = vpop.permute.xlu1 %7889 }
 0xde4   : > { %12385 = vst [vmem:[#allocation19_spill] sm:$0xff] %v11720_v55  ;;  %v11734_v4 = vrot.slane %v7013_v16, %v12343_v3  ;;  %v6795_v10 = vrot.slane %v6781_v29, %v8843_v12  ;;  %v6315_v16 = vcombine.high %v10963_v52, %v11310_v63  ;;  %v7855_v63 = vcombine.high %v7851_v32, %v12334_v43 }
 0xde5   : > { %6419 = vrot.lane.b32.xlu1 %v6379_v17, %s8680_s28  ;;  %7905 = vrot.lane.b32.xlu0 %v7851_v32, %s8678_s26  ;;  %v11725_v17 = vrot.slane %v6997_v20, %v12343_v3  ;;  %v6611_v32 = vcombine.high %v11576_v48, %v11589_v38 }
 0xde6   : > { %v11764_v52 = vrot.slane %v6315_v16, %v12343_v3  ;;  %v7769_v16 = vcombine.high %v11542_v26, %v11531_v40 }
 0xde7   : > { %v11714_v39 = vpop.permute.xlu0 %7387  ;;  %v7044_v20 = vcombine.low %v11725_v17, %v11734_v4  ;;  %v11742_v49 = vpop.permute.xlu1 %8145 }
 0xde8   : > { %v7783_v40 = vrot.slane %v7769_v16, %v8843_v12 }
 0xde9   : > { %6675 = vrot.lane.b32.xlu1 %v6628_v6, %s8681_s29  ;;  %6387 = vrot.lane.b32.xlu0 %v6293_v13, %s8676_s24  ;;  %v12386_v6 = vld [vmem:[#allocation20_spill] sm:$0xff]  ;;  %v7052_v29 = vrot.slane %v7044_v20, %v8843_v12 }
 0xdea   : > { %v6331_v45 = vcombine.high %v12386_v6, %v11364_v0 }
 0xdeb   : > { %v11729_v61 = vpop.permute.xlu0 %7643 }
 0xdec   : > { %v11755_v0 = vrot.slane %v6331_v45, %v12343_v3  ;;  %v12389_v45 = vld [vmem:[#allocation24_spill] sm:$0xff] }
 0xded   : > { %6921 = vrot.lane.b32.xlu1 %v6881_v62, %s8680_s28  ;;  %6643 = vrot.lane.b32.xlu0 %v6550_v9, %s8677_s25  ;;  %v7299_v62 = vcombine.high %v11497_v5, %v11509_v25  ;;  %v12388_v25 = vld [vmem:[#allocation26_spill] sm:$0xff] }
 0xdee   : > { %v6362_v5 = vcombine.low %v11764_v52, %v11755_v0 }
 0xdef   : > { %v11744_v37 = vpop.permute.xlu0 %7857  ;;  %v7313_v20 = vrot.slane %v7299_v62, %v8843_v12 }
 0xdf0   : > { %v6370_v62 = vrot.slane %v6362_v5, %v8843_v12  ;;  %v6311_v5 = vcombine.high %v6293_v13, %v12334_v43  ;;  %v6247_v13 = vcombine.high %v10969_v22, %v11462_v18  ;;  %v7787_v18 = vcombine.high %v7783_v40, %v12334_v43 }
 0xdf1   : > { %7177 = vrot.lane.b32.xlu1 %v7130_v1, %s8681_s29  ;;  %6889 = vrot.lane.b32.xlu0 %v6795_v10, %s8676_s24  ;;  %v6833_v1 = vcombine.high %v12389_v45, %v12388_v25 }
 0xdf3   : > { %v11757_v6 = vpop.permute.xlu1 %7161  ;;  %v11759_v55 = vpop.permute.xlu0 %8113  ;;  %v11787_v25 = vrot.slane %v6833_v1, %v12343_v3 }
 0xdf4   : > { %12387 = vst [vmem:[#allocation17_spill] sm:$0xff] %v11759_v55 }
 0xdf5   : > { %7439 = vrot.lane.b32.xlu1 %v7385_v53, %s8682_s30  ;;  %7145 = vrot.lane.b32.xlu0 %v7052_v29, %s8677_s25  ;;  %v12391_v53 = vld [vmem:[#allocation22_spill] sm:$0xff] }
 0xdf6   : > { %v6817_v55 = vcombine.high %v12392_v44, %v12391_v53 }
 0xdf7   : > { %v11773_v60 = vpop.permute.xlu1 %7423  ;;  %v11775_v21 = vpop.permute.xlu0 %6659 }
 0xdf8   : > { %12390 = vst [vmem:[#allocation18_spill] sm:$0xff] %v11773_v60  ;;  %v11796_v26 = vrot.slane %v6817_v55, %v12343_v3  ;;  %v7113_v55 = vcombine.high %v11620_v47, %v11633_v31  ;;  %v6813_v31 = vcombine.high %v6795_v10, %v12334_v43 }
 0xdf9   : > { %7909 = vrot.lane.b32.xlu1 %v7855_v63, %s8682_s30  ;;  %7407 = vrot.lane.b32.xlu0 %v7313_v20, %s8678_s26  ;;  %v6625_v63 = vrot.slane %v6611_v32, %v8843_v12 }
 0xdfa   : > { %v6864_v48 = vcombine.low %v11796_v26, %v11787_v25  ;;  %v7127_v47 = vrot.slane %v7113_v55, %v8843_v12 }
 0xdfb   : > { %v11789_v45 = vpop.permute.xlu1 %7679  ;;  %v11791_v60 = vpop.permute.xlu0 %7391 }
 0xdfc   : > { %v6872_v53 = vrot.slane %v6864_v48, %v8843_v12  ;;  %v6263_v48 = vcombine.high %v11390_v51, %v11409_v14  ;;  %v6749_v14 = vcombine.high %v11479_v34, %v11501_v36 }
 0xdfd   : > { %6423 = vrot.lane.b32.xlu1 %v6370_v62, %s8677_s25  ;;  %7877 = vrot.lane.b32.xlu0 %v7783_v40, %s8678_s26  ;;  %v6380_v40 = vcombine.high %v6370_v62, %v12334_v43  ;;  %v6629_v62 = vcombine.high %v6625_v63, %v12334_v43 }
 0xdfe   : > { %v11838_v55 = vrot.slane %v6263_v48, %v12343_v3  ;;  %v11859_v34 = vrot.slane %v6749_v14, %v12343_v3  ;;  %v6363_v14 = vcombine.high %v11764_v52, %v11755_v0 }
 0xdff   : > { %v11802_v38 = vpop.permute.xlu1 %7893  ;;  %v11804_v44 = vpop.permute.xlu0 %7647 }
 0xe00   : > { %12393 = vst [vmem:[#allocation15_spill] sm:$0xff] %v11802_v38  ;;  %v6560_v38 = vcombine.high %v6550_v9, %v12334_v43  ;;  %v11833_v9 = vrot.slane %v6247_v13, %v12343_v3 }
 0xe01   : > { %6679 = vrot.lane.b32.xlu1 %v6625_v63, %s8678_s26  ;;  %6391 = vrot.lane.b32.xlu0 %v6311_v5, %s8680_s28 }
 0xe02   : > { %v6294_v51 = vcombine.low %v11833_v9, %v11838_v55 }
 0xe03   : > { %v11812_v1 = vpop.permute.xlu1 %8149  ;;  %v11814_v16 = vpop.permute.xlu0 %7861 }
 0xe05   : > { %6925 = vrot.lane.b32.xlu1 %v6872_v53, %s8677_s25  ;;  %6647 = vrot.lane.b32.xlu0 %v6560_v38, %s8681_s29 }
 0xe07   : > { %v11822_v32 = vpop.permute.xlu1 %6663  ;;  %v11824_v5 = vpop.permute.xlu0 %8117 }
 0xe08   : > { %12394 = vst [vmem:[#allocation20_spill] sm:$0xff] %v11824_v5  ;;  %v7062_v5 = vcombine.high %v7052_v29, %v12334_v43  ;;  %v7317_v29 = vcombine.high %v7313_v20, %v12334_v43  ;;  %v6302_v20 = vrot.slane %v6294_v51, %v8843_v12  ;;  %v7045_v51 = vcombine.high %v11725_v17, %v11734_v4 }
 0xe09   : > { %7181 = vrot.lane.b32.xlu1 %v7127_v47, %s8678_s26  ;;  %6893 = vrot.lane.b32.xlu0 %v6813_v31, %s8680_s28  ;;  %v6765_v31 = vcombine.high %v11430_v2, %v11464_v30  ;;  %v6377_v4 = vrot.slane %v6363_v14, %v8843_v12 }
 0xe0a   : > { %v7059_v0 = vrot.slane %v7045_v51, %v8843_v12  ;;  %v6312_v14 = vcombine.high %v6302_v20, %v12334_v43  ;;  %v12397_v51 = vld [vmem:[#allocation14_spill] sm:$0xff] }
 0xe0b   : > { %v7166_v38 = vpop.permute.xlu1 %7165  ;;  %v6632_v22 = vpop.permute.xlu0 %6631  ;;  %v11868_v2 = vrot.slane %v6765_v31, %v12343_v3  ;;  %v7131_v31 = vcombine.high %v7127_v47, %v12334_v43  ;;  %v6865_v47 = vcombine.high %v11796_v26, %v11787_v25 }
 0xe0c   : > { %v7063_v26 = vcombine.high %v7059_v0, %v12334_v43 }
 0xe0d   : > { %7881 = vrot.lane.b32.xlu1 %v7787_v18, %s8682_s30  ;;  %7149 = vrot.lane.b32.xlu0 %v7062_v5, %s8681_s29  ;;  %v6543_v5 = vcombine.high %v11692_v41, %v11706_v35  ;;  %v6796_v30 = vcombine.low %v11859_v34, %v11868_v2  ;;  %v6882_v18 = vcombine.high %v6872_v53, %v12334_v43 }
 0xe0f   : > { %v11846_v10 = vpop.permute.xlu1 %7427  ;;  %v11848_v13 = vpop.permute.xlu0 %7133  ;;  %v6557_v63 = vrot.slane %v6543_v5, %v8843_v12  ;;  %v6804_v53 = vrot.slane %v6796_v30, %v8843_v12  ;;  %v12396_v5 = vld [vmem:[#allocation23_spill] sm:$0xff] }
 0xe11   : > { %6427 = vrot.lane.b32.xlu1 %v6380_v40, %s8681_s29  ;;  %7411 = vrot.lane.b32.xlu0 %v7317_v29, %s8682_s30 }
 0xe13   : > { %v11861_v36 = vpop.permute.xlu1 %7683  ;;  %v11863_v48 = vpop.permute.xlu0 %7395 }
 0xe15   : > { %6683 = vrot.lane.b32.xlu1 %v6629_v62, %s8682_s30  ;;  %6395 = vrot.lane.b32.xlu0 %v6302_v20, %s8677_s25  ;;  %v6686_v62 = vsel %vm439_vm3, %v12396_v5, %v6632_v22  ;;  %v7195_v5 = vsel %vm439_vm3, %v12397_v51, %v11757_v6  ;;  %v6879_v6 = vrot.slane %v6865_v47, %v8843_v12 }
 0xe16   : > { %v8290_v51 = vcombine.low %v11481_v24, %v11525_v56  ;;  %v6797_v47 = vcombine.high %v11859_v34, %v11868_v2  ;;  %v8222_v2 = vcombine.low %v11523_v7, %v11593_v50 }
 0xe17   : > { %v11874_v41 = vpop.permute.xlu1 %7897  ;;  %v11876_v35 = vpop.permute.xlu0 %7651 }
 0xe18   : > { %12395 = vst [vmem:[#allocation26_spill] sm:$0xff] %v11874_v41 }
 0xe19   : > { %6929 = vrot.lane.b32.xlu1 %v6882_v18, %s8681_s29  ;;  %6651 = vrot.lane.b32.xlu0 %v6557_v63, %s8678_s26 }
 0xe1b   : > { %v11886_v40 = vpop.permute.xlu1 %8153  ;;  %v11888_v29 = vpop.permute.xlu0 %7865 }
 0xe1d   : > { %7185 = vrot.lane.b32.xlu1 %v7131_v31, %s8682_s30  ;;  %6897 = vrot.lane.b32.xlu0 %v6804_v53, %s8677_s25  ;;  %v6814_v31 = vcombine.high %v6804_v53, %v12334_v43  ;;  %v8306_v53 = vcombine.low %v11503_v54, %v11558_v11 }
 0xe1f   : > { %v6636_v18 = vpop.permute.xlu1 %6635  ;;  %v11896_v17 = vpop.permute.xlu0 %8121 }
 0xe20   : > { %v11901_v52 = vsel %vm441_vm4, %v6686_v62, %v6636_v18  ;;  %v12398_v62 = vld [vmem:[#allocation16_spill] sm:$0xff]  ;;  %v6561_v18 = vcombine.high %v6557_v63, %v12334_v43 }
 0xe21   : > { %6431 = vrot.lane.b32.xlu1 %v6377_v4, %s8678_s26  ;;  %7153 = vrot.lane.b32.xlu0 %v7059_v0, %s8678_s26  ;;  %v6693_v25 = vsel %vm439_vm3, %v12398_v62, %v11775_v21  ;;  %v12399_v21 = vld [vmem:[#allocation7_spill] sm:$0xff] }
 0xe22   : > { %v6694_v20 = vsel %vm441_vm4, %v6693_v25, %v11822_v32  ;;  %v7697_v0 = vsel %vm439_vm3, %v12399_v21, %v11639_v23 }
 0xe23   : > { %v11907_v30 = vpop.permute.xlu1 %6913  ;;  %v11909_v22 = vpop.permute.xlu0 %6411  ;;  %v7698_v32 = vsel %vm441_vm4, %v7697_v0, %v11605_v27  ;;  %v12400_v27 = vld [vmem:[#allocation25_spill] sm:$0xff] }
 0xe24   : > { %v7699_v23 = vsel %vm443_vm5, %v7698_v32, %v11682_v59  ;;  %v7188_v25 = vsel %vm439_vm3, %v12400_v27, %v11848_v13  ;;  %v6883_v59 = vcombine.high %v6879_v6, %v12334_v43 }
 0xe25   : > { %6901 = vrot.lane.b32.xlu1 %v6814_v31, %s8681_s29  ;;  %6399 = vrot.lane.b32.xlu0 %v6312_v14, %s8681_s29  ;;  %v7196_v31 = vsel %vm441_vm4, %v7195_v5, %v7166_v38  ;;  %v6295_v38 = vcombine.high %v11833_v9, %v11838_v55  ;;  %v11951_v5 = vrot.slane %v8306_v53, %v12343_v3  ;;  %v12401_v53 = vld [vmem:[#allocation12_spill] sm:$0xff] }
 0xe26   : > { %v6381_v9 = vcombine.high %v6377_v4, %v12334_v43  ;;  %v8298_v55 = vrot.slane %v8290_v51, %v12343_v3  ;;  %v7700_v13 = vsel %vm445_vm6, %v7699_v23, %v11696_v8  ;;  %v6811_v51 = vrot.slane %v6797_v47, %v8843_v12  ;;  %v12402_v23 = vld [vmem:[#allocation4_spill] sm:$0xff] }
 0xe27   : > { %v7170_v14 = vpop.permute.xlu1 %7169  ;;  %v6668_v41 = vpop.permute.xlu0 %6667  ;;  %v7701_v4 = vsel %vm447_vm7, %v7700_v13, %v11789_v45 }
 0xe28   : > { %v11935_v63 = vsel %vm443_vm5, %v7196_v31, %v7170_v14  ;;  %v11938_v62 = vsel %vm443_vm5, %v6694_v20, %v6668_v41  ;;  %v8238_v41 = vcombine.low %v11556_v33, %v11626_v58  ;;  %v7442_v20 = vsel %vm439_vm3, %v12401_v53, %v11714_v39 }
 0xe29   : > { %7157 = vrot.lane.b32.xlu1 %v7063_v26, %s8682_s30  ;;  %6655 = vrot.lane.b32.xlu0 %v6561_v18, %s8682_s30  ;;  %v7443_v31 = vsel %vm441_vm4, %v7442_v20, %v11791_v60  ;;  %v6309_v14 = vrot.slane %v6295_v38, %v8843_v12  ;;  %v8322_v21 = vcombine.low %v8298_v55, %v11951_v5 }
 0xe2a   : > { %v8246_v39 = vrot.slane %v8238_v41, %v12343_v3  ;;  %v7702_v8 = vsel %vm449_vm8, %v7701_v4, %v11861_v36  ;;  %v8230_v38 = vrot.slane %v8222_v2, %v12343_v3  ;;  %v8167_v36 = vsel %vm439_vm3, %v12402_v23, %v11585_v19  ;;  %v12403_v2 = vld [vmem:[#allocation13_spill] sm:$0xff] }
 0xe2b   : > { %v11958_v26 = vpop.permute.xlu1 %7431  ;;  %v7138_v18 = vpop.permute.xlu0 %7137  ;;  %v6313_v53 = vcombine.high %v6309_v14, %v12334_v43  ;;  %v8307_v20 = vcombine.high %v11503_v54, %v11558_v11  ;;  %v8323_v13 = vcombine.high %v8298_v55, %v11951_v5  ;;  %v8239_v5 = vcombine.high %v11556_v33, %v11626_v58 }
 0xe2c   : > { %v11963_v34 = vsel %vm441_vm4, %v7188_v25, %v7138_v18  ;;  %v8254_v41 = vcombine.low %v8230_v38, %v8246_v39  ;;  %v6815_v18 = vcombine.high %v6811_v51, %v12334_v43  ;;  %v8255_v55 = vcombine.high %v8230_v38, %v8246_v39 }
 0xe2d   : > { %6435 = vrot.lane.b32.xlu1 %v6381_v9, %s8682_s30  ;;  %6933 = vrot.lane.b32.xlu0 %v6879_v6, %s8678_s26  ;;  %v7444_v6 = vsel %vm443_vm5, %v7443_v31, %v11863_v48  ;;  %v8168_v48 = vsel %vm441_vm4, %v8167_v36, %v11628_v46  ;;  %v12005_v9 = vrot.slane %v8322_v21, %v8843_v12  ;;  %v12404_v21 = vld [vmem:[#allocation5_spill] sm:$0xff] }
 0xe2e   : > { %v7912_v46 = vsel %vm439_vm3, %v12403_v2, %v11744_v37  ;;  %v12031_v54 = vrot.slane %v8254_v41, %v8843_v12  ;;  %v8223_v33 = vcombine.high %v11523_v7, %v11593_v50  ;;  %v8269_v23 = vrot.slane %v8255_v55, %v8843_v12  ;;  %v12405_v41 = vld [vmem:[#allocation6_spill] sm:$0xff] }
 0xe2f   : > { %v7688_v0 = vpop.permute.xlu1 %7687  ;;  %v7400_v32 = vpop.permute.xlu0 %7399 }
 0xe30   : > { %v7703_v45 = vsel %vm451_vm9, %v7702_v8, %v7688_v0  ;;  %v11989_v60 = vsel %vm445_vm6, %v7444_v6, %v7400_v32  ;;  %v6445_v8 = vsel %vm439_vm3, %v12404_v21, %v11909_v22  ;;  %v8253_v22 = vrot.slane %v8239_v5, %v12343_v3 }
 0xe31   : > { %v7707_v47 = vrot.slane %v7703_v45, 4  ;;  %6937 = vrot.lane.b32.xlu1 %v6883_v59, %s8682_s30  ;;  %6403 = vrot.lane.b32.xlu0 %v6309_v14, %s8678_s26  ;;  %v8169_v59 = vsel %vm443_vm5, %v8168_v48, %v11664_v57  ;;  %v8354_v14 = vcombine.high %v12005_v9, %v12334_v43  ;;  %v8237_v7 = vrot.slane %v8223_v33, %v12343_v3 }
 0xe32   : > { %v8170_v19 = vsel %vm445_vm6, %v8169_v59, %v11742_v49  ;;  %v7913_v49 = vsel %vm441_vm4, %v7912_v46, %v11814_v16  ;;  %v8291_v16 = vcombine.high %v11481_v24, %v11525_v56  ;;  %v8337_v24 = vrot.slane %v8323_v13, %v8843_v12 }
 0xe33   : > { %7711 = vst [vmem:[#allocation3 + $0x58] sm:$0xf0] %v7707_v47  ;;  %v11999_v27 = vpop.permute.xlu1 %7901  ;;  %v12001_v25 = vpop.permute.xlu0 %7655  ;;  %v8171_v57 = vsel %vm447_vm7, %v8170_v19, %v11812_v1  ;;  %v7914_v4 = vsel %vm443_vm5, %v7913_v49, %v11888_v29  ;;  %v8321_v29 = vrot.slane %v8307_v20, %v12343_v3  ;;  %v8286_v56 = vcombine.high %v12031_v54, %v12334_v43 }
 0xe34   : > { %v8172_v37 = vsel %vm449_vm8, %v8171_v57, %v11886_v40  ;;  %v8305_v45 = vrot.slane %v8291_v16, %v12343_v3  ;;  %v8355_v47 = vcombine.high %v8337_v24, %v12334_v43  ;;  %v8270_v50 = vcombine.low %v8237_v7, %v8253_v22 }
 0xe35   : > { %6909 = vrot.lane.b32.xlu1 %v6815_v18, %s8682_s30  ;;  %6905 = vrot.lane.b32.xlu0 %v6811_v51, %s8678_s26  ;;  %v6947_v48 = vsel %vm439_vm3, %v12405_v41, %v11907_v30  ;;  %v8287_v2 = vcombine.high %v8269_v23, %v12334_v43  ;;  %v8687_v41 = vmov 0  }
 0xe36   : > { %v8338_v58 = vcombine.low %v8305_v45, %v8321_v29  ;;  %v8339_v46 = vcombine.high %v8305_v45, %v8321_v29  ;;  %v8278_v13 = vrot.slane %v8270_v50, %v8843_v12  ;;  %8655 = vset.pattern.permute.xlu0 %v8687_v41 }
 0xe37   : > { %v8158_v31 = vpop.permute.xlu1 %8157  ;;  %v7870_v51 = vpop.permute.xlu0 %7869 }
 0xe38   : > { %v8173_v11 = vsel %vm451_vm9, %v8172_v37, %v8158_v31  ;;  %v12035_v1 = vsel %vm445_vm6, %v7914_v4, %v7870_v51  ;;  %v8346_v19 = vrot.slane %v8338_v58, %v8843_v12  ;;  %v8353_v4 = vrot.slane %v8339_v46, %v8843_v12 }
 0xe39   : > { %v8177_v40 = vrot.slane %v8173_v11, 4  ;;  %8387 = vrot.lane.b32.xlu1 %v8354_v14, %s8679_s27  ;;  %6407 = vrot.lane.b32.xlu0 %v6313_v53, %s8682_s30  ;;  %v8288_v31 = vcombine.high %v8278_v13, %v12334_v43  ;;  %v12407_v11 = vld [vmem:[#allocation10_spill] sm:$0xff] }
 0xe3a   : > { %v8356_v20 = vcombine.high %v8346_v19, %v12334_v43  ;;  %v8160_v16 = vsel %vm439_vm3, %v12407_v11, %v11662_v28  ;;  %v8357_v21 = vcombine.high %v8353_v4, %v12334_v43  ;;  %v12416_v11 = vld [vmem:[#allocation18_spill] sm:$0xff] }
 0xe3b   : > { %8181 = vst [vmem:[#allocation3 + $0xa0] sm:$0xf0] %v8177_v40  ;;  %v6416_v6 = vpop.permute.xlu1 %6415  ;;  %v8126_v0 = vpop.permute.xlu0 %8125  ;;  %v12408_v40 = vld [vmem:[#allocation28_spill] sm:$0xff]  ;;  %v8161_v5 = vsel %vm441_vm4, %v8160_v16, %v11698_v42 }
 0xe3c   : > { %v12051_v32 = vsel %vm441_vm4, %v6445_v8, %v6416_v6  ;;  %v12409_v6 = vld [vmem:[#allocation17_spill] sm:$0xff] }
 0xe3d   : > { %8391 = vrot.lane.b32.xlu1 %v8337_v24, %s8676_s24  ;;  %8359 = vrot.lane.b32.xlu0 %v8286_v56, %s8679_s27  ;;  %v8162_v28 = vsel %vm443_vm5, %v8161_v5, %v12409_v6  ;;  %v12410_v56 = vld [vmem:[#allocation20_spill] sm:$0xff]  ;;  %v12418_v5 = vld [vmem:[#allocation9_spill] sm:$0xff] }
 0xe3e   : > { %v8163_v42 = vsel %vm445_vm6, %v8162_v28, %v12410_v56  ;;  %v12420_v56 = vld [vmem:[#allocation15_spill] sm:$0xff] }
 0xe3f   : > { %v6672_v39 = vpop.permute.xlu1 %6671  ;;  %v12059_v38 = vpop.permute.xlu0 %6383 }
 0xe40   : > { %v12065_v36 = vsel %vm445_vm6, %v11938_v62, %v6672_v39 }
 0xe41   : > { %8395 = vrot.lane.b32.xlu1 %v8355_v47, %s8680_s28  ;;  %8363 = vrot.lane.b32.xlu0 %v8269_v23, %s8676_s24 }
 0xe43   : > { %v6918_v18 = vpop.permute.xlu1 %6917  ;;  %v6640_v59 = vpop.permute.xlu0 %6639 }
 0xe44   : > { %v12076_v62 = vsel %vm441_vm4, %v6947_v48, %v6918_v18  ;;  %v12080_v3 = vsel %vm443_vm5, %v11901_v52, %v6640_v59  ;;  %v8271_v52 = vcombine.high %v8237_v7, %v8253_v22  ;;  %v8483_v7 = vld [vmem:[%s12283_s2] sm:$0xf]  ;;  %v12411_v48 = vld [vmem:[#allocation27_spill] sm:$0xff] }
 0xe45   : > { %8399 = vrot.lane.b32.xlu1 %v8346_v19, %s8677_s25  ;;  %8367 = vrot.lane.b32.xlu0 %v8287_v2, %s8680_s28  ;;  %v6438_v18 = vsel %vm439_vm3, %v12411_v48, %v12059_v38  ;;  %v12415_v38 = vld [vmem:[#allocation29_spill] sm:$0xff] }
 0xe46   : > { %v8285_v8 = vrot.slane %v8271_v52, %v8843_v12  ;;  %v8164_v12 = vsel %vm447_vm7, %v8163_v42, %v11896_v17 }
 0xe47   : > { %v7174_v53 = vpop.permute.xlu1 %7173  ;;  %v12084_v30 = vpop.permute.xlu0 %6885  ;;  %v8165_v33 = vsel %vm449_vm8, %v8164_v12, %v8126_v0 }
 0xe48   : > { %v12090_v57 = vsel %vm445_vm6, %v11935_v63, %v7174_v53  ;;  %v12406_v63 = vld [vmem:[#allocation8_spill] sm:$0xff]  ;;  %v8289_v22 = vcombine.high %v8285_v8, %v12334_v43 }
 0xe49   : > { %8403 = vrot.lane.b32.xlu1 %v8356_v20, %s8681_s29  ;;  %8371 = vrot.lane.b32.xlu0 %v8278_v13, %s8677_s25  ;;  %v7690_v14 = vsel %vm439_vm3, %v12406_v63, %v11653_v15  ;;  %v12412_v20 = vld [vmem:[#allocation31_spill] sm:$0xff] }
 0xe4a   : > { %v7691_v29 = vsel %vm441_vm4, %v7690_v14, %v12408_v40  ;;  %v12413_v13 = vld [vmem:[#allocation11_spill] sm:$0xff] }
 0xe4b   : > { %v12094_v49 = vpop.permute.xlu1 %7435  ;;  %v7142_v37 = vpop.permute.xlu0 %7141  ;;  %v7692_v15 = vsel %vm443_vm5, %v7691_v29, %v11729_v61 }
 0xe4c   : > { %v12100_v51 = vsel %vm443_vm5, %v11963_v34, %v7142_v37  ;;  %v7693_v24 = vsel %vm445_vm6, %v7692_v15, %v11804_v44  ;;  %v12414_v37 = vld [vmem:[#allocation32_spill] sm:$0xff]  ;;  %v12419_v15 = vld [vmem:[#allocation19_spill] sm:$0xff] }
 0xe4d   : > { %8407 = vrot.lane.b32.xlu1 %v8353_v4, %s8678_s26  ;;  %8375 = vrot.lane.b32.xlu0 %v8288_v31, %s8681_s29  ;;  %v7694_v45 = vsel %vm447_vm7, %v7693_v24, %v11876_v35  ;;  %v12143_v35 = vld.sshfl [vmem:[%s12282_s1] sm:$0x33 pattern:$0x76325410]  ;;  %v6940_v31 = vsel %vm439_vm3, %v12415_v38, %v12084_v30 }
 0xe4e   : > { %v7695_v61 = vsel %vm449_vm8, %v7694_v45, %v12001_v25  ;;  %v8497_v25 = vcombine.high %v12143_v35, %v12143_v35  ;;  %v12421_v45 = vld [vmem:[#allocation26_spill] sm:$0xff] }
 0xe4f   : > { %v12114_v34 = vpop.permute.xlu1 %7873  ;;  %v12116_v55 = vpop.permute.xlu0 %7403 }
 0xe50   : > { %8622 = vmatprep.mubr.msk.bf16.mxu0 %vm8499_vm10, %v8497_v25 }
 0xe51   : > { %8411 = vrot.lane.b32.xlu1 %v8357_v21, %s8682_s30  ;;  %8379 = vrot.lane.b32.xlu0 %v8285_v8, %s8678_s26 }
 0xe53   : > { %v8130_v58 = vpop.permute.xlu1 %8129  ;;  %v7660_v44 = vpop.permute.xlu0 %7659 }
 0xe54   : > { %v8166_v39 = vsel %vm451_vm9, %v8165_v33, %v8130_v58  ;;  %v7696_v47 = vsel %vm451_vm9, %v7695_v61, %v7660_v44 }
 0xe55   : > { %v8176_v17 = vrot.slane %v8166_v39, 4  ;;  %v7706_v23 = vrot.slane %v7696_v47, 4  ;;  %8383 = vrot.lane.b32.xlu0 %v8289_v22, %s8682_s30 }
 0xe57   : > { %8180 = vst [vmem:[#allocation3 + $0xf0] sm:$0xf0] %v8176_v17  ;;  %7710 = vst [vmem:[#allocation3 + $0xa8] sm:$0xf0] %v7706_v23  ;;  %v6420_v43 = vpop.permute.xlu1 %6419  ;;  %v7906_v0 = vpop.permute.xlu0 %7905 }
 0xe58   : > { %v12153_v50 = vsel %vm443_vm5, %v12051_v32, %v6420_v43  ;;  %v7449_v32 = vsel %vm439_vm3, %v12413_v13, %v12412_v20  ;;  %v7446_v20 = vsel %vm447_vm7, %v11989_v60, %v12116_v55 }
 0xe59   : > { %8486 = vperm.xlu0 %8655, %v8483_v7   ;;  %v7450_v4 = vsel %vm441_vm4, %v7449_v32, %v12414_v37 }
 0xe5a   : > { %v7451_v16 = vsel %vm443_vm5, %v7450_v4, %v12416_v11 }
 0xe5b   : > { %v6676_v59 = vpop.permute.xlu1 %6675  ;;  %v6388_v19 = vpop.permute.xlu0 %6387  ;;  %v7452_v29 = vsel %vm445_vm6, %v7451_v16, %v11846_v10 }
 0xe5c   : > { %v12159_v2 = vsel %vm441_vm4, %v6438_v18, %v6388_v19  ;;  %v7453_v8 = vsel %vm447_vm7, %v7452_v29, %v11958_v26 }
 0xe5d   : > { %v7454_v6 = vsel %vm449_vm8, %v7453_v8, %v12094_v49 }
 0xe5f   : > { %v6922_v46 = vpop.permute.xlu1 %6921  ;;  %v12161_v53 = vpop.permute.xlu0 %6643 }
 0xe60   : > { %v12168_v52 = vsel %vm443_vm5, %v12076_v62, %v6922_v46  ;;  %v12417_v62 = vld [vmem:[#allocation30_spill] sm:$0xff] }
 0xe61   : > { %v7919_v21 = vsel %vm439_vm3, %v12418_v5, %v12417_v62 }
 0xe62   : > { %v7920_v30 = vsel %vm441_vm4, %v7919_v21, %v12419_v15 }
 0xe63   : > { %v7178_v63 = vpop.permute.xlu1 %7177  ;;  %v6890_v14 = vpop.permute.xlu0 %6889  ;;  %v7921_v42 = vsel %vm443_vm5, %v7920_v30, %v12420_v56 }
 0xe64   : > { %v12178_v40 = vsel %vm441_vm4, %v6940_v31, %v6890_v14  ;;  %v7922_v12 = vsel %vm445_vm6, %v7921_v42, %v12421_v45  ;;  %v7199_v5 = vsel %vm447_vm7, %v12090_v57, %v7178_v63  ;;  %v6689_v42 = vsel %vm445_vm6, %v12080_v3, %v12161_v53 }
 0xe65   : > { %v7923_v26 = vsel %vm447_vm7, %v7922_v12, %v11999_v27 }
 0xe66   : > { %v7924_v61 = vsel %vm449_vm8, %v7923_v26, %v7906_v0  ;;  %v7916_v0 = vsel %vm447_vm7, %v12035_v1, %v12114_v34  ;;  %v6697_v1 = vsel %vm447_vm7, %v12065_v36, %v6676_v59 }
 0xe67   : > { %v7440_v28 = vpop.permute.xlu1 %7439  ;;  %v7146_v24 = vpop.permute.xlu0 %7145 }
 0xe68   : > { %v7455_v10 = vsel %vm451_vm9, %v7454_v6, %v7440_v28  ;;  %v7191_v57 = vsel %vm445_vm6, %v12100_v51, %v7146_v24 }
 0xe69   : > { %7457 = vst [vmem:[#allocation3 + $0x58] sm:$0xf] %v7455_v10 }
 0xe6b   : > { %v7910_v33 = vpop.permute.xlu1 %7909  ;;  %v7408_v58 = vpop.permute.xlu0 %7407 }
 0xe6c   : > { %v7925_v49 = vsel %vm451_vm9, %v7924_v61, %v7910_v33  ;;  %v7447_v13 = vsel %vm449_vm8, %v7446_v20, %v7408_v58 }
 0xe6d   : > { %7927 = vst [vmem:[#allocation3 + $0xa0] sm:$0xf] %v7925_v49 }
 0xe6f   : > { %v6424_v44 = vpop.permute.xlu1 %6423  ;;  %v7878_v22 = vpop.permute.xlu0 %7877 }
 0xe70   : > { %v8459_v17 = vld [vmem:[#allocation3 + $0x58] sm:$0xff]  ;;  %v7917_v48 = vsel %vm449_vm8, %v7916_v0, %v7878_v22  ;;  %v6448_v3 = vsel %vm445_vm6, %v12153_v50, %v6424_v44 }
 0xe73   : > { %v6680_v39 = vpop.permute.xlu1 %6679  ;;  %v12200_v47 = vpop.permute.xlu0 %6391 }
 0xe74   : > { %v8461_v23 = vld [vmem:[#allocation3 + $0xa0] sm:$0xff]  ;;  %v6698_v34 = vsel %vm449_vm8, %v6697_v1, %v6680_v39 }
 0xe75   : > { %v8479_v25 = vpack.c.bf16 %v8461_v23, %v8459_v17 }
 0xe77   : > { %v6926_v43 = vpop.permute.xlu1 %6925  ;;  %8510 = vmatprep.subr.bf16.mxu0 %v8479_v25  ;;  %v6648_v7 = vpop.permute.xlu0 %6647 }
 0xe78   : > { %v6690_v63 = vsel %vm447_vm7, %v6689_v42, %v6648_v7  ;;  %v6950_v23 = vsel %vm445_vm6, %v12168_v52, %v6926_v43  ;;  %v6440_v43 = vsel %vm443_vm5, %v12159_v2, %v12200_v47 }
 0xe7b   : > { %v7182_v41 = vpop.permute.xlu1 %7181  ;;  %v12202_v27 = vpop.permute.xlu0 %6893 }
 0xe7c   : > { %v7200_v21 = vsel %vm449_vm8, %v7199_v5, %v7182_v41  ;;  %v6942_v0 = vsel %vm443_vm5, %v12178_v40, %v12202_v27  ;;  %v8452_v5 = vld [vmem:[#allocation3 + $0x98] sm:$0xff] }
 0xe7f   : > { %v7882_v18 = vpop.permute.xlu1 %7881  ;;  %v7150_v19 = vpop.permute.xlu0 %7149 }
 0xe80   : > { %v7918_v46 = vsel %vm451_vm9, %v7917_v48, %v7882_v18  ;;  %v7192_v10 = vsel %vm447_vm7, %v7191_v57, %v7150_v19  ;;  %v8445_v57 = vld [vmem:[#allocation3 + $0xb8] sm:$0xff] }
 0xe81   : > { %7926 = vst [vmem:[#allocation3 + $0xf0] sm:$0xf] %v7918_v46 }
 0xe83   : > { %v6428_v32 = vpop.permute.xlu1 %6427  ;;  %v7412_v37 = vpop.permute.xlu0 %7411 }
 0xe84   : > { %v7448_v4 = vsel %vm451_vm9, %v7447_v13, %v7412_v37  ;;  %v6449_v51 = vsel %vm447_vm7, %v6448_v3, %v6428_v32 }
 0xe85   : > { %7456 = vst [vmem:[#allocation3 + $0xa8] sm:$0xf] %v7448_v4 }
 0xe87   : > { %v6684_v38 = vpop.permute.xlu1 %6683  ;;  %v6396_v31 = vpop.permute.xlu0 %6395 }
 0xe88   : > { %v6699_v14 = vsel %vm451_vm9, %v6698_v34, %v6684_v38  ;;  %v8460_v29 = vld [vmem:[#allocation3 + $0xf0] sm:$0xff]  ;;  %v6441_v20 = vsel %vm445_vm6, %v6440_v43, %v6396_v31  ;;  %v8435_v43 = vld [vmem:[#allocation3 + $0x68] sm:$0xff] }
 0xe89   : > { %v6703_v11 = vrot.slane %v6699_v14, 4 }
 0xe8b   : > { %6707 = vst [vmem:[#allocation3] sm:$0xf0] %v6703_v11  ;;  %v6930_v16 = vpop.permute.xlu1 %6929  ;;  %v6652_v60 = vpop.permute.xlu0 %6651  ;;  %v8453_v11 = vld [vmem:[#allocation3 + $0x78] sm:$0xff] }
 0xe8c   : > { %v8458_v55 = vld [vmem:[#allocation3 + $0xa8] sm:$0xff]  ;;  %v6691_v45 = vsel %vm449_vm8, %v6690_v63, %v6652_v60  ;;  %v6951_v25 = vsel %vm447_vm7, %v6950_v23, %v6930_v16  ;;  %v8446_v63 = vld [vmem:[#allocation3 + $0x40] sm:$0xff] }
 0xe8d   : > { %v8478_v62 = vpack.c.bf16 %v8460_v29, %v8458_v55  ;;  %v8451_v29 = vld [vmem:[#allocation3 + $0x50] sm:$0xff] }
 0xe8f   : > { %v7186_v8 = vpop.permute.xlu1 %7185  ;;  %8511 = vmatpush1.bf16.msra.mxu0 %v8478_v62  ;;  %v6898_v36 = vpop.permute.xlu0 %6897  ;;  %v8475_v62 = vpack.c.bf16 %v8453_v11, %v8451_v29 }
 0xe90   : > { %v7201_v59 = vsel %vm451_vm9, %v7200_v21, %v7186_v8  ;;  %v6943_v48 = vsel %vm445_vm6, %v6942_v0, %v6898_v36  ;;  %v8449_v36 = vld [vmem:[#allocation3 + $0x38] sm:$0xff] }
 0xe91   : > { %v7205_v15 = vrot.slane %v7201_v59, 4  ;;  %v8450_v59 = vld [vmem:[#allocation3 + $0x8] sm:$0xff]  ;;  %v8437_v0 = vld [vmem:[#allocation3 + $0x18] sm:$0xff] }
 0xe93   : > { %7209 = vst [vmem:[#allocation3 + $0xe0] sm:$0xf0] %v7205_v15  ;;  %v6432_v30 = vpop.permute.xlu1 %6431  ;;  %v7154_v6 = vpop.permute.xlu0 %7153  ;;  %v8474_v15 = vpack.c.bf16 %v8452_v5, %v8450_v59 }
 0xe94   : > { %v7193_v12 = vsel %vm449_vm8, %v7192_v10, %v7154_v6  ;;  %v6450_v24 = vsel %vm449_vm8, %v6449_v51, %v6432_v30  ;;  %v8447_v30 = vld [vmem:[#allocation3 + $0x90] sm:$0xff]  ;;  %v8442_v51 = vld [vmem:[#allocation3 + $0xc0] sm:$0xff] }
 0xe95   : > { %v8473_v6 = vpack.c.bf16 %v8449_v36, %v8447_v30 }
 0xe97   : > { %v6902_v28 = vpop.permute.xlu1 %6901  ;;  %v6400_v56 = vpop.permute.xlu0 %6399 }
 0xe98   : > { %v6944_v18 = vsel %vm447_vm7, %v6943_v48, %v6902_v28  ;;  %v6442_v32 = vsel %vm447_vm7, %v6441_v20, %v6400_v56  ;;  %v8448_v28 = vld [vmem:[#allocation3 + $0x60] sm:$0xff]  ;;  %v8467_v20 = vpack.c.bf16 %v8437_v0, %v8435_v43 }
 0xe99   : > { %v8472_v10 = vpack.c.bf16 %v8448_v28, %v8446_v63 }
 0xe9b   : > { %v7158_v26 = vpop.permute.xlu1 %7157  ;;  %v6656_v61 = vpop.permute.xlu0 %6655 }
 0xe9c   : > { %v7194_v33 = vsel %vm451_vm9, %v7193_v12, %v7158_v26  ;;  %v6692_v58 = vsel %vm451_vm9, %v6691_v45, %v6656_v61  ;;  %v8443_v45 = vld [vmem:[#allocation3 + $0x28] sm:$0xff]  ;;  %v8444_v61 = vld [vmem:[#allocation3 + $0xf8] sm:$0xff] }
 0xe9d   : > { %v7204_v53 = vrot.slane %v7194_v33, 4  ;;  %v6702_v49 = vrot.slane %v6692_v58, 4  ;;  %v8471_v26 = vpack.c.bf16 %v8445_v57, %v8443_v45 }
 0xe9f   : > { %7208 = vst [vmem:[#allocation3 + $0x20] sm:$0xf0] %v7204_v53  ;;  %6706 = vst [vmem:[#allocation3 + $0xc8] sm:$0xf0] %v6702_v49  ;;  %v6436_v22 = vpop.permute.xlu1 %6435  ;;  %v6934_v39 = vpop.permute.xlu0 %6933  ;;  %v8441_v53 = vld [vmem:[#allocation3 + $0x100] sm:$0xff] }
 0xea0   : > { %v6451_v17 = vsel %vm451_vm9, %v6450_v24, %v6436_v22  ;;  %v6952_v50 = vsel %vm449_vm8, %v6951_v25, %v6934_v39  ;;  %v8470_v22 = vpack.c.bf16 %v8444_v61, %v8442_v51  ;;  %v8439_v39 = vld [vmem:[#allocation3 + $0x88] sm:$0xff] }
 0xea1   : > { %6453 = vst [vmem:[#allocation3] sm:$0xf] %v6451_v17  ;;  %v8469_v23 = vpack.c.bf16 %v8441_v53, %v8439_v39  ;;  %v8440_v25 = vld [vmem:[#allocation3 + $0xe8] sm:$0xff] }
 0xea3   : > { %v6938_v44 = vpop.permute.xlu1 %6937  ;;  %v6404_v7 = vpop.permute.xlu0 %6403 }
 0xea4   : > { %v6953_v41 = vsel %vm451_vm9, %v6952_v50, %v6938_v44  ;;  %v6443_v40 = vsel %vm449_vm8, %v6442_v32, %v6404_v7 }
 0xea5   : > { %6955 = vst [vmem:[#allocation3 + $0xe0] sm:$0xf] %v6953_v41 }
 0xea7   : > { %v6910_v19 = vpop.permute.xlu1 %6909  ;;  %v6906_v52 = vpop.permute.xlu0 %6905 }
 0xea8   : > { %v6945_v46 = vsel %vm449_vm8, %v6944_v18, %v6906_v52  ;;  %v8455_v1 = vld [vmem:[#allocation3] sm:$0xff] }
 0xea9   : > { %v6946_v13 = vsel %vm451_vm9, %v6945_v46, %v6910_v19  ;;  %v8438_v19 = vld [vmem:[#allocation3 + $0x80] sm:$0xff] }
 0xeaa   : > { %6954 = vst [vmem:[#allocation3 + $0x20] sm:$0xf] %v6946_v13  ;;  %v8468_v52 = vpack.c.bf16 %v8440_v25, %v8438_v19  ;;  %v8436_v13 = vld [vmem:[#allocation3 + $0x30] sm:$0xff] }
 0xeab   : > { %v8388_v27 = vpop.permute.xlu1 %8387  ;;  %v6408_v37 = vpop.permute.xlu0 %6407 }
 0xeac   : > { %v6444_v4 = vsel %vm451_vm9, %v6443_v40, %v6408_v37  ;;  %v8457_v34 = vld [vmem:[#allocation3 + $0xe0] sm:$0xff]  ;;  %v8421_v12 = vsel %vm439_vm3, %v12005_v9, %v8388_v27  ;;  %v8433_v27 = vld [vmem:[#allocation3 + $0x48] sm:$0xff] }
 0xead   : > { %6452 = vst [vmem:[#allocation3 + $0xc8] sm:$0xf] %v6444_v4  ;;  %v8477_v38 = vpack.c.bf16 %v8457_v34, %v8455_v1  ;;  %v8434_v4 = vld [vmem:[#allocation3 + $0x108] sm:$0xff]  ;;  %v8431_v34 = vld [vmem:[#allocation3 + $0xd0] sm:$0xff] }
 0xeae   : > { %v8466_v1 = vpack.c.bf16 %v8436_v13, %v8434_v4 }
 0xeaf   : > { %v8392_v2 = vpop.permute.xlu1 %8391  ;;  %8512 = vmatprep.subr.bf16.mxu0 %v8477_v38  ;;  %v8360_v47 = vpop.permute.xlu0 %8359  ;;  %v8465_v38 = vpack.c.bf16 %v8433_v27, %v8431_v34 }
 0xeb0   : > { %v8422_v33 = vsel %vm441_vm4, %v8421_v12, %v8392_v2  ;;  %v8414_v17 = vsel %vm439_vm3, %v12031_v54, %v8360_v47  ;;  %v8432_v2 = vld [vmem:[#allocation3 + $0x10] sm:$0xff] }
 0xeb1   : > { %v8456_v60 = vld [vmem:[#allocation3 + $0x20] sm:$0xff]  ;;  %v8430_v47 = vld [vmem:[#allocation3 + $0xb0] sm:$0xff] }
 0xeb3   : > { %v8396_v14 = vpop.permute.xlu1 %8395  ;;  %v8364_v31 = vpop.permute.xlu0 %8363 }
 0xeb4   : > { %v8454_v16 = vld [vmem:[#allocation3 + $0xc8] sm:$0xff]  ;;  %v8423_v49 = vsel %vm443_vm5, %v8422_v33, %v8396_v14  ;;  %v8415_v50 = vsel %vm441_vm4, %v8414_v17, %v8364_v31  ;;  %v8464_v31 = vpack.c.bf16 %v8432_v2, %v8430_v47 }
 0xeb5   : > { %v8476_v55 = vpack.c.bf16 %v8456_v60, %v8454_v16 }
 0xeb7   : > { %v8400_v21 = vpop.permute.xlu1 %8399  ;;  %8513 = vmatpush1.bf16.msra.mxu0 %v8476_v55  ;;  %v8368_v8 = vpop.permute.xlu0 %8367 }
 0xeb8   : > { %8514 = vmatprep.subr.bf16.mxu0 %v8475_v62  ;;  %v8424_v24 = vsel %vm445_vm6, %v8423_v49, %v8400_v21  ;;  %v8416_v48 = vsel %vm443_vm5, %v8415_v50, %v8368_v8 }
 0xebb   : > { %v8404_v56 = vpop.permute.xlu1 %8403  ;;  %8515 = vmatpush1.bf16.msra.mxu0 %v8474_v15  ;;  %v8372_v42 = vpop.permute.xlu0 %8371 }
 0xebc   : > { %8516 = vmatprep.subr.bf16.mxu0 %v8473_v6  ;;  %v8425_v9 = vsel %vm447_vm7, %v8424_v24, %v8404_v56  ;;  %v8417_v54 = vsel %vm445_vm6, %v8416_v48, %v8372_v42 }
 0xebf   : > { %v8408_v58 = vpop.permute.xlu1 %8407  ;;  %8517 = vmatpush1.bf16.msra.mxu0 %v8472_v10  ;;  %v8376_v3 = vpop.permute.xlu0 %8375 }
 0xec0   : > { %8518 = vmatprep.subr.bf16.mxu0 %v8471_v26  ;;  %v8426_v44 = vsel %vm449_vm8, %v8425_v9, %v8408_v58  ;;  %v8418_v46 = vsel %vm447_vm7, %v8417_v54, %v8376_v3 }
 0xec3   : > { %v8412_v7 = vpop.permute.xlu1 %8411  ;;  %8519 = vmatpush1.bf16.msra.mxu0 %v8470_v22  ;;  %v8380_v41 = vpop.permute.xlu0 %8379 }
 0xec4   : > { %v8427_v18 = vsel %vm451_vm9, %v8426_v44, %v8412_v7  ;;  %8520 = vmatprep.subr.bf16.mxu0 %v8469_v23  ;;  %v8419_v32 = vsel %vm449_vm8, %v8418_v46, %v8380_v41 }
 0xec5   : > { %8429 = vst [vmem:[#allocation3 + $0xd8] sm:$0xf] %v8427_v18 }
 0xec7   : > { %8521 = vmatpush1.bf16.msra.mxu0 %v8468_v52  ;;  %v8384_v40 = vpop.permute.xlu0 %8383 }
 0xec8   : > { %v8420_v37 = vsel %vm451_vm9, %v8419_v32, %v8384_v40  ;;  %8522 = vmatprep.subr.bf16.mxu0 %v8467_v20 }
 0xec9   : > { %8428 = vst [vmem:[#allocation3 + $0x70] sm:$0xf] %v8420_v37 }
 0xecb   : > { %8523 = vmatpush1.bf16.msra.mxu0 %v8466_v1 }
 0xecc   : > { %8524 = vmatprep.subr.bf16.mxu0 %v8465_v38  ;;  %v8463_v14 = vld [vmem:[#allocation3 + $0xd8] sm:$0xf] }
 0xecd   : > { %v8481_v11 = vpack.c.bf16 %v8463_v14, %v8463_v14 }
 0xecf   : > { %8525 = vmatpush1.bf16.msra.mxu0 %v8464_v31 }
 0xed0   : > { %8621 = vmatprep.subr.msk.bf16.mxu0 %vm8503_vm11, %v8481_v11  ;;  %v8462_v16 = vld [vmem:[#allocation3 + $0x70] sm:$0xf] }
 0xed1   : > { %v8480_v60 = vpack.c.bf16 %v8462_v16, %v8462_v16 }
 0xed3   : > { %v8505_v55 = vsel %vm8503_vm11, %v8480_v60, 0 }
 0xed4   : > { %8541 = vmatpush2.bf16.msra.mxu0 %v8505_v55  ;;  %v8487_v62 = vpop.permute.xlu0 %8486 }
 0xed7   : > { %8543 = vmatmul.mubr.bf16.vlgmr.msra.gmra.mxu0 %v12143_v35 }
 0xf97   : > { %v8544_v29 = vpop.f32.mrf.mxu0 }
 0xf98   : > { %v8545_v21 = vadd.f32 %v8544_v29, %v8487_v62 }
 0xf99   : > { %v8546_v5 = vpop.f32.mrf.mxu0 }
 0xf9a   : > { %v8547_v8 = vadd.f32 %v8546_v5, %v8487_v62 }
 0xf9b   : > { %v8548_v36 = vpop.f32.mrf.mxu0 }
 0xf9c   : > { %v8553_v59 = vcombine.low %v8545_v21, %v8547_v8 }
 0xf9d   : > { %v8549_v15 = vpop.f32.mrf.mxu0 }
 0xf9e   : > { %8555 = vst [vmem:[%s170_s17] sm:$0xff] %v8553_v59 }
 0xf9f PF: > { %s13_s12 = sadd.s32 1, %s8666_s12  }
 0xfa0   : > { %p10_p4 = scmp.ge.s32.totalorder %s13_s12, 4  }
 0xfa2   :  { %12 = sbr.rel (!%p10_p4) target bundleno = 1 (0x1), region = 62 }

</bundles_post_ra>
